<compile_context>
chip_gen: v7x
topology: tpu7x:2x2x1
jax: 0.10.0
libtpu: 0.0.40
codegen_flags: <defaults>
</compile_context>

<pallas_src>
import jax
import jax.numpy as jnp
from jax.experimental import pallas as pl
from jax.experimental.pallas import tpu as pltpu


# --------------------------------------------------------------------------- #
# Kernel
# --------------------------------------------------------------------------- #
def encoder_gru_kernel(gi_ref, wh_ref, bhn_ref, h_out_ref):
    """gi_ref:  (L, BT, 3*Hp) f32  precomputed input-side gates (biases folded,
                                   except b_hn which is multiplied by r).
       wh_ref:  (Hp, 3*Hp)    bf16 packed [W_hr^T | W_hz^T | W_hn^T] (zero-padded).
       bhn_ref: (1, Hp)       f32  b_hn (zero-padded).
       h_out_ref: (BT, Hp)    f32  final hidden state for this batch block."""
    L, BT, _ = gi_ref.shape
    Hp = h_out_ref.shape[-1]

    wh = wh_ref[...]                                               # loop-invariant (bf16)
    # Hoisted once: per-step re-materializing this broadcast would add VPU work
    # to the serial chain (JAX does not CSE broadcast_in_dim).
    bh_n = jnp.broadcast_to(bhn_ref[...].astype(jnp.float32), (BT, Hp))

    def step(t, h):
        gi = gi_ref[t]                                             # (BT, 3*Hp) f32, contiguous slab
        # Single small per-step MXU matmul: bf16 operands, f32 accumulation.
        gh = jnp.dot(h.astype(wh.dtype), wh,
                     preferred_element_type=jnp.float32)           # (BT, 3*Hp)
        # Gate math in f32 on the VPU/EUP; lane-aligned static slices.
        r = jax.nn.sigmoid(gi[:, 0:Hp] + gh[:, 0:Hp])
        z = jax.nn.sigmoid(gi[:, Hp:2 * Hp] + gh[:, Hp:2 * Hp])
        n = jnp.tanh(gi[:, 2 * Hp:3 * Hp] + r * (gh[:, 2 * Hp:3 * Hp] + bh_n))
        return (1.0 - z) * n + z * h

    h = jax.lax.fori_loop(0, L, step, jnp.zeros((BT, Hp), jnp.float32), unroll=True)
    h_out_ref[...] = h                                             # single lane-dense store


# --------------------------------------------------------------------------- #
# Weight packing (loop-invariant fold, done once outside the kernel)
# --------------------------------------------------------------------------- #
def _pack_params(params, Hp, recurrent_dtype=jnp.bfloat16):
    hi = jax.lax.Precision.HIGHEST
    emb = params["emb"].astype(jnp.float32)          # (V, H)
    w_ih = params["w_ih"].astype(jnp.float32)        # (3H, H): [W_ir; W_iz; W_in]
    w_hh = params["w_hh"].astype(jnp.float32)        # (3H, H): [W_hr; W_hz; W_hn]
    b_ih = params["b_ih"].astype(jnp.float32)        # (3H,)
    b_hh = params["b_hh"].astype(jnp.float32)        # (3H,)
    V, H = emb.shape

    W_ir, W_iz, W_in = w_ih[0:H], w_ih[H:2 * H], w_ih[2 * H:3 * H]
    W_hr, W_hz, W_hn = w_hh[0:H], w_hh[H:2 * H], w_hh[2 * H:3 * H]
    b_ir, b_iz, b_in = b_ih[0:H], b_ih[H:2 * H], b_ih[2 * H:3 * H]
    b_hr, b_hz, b_hn = b_hh[0:H], b_hh[H:2 * H], b_hh[2 * H:3 * H]

    pad_c = lambda m: jnp.pad(m, ((0, 0), (0, Hp - H)))            # (rows,H)->(rows,Hp)
    pad_v = lambda v: jnp.pad(v, (0, Hp - H))                      # (H,)->(Hp,)
    pad_sq = lambda w: jnp.pad(w.T, ((0, Hp - H), (0, Hp - H)))    # (H,H)->(Hp,Hp), W^T

    # (V, 3*Hp) input-side gate table: embedding folded into W_ih, and every
    # bias that is NOT multiplied by r folded in too.  Kept in f32 so the
    # input-side gates match the reference exactly; pad lanes are exact zeros.
    gi_table = jnp.concatenate(
        [pad_c(jnp.dot(emb, W_ir.T, precision=hi) + b_ir + b_hr),
         pad_c(jnp.dot(emb, W_iz.T, precision=hi) + b_iz + b_hz),
         pad_c(jnp.dot(emb, W_in.T, precision=hi) + b_in)], axis=1)

    # (Hp, 3*Hp) recurrent weight (no zero gate blocks), bf16 for full-rate MXU.
    w_h = jnp.concatenate([pad_sq(W_hr), pad_sq(W_hz), pad_sq(W_hn)],
                          axis=1).astype(recurrent_dtype)
    b_hn_row = pad_v(b_hn)[None, :]                                # (1, Hp) f32
    return gi_table, w_h, b_hn_row


# --------------------------------------------------------------------------- #
# pallas_call builder + wrappers
# --------------------------------------------------------------------------- #
def _pick_block_b(B):
    # Largest batch block <= 128 that divides B and satisfies the (8,128) rule.
    # Tunable: sweep {32,64,128}; prefer block_b=B on v5e/v6e (single TC) and
    # B/block_b >= 2 on v7x so the parallel grid axis feeds both TensorCores.
    for cand in (128, 64, 32, 16, 8):
        if B % cand == 0:
            return cand
    return B  # tiny / odd batch: one block equal to the full dim


def _call_kernel(gi_all, w_h, b_hn, *, B, L, Hp, block_b, single_buffer_invariants):
    inv = {}
    if single_buffer_invariants:
        # Loop-invariant inputs (index_map always (0,0)): single-buffer them so
        # the default double-buffering does not hold 2x their bytes in VMEM.
        inv = dict(pipeline_mode=pl.Buffered(1))
    return pl.pallas_call(
        encoder_gru_kernel,
        out_shape=jax.ShapeDtypeStruct((B, Hp), jnp.float32),
        grid=(B // block_b,),
        in_specs=[
            pl.BlockSpec((L, block_b, 3 * Hp), lambda i: (0, i, 0)),
            pl.BlockSpec((Hp, 3 * Hp), lambda i: (0, 0), **inv),
            pl.BlockSpec((1, Hp), lambda i: (0, 0), **inv),
        ],
        out_specs=pl.BlockSpec((block_b, Hp), lambda i: (i, 0)),
        compiler_params=pltpu.CompilerParams(
            dimension_semantics=("parallel",)),      # batch blocks across TCs on v7x
    )(gi_all, w_h, b_hn)


def encoder_rnn_forward_batched(x, params, *, block_b=None,
                                recurrent_dtype=jnp.bfloat16):
    """x: (B, L) int token ids (B independent sequences). Returns (B, H) final hiddens."""
    x = jnp.asarray(x, jnp.int32)
    B, L = x.shape
    V, H = params["emb"].shape
    Hp = ((H + 127) // 128) * 128
    if block_b is None:
        block_b = _pick_block_b(B)
    assert B % block_b == 0, "batch must be a multiple of block_b"
    assert block_b == B or block_b % 8 == 0, "block_b must be a multiple of 8 (or == B)"

    gi_table, w_h, b_hn = _pack_params(params, Hp, recurrent_dtype)

    # Input-side projection hoisted out of the recurrence: one gather of
    # precomputed rows (outside the kernel), time-major so each step reads a
    # contiguous lane-dense (block_b, 3*Hp) slab.
    gi_all = jnp.transpose(gi_table[x], (1, 0, 2))                 # (L, B, 3*Hp) f32

    try:
        h = jax.block_until_ready(_call_kernel(
            gi_all, w_h, b_hn, B=B, L=L, Hp=Hp, block_b=block_b,
            single_buffer_invariants=True))
    except Exception:
        # pl.Buffered(1) not supported on this jax version -> default buffering.
        h = jax.block_until_ready(_call_kernel(
            gi_all, w_h, b_hn, B=B, L=L, Hp=Hp, block_b=block_b,
            single_buffer_invariants=False))

    return h[:, :H]


def encoder_rnn_forward(x, params):
    """Single-sequence path matching the torch module: x (L,) -> hidden (1, 1, H)."""
    h = encoder_rnn_forward_batched(jnp.asarray(x, jnp.int32)[None, :], params)
    return h[:, None, :]                                           # (1, 1, H)


# --------------------------------------------------------------------------- #
# Init + pure-JAX reference (mirrors torch nn.Embedding + nn.GRU semantics)
# --------------------------------------------------------------------------- #
def init_params(key, V, H):
    ks = jax.random.split(key, 5)
    s = 1.0 / jnp.sqrt(H)
    u = lambda k, shp: jax.random.uniform(k, shp, jnp.float32, -s, s)
    return {
        "emb":  jax.random.normal(ks[0], (V, H), jnp.float32),
        "w_ih": u(ks[1], (3 * H, H)),
        "w_hh": u(ks[2], (3 * H, H)),
        "b_ih": u(ks[3], (3 * H,)),
        "b_hh": u(ks[4], (3 * H,)),
    }


def reference_forward(x, params):
    """EncoderRNN.forward for one sequence; returns the final hidden (H,)."""
    V, H = params["emb"].shape
    hi = jax.lax.Precision.HIGHEST
    h = jnp.zeros((1, H), jnp.float32)
    for t in range(x.shape[0]):
        e = params["emb"][x[t]][None, :]
        gi = jnp.dot(e, params["w_ih"].T, precision=hi) + params["b_ih"]
        gh = jnp.dot(h, params["w_hh"].T, precision=hi) + params["b_hh"]
        r = jax.nn.sigmoid(gi[:, :H] + gh[:, :H])
        z = jax.nn.sigmoid(gi[:, H:2 * H] + gh[:, H:2 * H])
        n = jnp.tanh(gi[:, 2 * H:] + r * gh[:, 2 * H:])
        h = (1.0 - z) * n + z * h
    return h[0]


# --------------------------------------------------------------------------- #
if __name__ == "__main__":
    # input_size(vocab)=128, hidden=32, seq len=8; 16 independent sequences
    B, L, V, H = 16, 8, 128, 32

    key = jax.random.PRNGKey(0)
    k_tok, k_par = jax.random.split(key)
    x = jax.random.randint(k_tok, (B, L), 0, V, dtype=jnp.int32)
    params = init_params(k_par, V, H)

    ref = jnp.stack([reference_forward(x[b], params) for b in range(B)])

    # Default block_b (= B here -> one grid step, MXU M dim as full as B allows).
    h = jax.block_until_ready(encoder_rnn_forward_batched(x, params))
    assert h.shape == (B, H) and h.dtype == jnp.float32
    err = float(jnp.abs(h - ref).max())
    # bf16 recurrent matmul (f32 accumulation / gate math) vs HIGHEST-precision ref.
    assert jnp.allclose(h, ref, atol=1e-2, rtol=1e-2), err

    # Explicit smaller block -> grid of 2, exercises the parallel batch axis.
    h2 = jax.block_until_ready(encoder_rnn_forward_batched(x, params, block_b=8))
    assert jnp.allclose(h2, ref, atol=1e-2, rtol=1e-2), float(jnp.abs(h2 - ref).max())

    # Single-sequence path matching the torch module's (1, 1, H) return shape.
    h1 = jax.block_until_ready(encoder_rnn_forward(x[0], params))
    assert h1.shape == (1, 1, H)
    assert jnp.allclose(h1[0, 0], ref[0], atol=1e-2, rtol=1e-2)

    print("KERNEL_OK")
</pallas_src>

<mosaic_0001>
module attributes {stable_mosaic.version = 11 : i64} {
  func.func @encoder_gru_kernel(%arg0: i32, %arg1: memref<8x16x384xf32, #tpu.memory_space<vmem>>, %arg2: memref<128x384xbf16, #tpu.memory_space<vmem>>, %arg3: memref<1x128xf32, #tpu.memory_space<vmem>>, %arg4: memref<16x128xf32, #tpu.memory_space<vmem>>) attributes {dimension_semantics = [#tpu.dimension_semantics<parallel>], iteration_bounds = array<i64: 1>, scalar_prefetch = 0 : i64, scratch_operands = 0 : i64, tpu.core_type = #tpu.core_type<tc>, window_params = [{transform_indices = @transform_0, window_bounds = array<i64: 8, 16, 384>}, {pipeline_mode = #tpu.pipeline_mode<synchronous>, transform_indices = @transform_1, window_bounds = array<i64: 128, 384>}, {pipeline_mode = #tpu.pipeline_mode<synchronous>, transform_indices = @transform_2, window_bounds = array<i64: 1, 128>}, {transform_indices = @transform_3, window_bounds = array<i64: 16, 128>}]} {
    %c0 = arith.constant 0 : index
    %c0_0 = arith.constant 0 : index
    %0 = vector.load %arg2[%c0, %c0_0] : memref<128x384xbf16, #tpu.memory_space<vmem>>, vector<128x384xbf16>
    %c0_1 = arith.constant 0 : index
    %c0_2 = arith.constant 0 : index
    %1 = vector.load %arg3[%c0_1, %c0_2] : memref<1x128xf32, #tpu.memory_space<vmem>>, vector<1x128xf32>
    %2 = vector.shape_cast %1 : vector<1x128xf32> to vector<1x128xf32>
    %3 = vector.broadcast %2 : vector<1x128xf32> to vector<16x128xf32>
    %cst = arith.constant 0.000000e+00 : f32
    %4 = vector.broadcast %cst : f32 to vector<16x128xf32>
    %c0_i32 = arith.constant 0 : i32
    %5 = arith.index_cast %c0_i32 : i32 to index
    %c0_3 = arith.constant 0 : index
    %c0_4 = arith.constant 0 : index
    %6 = vector.load %arg1[%5, %c0_3, %c0_4] : memref<8x16x384xf32, #tpu.memory_space<vmem>>, vector<1x16x384xf32>
    %7 = vector.shape_cast %6 : vector<1x16x384xf32> to vector<16x384xf32>
    %8 = arith.truncf %4 : vector<16x128xf32> to vector<16x128xbf16>
    %cst_5 = arith.constant dense<0.000000e+00> : vector<16x384xf32>
    %9 = tpu.matmul %8, %0, %cst_5 {dimension_numbers = #tpu.dot_dimension_numbers<[1], [0], [0], [1], [0, 0, 1, 1], [], []>} : vector<16x128xbf16>, vector<128x384xbf16>, vector<16x384xf32> -> vector<16x384xf32>
    %10 = vector.extract_strided_slice %7 {offsets = [0, 0], sizes = [16, 128], strides = [1, 1]} : vector<16x384xf32> to vector<16x128xf32>
    %11 = vector.extract_strided_slice %9 {offsets = [0, 0], sizes = [16, 128], strides = [1, 1]} : vector<16x384xf32> to vector<16x128xf32>
    %12 = arith.addf %10, %11 : vector<16x128xf32>
    %13 = arith.negf %12 : vector<16x128xf32>
    %14 = math.exp %13 : vector<16x128xf32>
    %cst_6 = arith.constant 1.000000e+00 : f32
    %15 = vector.broadcast %cst_6 : f32 to vector<16x128xf32>
    %16 = arith.addf %15, %14 : vector<16x128xf32>
    %17 = arith.divf %15, %16 : vector<16x128xf32>
    %18 = vector.extract_strided_slice %7 {offsets = [0, 128], sizes = [16, 128], strides = [1, 1]} : vector<16x384xf32> to vector<16x128xf32>
    %19 = vector.extract_strided_slice %9 {offsets = [0, 128], sizes = [16, 128], strides = [1, 1]} : vector<16x384xf32> to vector<16x128xf32>
    %20 = arith.addf %18, %19 : vector<16x128xf32>
    %21 = arith.negf %20 : vector<16x128xf32>
    %22 = math.exp %21 : vector<16x128xf32>
    %cst_7 = arith.constant 1.000000e+00 : f32
    %23 = vector.broadcast %cst_7 : f32 to vector<16x128xf32>
    %24 = arith.addf %23, %22 : vector<16x128xf32>
    %25 = arith.divf %23, %24 : vector<16x128xf32>
    %26 = vector.extract_strided_slice %7 {offsets = [0, 256], sizes = [16, 128], strides = [1, 1]} : vector<16x384xf32> to vector<16x128xf32>
    %27 = vector.extract_strided_slice %9 {offsets = [0, 256], sizes = [16, 128], strides = [1, 1]} : vector<16x384xf32> to vector<16x128xf32>
    %28 = arith.addf %27, %3 : vector<16x128xf32>
    %29 = arith.mulf %17, %28 : vector<16x128xf32>
    %30 = arith.addf %26, %29 : vector<16x128xf32>
    %31 = math.tanh %30 : vector<16x128xf32>
    %cst_8 = arith.constant 1.000000e+00 : f32
    %32 = vector.broadcast %cst_8 : f32 to vector<16x128xf32>
    %33 = arith.subf %32, %25 : vector<16x128xf32>
    %34 = arith.mulf %33, %31 : vector<16x128xf32>
    %35 = arith.mulf %25, %4 : vector<16x128xf32>
    %36 = arith.addf %34, %35 : vector<16x128xf32>
    %c1_i32 = arith.constant 1 : i32
    %37 = arith.index_cast %c1_i32 : i32 to index
    %c0_9 = arith.constant 0 : index
    %c0_10 = arith.constant 0 : index
    %38 = vector.load %arg1[%37, %c0_9, %c0_10] : memref<8x16x384xf32, #tpu.memory_space<vmem>>, vector<1x16x384xf32>
    %39 = vector.shape_cast %38 : vector<1x16x384xf32> to vector<16x384xf32>
    %40 = arith.truncf %36 : vector<16x128xf32> to vector<16x128xbf16>
    %cst_11 = arith.constant dense<0.000000e+00> : vector<16x384xf32>
    %41 = tpu.matmul %40, %0, %cst_11 {dimension_numbers = #tpu.dot_dimension_numbers<[1], [0], [0], [1], [0, 0, 1, 1], [], []>} : vector<16x128xbf16>, vector<128x384xbf16>, vector<16x384xf32> -> vector<16x384xf32>
    %42 = vector.extract_strided_slice %39 {offsets = [0, 0], sizes = [16, 128], strides = [1, 1]} : vector<16x384xf32> to vector<16x128xf32>
    %43 = vector.extract_strided_slice %41 {offsets = [0, 0], sizes = [16, 128], strides = [1, 1]} : vector<16x384xf32> to vector<16x128xf32>
    %44 = arith.addf %42, %43 : vector<16x128xf32>
    %45 = arith.negf %44 : vector<16x128xf32>
    %46 = math.exp %45 : vector<16x128xf32>
    %cst_12 = arith.constant 1.000000e+00 : f32
    %47 = vector.broadcast %cst_12 : f32 to vector<16x128xf32>
    %48 = arith.addf %47, %46 : vector<16x128xf32>
    %49 = arith.divf %47, %48 : vector<16x128xf32>
    %50 = vector.extract_strided_slice %39 {offsets = [0, 128], sizes = [16, 128], strides = [1, 1]} : vector<16x384xf32> to vector<16x128xf32>
    %51 = vector.extract_strided_slice %41 {offsets = [0, 128], sizes = [16, 128], strides = [1, 1]} : vector<16x384xf32> to vector<16x128xf32>
    %52 = arith.addf %50, %51 : vector<16x128xf32>
    %53 = arith.negf %52 : vector<16x128xf32>
    %54 = math.exp %53 : vector<16x128xf32>
    %cst_13 = arith.constant 1.000000e+00 : f32
    %55 = vector.broadcast %cst_13 : f32 to vector<16x128xf32>
    %56 = arith.addf %55, %54 : vector<16x128xf32>
    %57 = arith.divf %55, %56 : vector<16x128xf32>
    %58 = vector.extract_strided_slice %39 {offsets = [0, 256], sizes = [16, 128], strides = [1, 1]} : vector<16x384xf32> to vector<16x128xf32>
    %59 = vector.extract_strided_slice %41 {offsets = [0, 256], sizes = [16, 128], strides = [1, 1]} : vector<16x384xf32> to vector<16x128xf32>
    %60 = arith.addf %59, %3 : vector<16x128xf32>
    %61 = arith.mulf %49, %60 : vector<16x128xf32>
    %62 = arith.addf %58, %61 : vector<16x128xf32>
    %63 = math.tanh %62 : vector<16x128xf32>
    %cst_14 = arith.constant 1.000000e+00 : f32
    %64 = vector.broadcast %cst_14 : f32 to vector<16x128xf32>
    %65 = arith.subf %64, %57 : vector<16x128xf32>
    %66 = arith.mulf %65, %63 : vector<16x128xf32>
    %67 = arith.mulf %57, %36 : vector<16x128xf32>
    %68 = arith.addf %66, %67 : vector<16x128xf32>
    %c2_i32 = arith.constant 2 : i32
    %69 = arith.index_cast %c2_i32 : i32 to index
    %c0_15 = arith.constant 0 : index
    %c0_16 = arith.constant 0 : index
    %70 = vector.load %arg1[%69, %c0_15, %c0_16] : memref<8x16x384xf32, #tpu.memory_space<vmem>>, vector<1x16x384xf32>
    %71 = vector.shape_cast %70 : vector<1x16x384xf32> to vector<16x384xf32>
    %72 = arith.truncf %68 : vector<16x128xf32> to vector<16x128xbf16>
    %cst_17 = arith.constant dense<0.000000e+00> : vector<16x384xf32>
    %73 = tpu.matmul %72, %0, %cst_17 {dimension_numbers = #tpu.dot_dimension_numbers<[1], [0], [0], [1], [0, 0, 1, 1], [], []>} : vector<16x128xbf16>, vector<128x384xbf16>, vector<16x384xf32> -> vector<16x384xf32>
    %74 = vector.extract_strided_slice %71 {offsets = [0, 0], sizes = [16, 128], strides = [1, 1]} : vector<16x384xf32> to vector<16x128xf32>
    %75 = vector.extract_strided_slice %73 {offsets = [0, 0], sizes = [16, 128], strides = [1, 1]} : vector<16x384xf32> to vector<16x128xf32>
    %76 = arith.addf %74, %75 : vector<16x128xf32>
    %77 = arith.negf %76 : vector<16x128xf32>
    %78 = math.exp %77 : vector<16x128xf32>
    %cst_18 = arith.constant 1.000000e+00 : f32
    %79 = vector.broadcast %cst_18 : f32 to vector<16x128xf32>
    %80 = arith.addf %79, %78 : vector<16x128xf32>
    %81 = arith.divf %79, %80 : vector<16x128xf32>
    %82 = vector.extract_strided_slice %71 {offsets = [0, 128], sizes = [16, 128], strides = [1, 1]} : vector<16x384xf32> to vector<16x128xf32>
    %83 = vector.extract_strided_slice %73 {offsets = [0, 128], sizes = [16, 128], strides = [1, 1]} : vector<16x384xf32> to vector<16x128xf32>
    %84 = arith.addf %82, %83 : vector<16x128xf32>
    %85 = arith.negf %84 : vector<16x128xf32>
    %86 = math.exp %85 : vector<16x128xf32>
    %cst_19 = arith.constant 1.000000e+00 : f32
    %87 = vector.broadcast %cst_19 : f32 to vector<16x128xf32>
    %88 = arith.addf %87, %86 : vector<16x128xf32>
    %89 = arith.divf %87, %88 : vector<16x128xf32>
    %90 = vector.extract_strided_slice %71 {offsets = [0, 256], sizes = [16, 128], strides = [1, 1]} : vector<16x384xf32> to vector<16x128xf32>
    %91 = vector.extract_strided_slice %73 {offsets = [0, 256], sizes = [16, 128], strides = [1, 1]} : vector<16x384xf32> to vector<16x128xf32>
    %92 = arith.addf %91, %3 : vector<16x128xf32>
    %93 = arith.mulf %81, %92 : vector<16x128xf32>
    %94 = arith.addf %90, %93 : vector<16x128xf32>
    %95 = math.tanh %94 : vector<16x128xf32>
    %cst_20 = arith.constant 1.000000e+00 : f32
    %96 = vector.broadcast %cst_20 : f32 to vector<16x128xf32>
    %97 = arith.subf %96, %89 : vector<16x128xf32>
    %98 = arith.mulf %97, %95 : vector<16x128xf32>
    %99 = arith.mulf %89, %68 : vector<16x128xf32>
    %100 = arith.addf %98, %99 : vector<16x128xf32>
    %c3_i32 = arith.constant 3 : i32
    %101 = arith.index_cast %c3_i32 : i32 to index
    %c0_21 = arith.constant 0 : index
    %c0_22 = arith.constant 0 : index
    %102 = vector.load %arg1[%101, %c0_21, %c0_22] : memref<8x16x384xf32, #tpu.memory_space<vmem>>, vector<1x16x384xf32>
    %103 = vector.shape_cast %102 : vector<1x16x384xf32> to vector<16x384xf32>
    %104 = arith.truncf %100 : vector<16x128xf32> to vector<16x128xbf16>
    %cst_23 = arith.constant dense<0.000000e+00> : vector<16x384xf32>
    %105 = tpu.matmul %104, %0, %cst_23 {dimension_numbers = #tpu.dot_dimension_numbers<[1], [0], [0], [1], [0, 0, 1, 1], [], []>} : vector<16x128xbf16>, vector<128x384xbf16>, vector<16x384xf32> -> vector<16x384xf32>
    %106 = vector.extract_strided_slice %103 {offsets = [0, 0], sizes = [16, 128], strides = [1, 1]} : vector<16x384xf32> to vector<16x128xf32>
    %107 = vector.extract_strided_slice %105 {offsets = [0, 0], sizes = [16, 128], strides = [1, 1]} : vector<16x384xf32> to vector<16x128xf32>
    %108 = arith.addf %106, %107 : vector<16x128xf32>
    %109 = arith.negf %108 : vector<16x128xf32>
    %110 = math.exp %109 : vector<16x128xf32>
    %cst_24 = arith.constant 1.000000e+00 : f32
    %111 = vector.broadcast %cst_24 : f32 to vector<16x128xf32>
    %112 = arith.addf %111, %110 : vector<16x128xf32>
    %113 = arith.divf %111, %112 : vector<16x128xf32>
    %114 = vector.extract_strided_slice %103 {offsets = [0, 128], sizes = [16, 128], strides = [1, 1]} : vector<16x384xf32> to vector<16x128xf32>
    %115 = vector.extract_strided_slice %105 {offsets = [0, 128], sizes = [16, 128], strides = [1, 1]} : vector<16x384xf32> to vector<16x128xf32>
    %116 = arith.addf %114, %115 : vector<16x128xf32>
    %117 = arith.negf %116 : vector<16x128xf32>
    %118 = math.exp %117 : vector<16x128xf32>
    %cst_25 = arith.constant 1.000000e+00 : f32
    %119 = vector.broadcast %cst_25 : f32 to vector<16x128xf32>
    %120 = arith.addf %119, %118 : vector<16x128xf32>
    %121 = arith.divf %119, %120 : vector<16x128xf32>
    %122 = vector.extract_strided_slice %103 {offsets = [0, 256], sizes = [16, 128], strides = [1, 1]} : vector<16x384xf32> to vector<16x128xf32>
    %123 = vector.extract_strided_slice %105 {offsets = [0, 256], sizes = [16, 128], strides = [1, 1]} : vector<16x384xf32> to vector<16x128xf32>
    %124 = arith.addf %123, %3 : vector<16x128xf32>
    %125 = arith.mulf %113, %124 : vector<16x128xf32>
    %126 = arith.addf %122, %125 : vector<16x128xf32>
    %127 = math.tanh %126 : vector<16x128xf32>
    %cst_26 = arith.constant 1.000000e+00 : f32
    %128 = vector.broadcast %cst_26 : f32 to vector<16x128xf32>
    %129 = arith.subf %128, %121 : vector<16x128xf32>
    %130 = arith.mulf %129, %127 : vector<16x128xf32>
    %131 = arith.mulf %121, %100 : vector<16x128xf32>
    %132 = arith.addf %130, %131 : vector<16x128xf32>
    %c4_i32 = arith.constant 4 : i32
    %133 = arith.index_cast %c4_i32 : i32 to index
    %c0_27 = arith.constant 0 : index
    %c0_28 = arith.constant 0 : index
    %134 = vector.load %arg1[%133, %c0_27, %c0_28] : memref<8x16x384xf32, #tpu.memory_space<vmem>>, vector<1x16x384xf32>
    %135 = vector.shape_cast %134 : vector<1x16x384xf32> to vector<16x384xf32>
    %136 = arith.truncf %132 : vector<16x128xf32> to vector<16x128xbf16>
    %cst_29 = arith.constant dense<0.000000e+00> : vector<16x384xf32>
    %137 = tpu.matmul %136, %0, %cst_29 {dimension_numbers = #tpu.dot_dimension_numbers<[1], [0], [0], [1], [0, 0, 1, 1], [], []>} : vector<16x128xbf16>, vector<128x384xbf16>, vector<16x384xf32> -> vector<16x384xf32>
    %138 = vector.extract_strided_slice %135 {offsets = [0, 0], sizes = [16, 128], strides = [1, 1]} : vector<16x384xf32> to vector<16x128xf32>
    %139 = vector.extract_strided_slice %137 {offsets = [0, 0], sizes = [16, 128], strides = [1, 1]} : vector<16x384xf32> to vector<16x128xf32>
    %140 = arith.addf %138, %139 : vector<16x128xf32>
    %141 = arith.negf %140 : vector<16x128xf32>
    %142 = math.exp %141 : vector<16x128xf32>
    %cst_30 = arith.constant 1.000000e+00 : f32
    %143 = vector.broadcast %cst_30 : f32 to vector<16x128xf32>
    %144 = arith.addf %143, %142 : vector<16x128xf32>
    %145 = arith.divf %143, %144 : vector<16x128xf32>
    %146 = vector.extract_strided_slice %135 {offsets = [0, 128], sizes = [16, 128], strides = [1, 1]} : vector<16x384xf32> to vector<16x128xf32>
    %147 = vector.extract_strided_slice %137 {offsets = [0, 128], sizes = [16, 128], strides = [1, 1]} : vector<16x384xf32> to vector<16x128xf32>
    %148 = arith.addf %146, %147 : vector<16x128xf32>
    %149 = arith.negf %148 : vector<16x128xf32>
    %150 = math.exp %149 : vector<16x128xf32>
    %cst_31 = arith.constant 1.000000e+00 : f32
    %151 = vector.broadcast %cst_31 : f32 to vector<16x128xf32>
    %152 = arith.addf %151, %150 : vector<16x128xf32>
    %153 = arith.divf %151, %152 : vector<16x128xf32>
    %154 = vector.extract_strided_slice %135 {offsets = [0, 256], sizes = [16, 128], strides = [1, 1]} : vector<16x384xf32> to vector<16x128xf32>
    %155 = vector.extract_strided_slice %137 {offsets = [0, 256], sizes = [16, 128], strides = [1, 1]} : vector<16x384xf32> to vector<16x128xf32>
    %156 = arith.addf %155, %3 : vector<16x128xf32>
    %157 = arith.mulf %145, %156 : vector<16x128xf32>
    %158 = arith.addf %154, %157 : vector<16x128xf32>
    %159 = math.tanh %158 : vector<16x128xf32>
    %cst_32 = arith.constant 1.000000e+00 : f32
    %160 = vector.broadcast %cst_32 : f32 to vector<16x128xf32>
    %161 = arith.subf %160, %153 : vector<16x128xf32>
    %162 = arith.mulf %161, %159 : vector<16x128xf32>
    %163 = arith.mulf %153, %132 : vector<16x128xf32>
    %164 = arith.addf %162, %163 : vector<16x128xf32>
    %c5_i32 = arith.constant 5 : i32
    %165 = arith.index_cast %c5_i32 : i32 to index
    %c0_33 = arith.constant 0 : index
    %c0_34 = arith.constant 0 : index
    %166 = vector.load %arg1[%165, %c0_33, %c0_34] : memref<8x16x384xf32, #tpu.memory_space<vmem>>, vector<1x16x384xf32>
    %167 = vector.shape_cast %166 : vector<1x16x384xf32> to vector<16x384xf32>
    %168 = arith.truncf %164 : vector<16x128xf32> to vector<16x128xbf16>
    %cst_35 = arith.constant dense<0.000000e+00> : vector<16x384xf32>
    %169 = tpu.matmul %168, %0, %cst_35 {dimension_numbers = #tpu.dot_dimension_numbers<[1], [0], [0], [1], [0, 0, 1, 1], [], []>} : vector<16x128xbf16>, vector<128x384xbf16>, vector<16x384xf32> -> vector<16x384xf32>
    %170 = vector.extract_strided_slice %167 {offsets = [0, 0], sizes = [16, 128], strides = [1, 1]} : vector<16x384xf32> to vector<16x128xf32>
    %171 = vector.extract_strided_slice %169 {offsets = [0, 0], sizes = [16, 128], strides = [1, 1]} : vector<16x384xf32> to vector<16x128xf32>
    %172 = arith.addf %170, %171 : vector<16x128xf32>
    %173 = arith.negf %172 : vector<16x128xf32>
    %174 = math.exp %173 : vector<16x128xf32>
    %cst_36 = arith.constant 1.000000e+00 : f32
    %175 = vector.broadcast %cst_36 : f32 to vector<16x128xf32>
    %176 = arith.addf %175, %174 : vector<16x128xf32>
    %177 = arith.divf %175, %176 : vector<16x128xf32>
    %178 = vector.extract_strided_slice %167 {offsets = [0, 128], sizes = [16, 128], strides = [1, 1]} : vector<16x384xf32> to vector<16x128xf32>
    %179 = vector.extract_strided_slice %169 {offsets = [0, 128], sizes = [16, 128], strides = [1, 1]} : vector<16x384xf32> to vector<16x128xf32>
    %180 = arith.addf %178, %179 : vector<16x128xf32>
    %181 = arith.negf %180 : vector<16x128xf32>
    %182 = math.exp %181 : vector<16x128xf32>
    %cst_37 = arith.constant 1.000000e+00 : f32
    %183 = vector.broadcast %cst_37 : f32 to vector<16x128xf32>
    %184 = arith.addf %183, %182 : vector<16x128xf32>
    %185 = arith.divf %183, %184 : vector<16x128xf32>
    %186 = vector.extract_strided_slice %167 {offsets = [0, 256], sizes = [16, 128], strides = [1, 1]} : vector<16x384xf32> to vector<16x128xf32>
    %187 = vector.extract_strided_slice %169 {offsets = [0, 256], sizes = [16, 128], strides = [1, 1]} : vector<16x384xf32> to vector<16x128xf32>
    %188 = arith.addf %187, %3 : vector<16x128xf32>
    %189 = arith.mulf %177, %188 : vector<16x128xf32>
    %190 = arith.addf %186, %189 : vector<16x128xf32>
    %191 = math.tanh %190 : vector<16x128xf32>
    %cst_38 = arith.constant 1.000000e+00 : f32
    %192 = vector.broadcast %cst_38 : f32 to vector<16x128xf32>
    %193 = arith.subf %192, %185 : vector<16x128xf32>
    %194 = arith.mulf %193, %191 : vector<16x128xf32>
    %195 = arith.mulf %185, %164 : vector<16x128xf32>
    %196 = arith.addf %194, %195 : vector<16x128xf32>
    %c6_i32 = arith.constant 6 : i32
    %197 = arith.index_cast %c6_i32 : i32 to index
    %c0_39 = arith.constant 0 : index
    %c0_40 = arith.constant 0 : index
    %198 = vector.load %arg1[%197, %c0_39, %c0_40] : memref<8x16x384xf32, #tpu.memory_space<vmem>>, vector<1x16x384xf32>
    %199 = vector.shape_cast %198 : vector<1x16x384xf32> to vector<16x384xf32>
    %200 = arith.truncf %196 : vector<16x128xf32> to vector<16x128xbf16>
    %cst_41 = arith.constant dense<0.000000e+00> : vector<16x384xf32>
    %201 = tpu.matmul %200, %0, %cst_41 {dimension_numbers = #tpu.dot_dimension_numbers<[1], [0], [0], [1], [0, 0, 1, 1], [], []>} : vector<16x128xbf16>, vector<128x384xbf16>, vector<16x384xf32> -> vector<16x384xf32>
    %202 = vector.extract_strided_slice %199 {offsets = [0, 0], sizes = [16, 128], strides = [1, 1]} : vector<16x384xf32> to vector<16x128xf32>
    %203 = vector.extract_strided_slice %201 {offsets = [0, 0], sizes = [16, 128], strides = [1, 1]} : vector<16x384xf32> to vector<16x128xf32>
    %204 = arith.addf %202, %203 : vector<16x128xf32>
    %205 = arith.negf %204 : vector<16x128xf32>
    %206 = math.exp %205 : vector<16x128xf32>
    %cst_42 = arith.constant 1.000000e+00 : f32
    %207 = vector.broadcast %cst_42 : f32 to vector<16x128xf32>
    %208 = arith.addf %207, %206 : vector<16x128xf32>
    %209 = arith.divf %207, %208 : vector<16x128xf32>
    %210 = vector.extract_strided_slice %199 {offsets = [0, 128], sizes = [16, 128], strides = [1, 1]} : vector<16x384xf32> to vector<16x128xf32>
    %211 = vector.extract_strided_slice %201 {offsets = [0, 128], sizes = [16, 128], strides = [1, 1]} : vector<16x384xf32> to vector<16x128xf32>
    %212 = arith.addf %210, %211 : vector<16x128xf32>
    %213 = arith.negf %212 : vector<16x128xf32>
    %214 = math.exp %213 : vector<16x128xf32>
    %cst_43 = arith.constant 1.000000e+00 : f32
    %215 = vector.broadcast %cst_43 : f32 to vector<16x128xf32>
    %216 = arith.addf %215, %214 : vector<16x128xf32>
    %217 = arith.divf %215, %216 : vector<16x128xf32>
    %218 = vector.extract_strided_slice %199 {offsets = [0, 256], sizes = [16, 128], strides = [1, 1]} : vector<16x384xf32> to vector<16x128xf32>
    %219 = vector.extract_strided_slice %201 {offsets = [0, 256], sizes = [16, 128], strides = [1, 1]} : vector<16x384xf32> to vector<16x128xf32>
    %220 = arith.addf %219, %3 : vector<16x128xf32>
    %221 = arith.mulf %209, %220 : vector<16x128xf32>
    %222 = arith.addf %218, %221 : vector<16x128xf32>
    %223 = math.tanh %222 : vector<16x128xf32>
    %cst_44 = arith.constant 1.000000e+00 : f32
    %224 = vector.broadcast %cst_44 : f32 to vector<16x128xf32>
    %225 = arith.subf %224, %217 : vector<16x128xf32>
    %226 = arith.mulf %225, %223 : vector<16x128xf32>
    %227 = arith.mulf %217, %196 : vector<16x128xf32>
    %228 = arith.addf %226, %227 : vector<16x128xf32>
    %c7_i32 = arith.constant 7 : i32
    %229 = arith.index_cast %c7_i32 : i32 to index
    %c0_45 = arith.constant 0 : index
    %c0_46 = arith.constant 0 : index
    %230 = vector.load %arg1[%229, %c0_45, %c0_46] : memref<8x16x384xf32, #tpu.memory_space<vmem>>, vector<1x16x384xf32>
    %231 = vector.shape_cast %230 : vector<1x16x384xf32> to vector<16x384xf32>
    %232 = arith.truncf %228 : vector<16x128xf32> to vector<16x128xbf16>
    %cst_47 = arith.constant dense<0.000000e+00> : vector<16x384xf32>
    %233 = tpu.matmul %232, %0, %cst_47 {dimension_numbers = #tpu.dot_dimension_numbers<[1], [0], [0], [1], [0, 0, 1, 1], [], []>} : vector<16x128xbf16>, vector<128x384xbf16>, vector<16x384xf32> -> vector<16x384xf32>
    %234 = vector.extract_strided_slice %231 {offsets = [0, 0], sizes = [16, 128], strides = [1, 1]} : vector<16x384xf32> to vector<16x128xf32>
    %235 = vector.extract_strided_slice %233 {offsets = [0, 0], sizes = [16, 128], strides = [1, 1]} : vector<16x384xf32> to vector<16x128xf32>
    %236 = arith.addf %234, %235 : vector<16x128xf32>
    %237 = arith.negf %236 : vector<16x128xf32>
    %238 = math.exp %237 : vector<16x128xf32>
    %cst_48 = arith.constant 1.000000e+00 : f32
    %239 = vector.broadcast %cst_48 : f32 to vector<16x128xf32>
    %240 = arith.addf %239, %238 : vector<16x128xf32>
    %241 = arith.divf %239, %240 : vector<16x128xf32>
    %242 = vector.extract_strided_slice %231 {offsets = [0, 128], sizes = [16, 128], strides = [1, 1]} : vector<16x384xf32> to vector<16x128xf32>
    %243 = vector.extract_strided_slice %233 {offsets = [0, 128], sizes = [16, 128], strides = [1, 1]} : vector<16x384xf32> to vector<16x128xf32>
    %244 = arith.addf %242, %243 : vector<16x128xf32>
    %245 = arith.negf %244 : vector<16x128xf32>
    %246 = math.exp %245 : vector<16x128xf32>
    %cst_49 = arith.constant 1.000000e+00 : f32
    %247 = vector.broadcast %cst_49 : f32 to vector<16x128xf32>
    %248 = arith.addf %247, %246 : vector<16x128xf32>
    %249 = arith.divf %247, %248 : vector<16x128xf32>
    %250 = vector.extract_strided_slice %231 {offsets = [0, 256], sizes = [16, 128], strides = [1, 1]} : vector<16x384xf32> to vector<16x128xf32>
    %251 = vector.extract_strided_slice %233 {offsets = [0, 256], sizes = [16, 128], strides = [1, 1]} : vector<16x384xf32> to vector<16x128xf32>
    %252 = arith.addf %251, %3 : vector<16x128xf32>
    %253 = arith.mulf %241, %252 : vector<16x128xf32>
    %254 = arith.addf %250, %253 : vector<16x128xf32>
    %255 = math.tanh %254 : vector<16x128xf32>
    %cst_50 = arith.constant 1.000000e+00 : f32
    %256 = vector.broadcast %cst_50 : f32 to vector<16x128xf32>
    %257 = arith.subf %256, %249 : vector<16x128xf32>
    %258 = arith.mulf %257, %255 : vector<16x128xf32>
    %259 = arith.mulf %249, %228 : vector<16x128xf32>
    %260 = arith.addf %258, %259 : vector<16x128xf32>
    %c8_i32 = arith.constant 8 : i32
    %c0_51 = arith.constant 0 : index
    %c0_52 = arith.constant 0 : index
    %261 = vector.load %arg4[%c0_51, %c0_52] : memref<16x128xf32, #tpu.memory_space<vmem>>, vector<16x128xf32>
    tpu.vector_store %arg4[%c0_51, %c0_52], %260 {strides = array<i32>} : memref<16x128xf32, #tpu.memory_space<vmem>>, vector<16x128xf32>,
    return
  }
  func.func @transform_0(%arg0: i32) -> (i32, i32, i32) {
    %c0_i32 = arith.constant 0 : i32
    %c0_i32_0 = arith.constant 0 : i32
    %c0_i32_1 = arith.constant 0 : i32
    return %c0_i32, %arg0, %c0_i32_0 : i32, i32, i32
  }
  func.func @transform_1(%arg0: i32) -> (i32, i32) {
    %c0_i32 = arith.constant 0 : i32
    %c0_i32_0 = arith.constant 0 : i32
    %c0_i32_1 = arith.constant 0 : i32
    return %c0_i32, %c0_i32_0 : i32, i32
  }
  func.func @transform_2(%arg0: i32) -> (i32, i32) {
    %c0_i32 = arith.constant 0 : i32
    %c0_i32_0 = arith.constant 0 : i32
    %c0_i32_1 = arith.constant 0 : i32
    return %c0_i32, %c0_i32_0 : i32, i32
  }
  func.func @transform_3(%arg0: i32) -> (i32, i32) {
    %c0_i32 = arith.constant 0 : i32
    %c0_i32_0 = arith.constant 0 : i32
    return %arg0, %c0_i32 : i32, i32
  }
}

module attributes {stable_mosaic.version = 11 : i64} {
  func.func @encoder_gru_kernel(%arg0: i32, %arg1: memref<8x16x384xf32, #tpu.memory_space<vmem>>, %arg2: memref<128x384xbf16, #tpu.memory_space<vmem>>, %arg3: memref<1x128xf32, #tpu.memory_space<vmem>>, %arg4: memref<16x128xf32, #tpu.memory_space<vmem>>) attributes {dimension_semantics = [#tpu.dimension_semantics<parallel>], iteration_bounds = array<i64: 1>, scalar_prefetch = 0 : i64, scratch_operands = 0 : i64, tpu.core_type = #tpu.core_type<tc>, window_params = [{transform_indices = @transform_0, window_bounds = array<i64: 8, 16, 384>}, {pipeline_mode = #tpu.pipeline_mode<synchronous>, transform_indices = @transform_1, window_bounds = array<i64: 128, 384>}, {pipeline_mode = #tpu.pipeline_mode<synchronous>, transform_indices = @transform_2, window_bounds = array<i64: 1, 128>}, {transform_indices = @transform_3, window_bounds = array<i64: 16, 128>}]} {
    %c0 = arith.constant 0 : index
    %c0_0 = arith.constant 0 : index
    %0 = vector.load %arg2[%c0, %c0_0] : memref<128x384xbf16, #tpu.memory_space<vmem>>, vector<128x384xbf16>
    %c0_1 = arith.constant 0 : index
    %c0_2 = arith.constant 0 : index
    %1 = vector.load %arg3[%c0_1, %c0_2] : memref<1x128xf32, #tpu.memory_space<vmem>>, vector<1x128xf32>
    %2 = vector.shape_cast %1 : vector<1x128xf32> to vector<1x128xf32>
    %3 = vector.broadcast %2 : vector<1x128xf32> to vector<16x128xf32>
    %cst = arith.constant 0.000000e+00 : f32
    %4 = vector.broadcast %cst : f32 to vector<16x128xf32>
    %c0_i32 = arith.constant 0 : i32
    %5 = arith.index_cast %c0_i32 : i32 to index
    %c0_3 = arith.constant 0 : index
    %c0_4 = arith.constant 0 : index
    %6 = vector.load %arg1[%5, %c0_3, %c0_4] : memref<8x16x384xf32, #tpu.memory_space<vmem>>, vector<1x16x384xf32>
    %7 = vector.shape_cast %6 : vector<1x16x384xf32> to vector<16x384xf32>
    %8 = arith.truncf %4 : vector<16x128xf32> to vector<16x128xbf16>
    %cst_5 = arith.constant dense<0.000000e+00> : vector<16x384xf32>
    %9 = tpu.matmul %8, %0, %cst_5 {dimension_numbers = #tpu.dot_dimension_numbers<[1], [0], [0], [1], [0, 0, 1, 1], [], []>} : vector<16x128xbf16>, vector<128x384xbf16>, vector<16x384xf32> -> vector<16x384xf32>
    %10 = vector.extract_strided_slice %7 {offsets = [0, 0], sizes = [16, 128], strides = [1, 1]} : vector<16x384xf32> to vector<16x128xf32>
    %11 = vector.extract_strided_slice %9 {offsets = [0, 0], sizes = [16, 128], strides = [1, 1]} : vector<16x384xf32> to vector<16x128xf32>
    %12 = arith.addf %10, %11 : vector<16x128xf32>
    %13 = arith.negf %12 : vector<16x128xf32>
    %14 = math.exp %13 : vector<16x128xf32>
    %cst_6 = arith.constant 1.000000e+00 : f32
    %15 = vector.broadcast %cst_6 : f32 to vector<16x128xf32>
    %16 = arith.addf %15, %14 : vector<16x128xf32>
    %17 = arith.divf %15, %16 : vector<16x128xf32>
    %18 = vector.extract_strided_slice %7 {offsets = [0, 128], sizes = [16, 128], strides = [1, 1]} : vector<16x384xf32> to vector<16x128xf32>
    %19 = vector.extract_strided_slice %9 {offsets = [0, 128], sizes = [16, 128], strides = [1, 1]} : vector<16x384xf32> to vector<16x128xf32>
    %20 = arith.addf %18, %19 : vector<16x128xf32>
    %21 = arith.negf %20 : vector<16x128xf32>
    %22 = math.exp %21 : vector<16x128xf32>
    %cst_7 = arith.constant 1.000000e+00 : f32
    %23 = vector.broadcast %cst_7 : f32 to vector<16x128xf32>
    %24 = arith.addf %23, %22 : vector<16x128xf32>
    %25 = arith.divf %23, %24 : vector<16x128xf32>
    %26 = vector.extract_strided_slice %7 {offsets = [0, 256], sizes = [16, 128], strides = [1, 1]} : vector<16x384xf32> to vector<16x128xf32>
    %27 = vector.extract_strided_slice %9 {offsets = [0, 256], sizes = [16, 128], strides = [1, 1]} : vector<16x384xf32> to vector<16x128xf32>
    %28 = arith.addf %27, %3 : vector<16x128xf32>
    %29 = arith.mulf %17, %28 : vector<16x128xf32>
    %30 = arith.addf %26, %29 : vector<16x128xf32>
    %31 = math.tanh %30 : vector<16x128xf32>
    %cst_8 = arith.constant 1.000000e+00 : f32
    %32 = vector.broadcast %cst_8 : f32 to vector<16x128xf32>
    %33 = arith.subf %32, %25 : vector<16x128xf32>
    %34 = arith.mulf %33, %31 : vector<16x128xf32>
    %35 = arith.mulf %25, %4 : vector<16x128xf32>
    %36 = arith.addf %34, %35 : vector<16x128xf32>
    %c1_i32 = arith.constant 1 : i32
    %37 = arith.index_cast %c1_i32 : i32 to index
    %c0_9 = arith.constant 0 : index
    %c0_10 = arith.constant 0 : index
    %38 = vector.load %arg1[%37, %c0_9, %c0_10] : memref<8x16x384xf32, #tpu.memory_space<vmem>>, vector<1x16x384xf32>
    %39 = vector.shape_cast %38 : vector<1x16x384xf32> to vector<16x384xf32>
    %40 = arith.truncf %36 : vector<16x128xf32> to vector<16x128xbf16>
    %cst_11 = arith.constant dense<0.000000e+00> : vector<16x384xf32>
    %41 = tpu.matmul %40, %0, %cst_11 {dimension_numbers = #tpu.dot_dimension_numbers<[1], [0], [0], [1], [0, 0, 1, 1], [], []>} : vector<16x128xbf16>, vector<128x384xbf16>, vector<16x384xf32> -> vector<16x384xf32>
    %42 = vector.extract_strided_slice %39 {offsets = [0, 0], sizes = [16, 128], strides = [1, 1]} : vector<16x384xf32> to vector<16x128xf32>
    %43 = vector.extract_strided_slice %41 {offsets = [0, 0], sizes = [16, 128], strides = [1, 1]} : vector<16x384xf32> to vector<16x128xf32>
    %44 = arith.addf %42, %43 : vector<16x128xf32>
    %45 = arith.negf %44 : vector<16x128xf32>
    %46 = math.exp %45 : vector<16x128xf32>
    %cst_12 = arith.constant 1.000000e+00 : f32
    %47 = vector.broadcast %cst_12 : f32 to vector<16x128xf32>
    %48 = arith.addf %47, %46 : vector<16x128xf32>
    %49 = arith.divf %47, %48 : vector<16x128xf32>
    %50 = vector.extract_strided_slice %39 {offsets = [0, 128], sizes = [16, 128], strides = [1, 1]} : vector<16x384xf32> to vector<16x128xf32>
    %51 = vector.extract_strided_slice %41 {offsets = [0, 128], sizes = [16, 128], strides = [1, 1]} : vector<16x384xf32> to vector<16x128xf32>
    %52 = arith.addf %50, %51 : vector<16x128xf32>
    %53 = arith.negf %52 : vector<16x128xf32>
    %54 = math.exp %53 : vector<16x128xf32>
    %cst_13 = arith.constant 1.000000e+00 : f32
    %55 = vector.broadcast %cst_13 : f32 to vector<16x128xf32>
    %56 = arith.addf %55, %54 : vector<16x128xf32>
    %57 = arith.divf %55, %56 : vector<16x128xf32>
    %58 = vector.extract_strided_slice %39 {offsets = [0, 256], sizes = [16, 128], strides = [1, 1]} : vector<16x384xf32> to vector<16x128xf32>
    %59 = vector.extract_strided_slice %41 {offsets = [0, 256], sizes = [16, 128], strides = [1, 1]} : vector<16x384xf32> to vector<16x128xf32>
    %60 = arith.addf %59, %3 : vector<16x128xf32>
    %61 = arith.mulf %49, %60 : vector<16x128xf32>
    %62 = arith.addf %58, %61 : vector<16x128xf32>
    %63 = math.tanh %62 : vector<16x128xf32>
    %cst_14 = arith.constant 1.000000e+00 : f32
    %64 = vector.broadcast %cst_14 : f32 to vector<16x128xf32>
    %65 = arith.subf %64, %57 : vector<16x128xf32>
    %66 = arith.mulf %65, %63 : vector<16x128xf32>
    %67 = arith.mulf %57, %36 : vector<16x128xf32>
    %68 = arith.addf %66, %67 : vector<16x128xf32>
    %c2_i32 = arith.constant 2 : i32
    %69 = arith.index_cast %c2_i32 : i32 to index
    %c0_15 = arith.constant 0 : index
    %c0_16 = arith.constant 0 : index
    %70 = vector.load %arg1[%69, %c0_15, %c0_16] : memref<8x16x384xf32, #tpu.memory_space<vmem>>, vector<1x16x384xf32>
    %71 = vector.shape_cast %70 : vector<1x16x384xf32> to vector<16x384xf32>
    %72 = arith.truncf %68 : vector<16x128xf32> to vector<16x128xbf16>
    %cst_17 = arith.constant dense<0.000000e+00> : vector<16x384xf32>
    %73 = tpu.matmul %72, %0, %cst_17 {dimension_numbers = #tpu.dot_dimension_numbers<[1], [0], [0], [1], [0, 0, 1, 1], [], []>} : vector<16x128xbf16>, vector<128x384xbf16>, vector<16x384xf32> -> vector<16x384xf32>
    %74 = vector.extract_strided_slice %71 {offsets = [0, 0], sizes = [16, 128], strides = [1, 1]} : vector<16x384xf32> to vector<16x128xf32>
    %75 = vector.extract_strided_slice %73 {offsets = [0, 0], sizes = [16, 128], strides = [1, 1]} : vector<16x384xf32> to vector<16x128xf32>
    %76 = arith.addf %74, %75 : vector<16x128xf32>
    %77 = arith.negf %76 : vector<16x128xf32>
    %78 = math.exp %77 : vector<16x128xf32>
    %cst_18 = arith.constant 1.000000e+00 : f32
    %79 = vector.broadcast %cst_18 : f32 to vector<16x128xf32>
    %80 = arith.addf %79, %78 : vector<16x128xf32>
    %81 = arith.divf %79, %80 : vector<16x128xf32>
    %82 = vector.extract_strided_slice %71 {offsets = [0, 128], sizes = [16, 128], strides = [1, 1]} : vector<16x384xf32> to vector<16x128xf32>
    %83 = vector.extract_strided_slice %73 {offsets = [0, 128], sizes = [16, 128], strides = [1, 1]} : vector<16x384xf32> to vector<16x128xf32>
    %84 = arith.addf %82, %83 : vector<16x128xf32>
    %85 = arith.negf %84 : vector<16x128xf32>
    %86 = math.exp %85 : vector<16x128xf32>
    %cst_19 = arith.constant 1.000000e+00 : f32
    %87 = vector.broadcast %cst_19 : f32 to vector<16x128xf32>
    %88 = arith.addf %87, %86 : vector<16x128xf32>
    %89 = arith.divf %87, %88 : vector<16x128xf32>
    %90 = vector.extract_strided_slice %71 {offsets = [0, 256], sizes = [16, 128], strides = [1, 1]} : vector<16x384xf32> to vector<16x128xf32>
    %91 = vector.extract_strided_slice %73 {offsets = [0, 256], sizes = [16, 128], strides = [1, 1]} : vector<16x384xf32> to vector<16x128xf32>
    %92 = arith.addf %91, %3 : vector<16x128xf32>
    %93 = arith.mulf %81, %92 : vector<16x128xf32>
    %94 = arith.addf %90, %93 : vector<16x128xf32>
    %95 = math.tanh %94 : vector<16x128xf32>
    %cst_20 = arith.constant 1.000000e+00 : f32
    %96 = vector.broadcast %cst_20 : f32 to vector<16x128xf32>
    %97 = arith.subf %96, %89 : vector<16x128xf32>
    %98 = arith.mulf %97, %95 : vector<16x128xf32>
    %99 = arith.mulf %89, %68 : vector<16x128xf32>
    %100 = arith.addf %98, %99 : vector<16x128xf32>
    %c3_i32 = arith.constant 3 : i32
    %101 = arith.index_cast %c3_i32 : i32 to index
    %c0_21 = arith.constant 0 : index
    %c0_22 = arith.constant 0 : index
    %102 = vector.load %arg1[%101, %c0_21, %c0_22] : memref<8x16x384xf32, #tpu.memory_space<vmem>>, vector<1x16x384xf32>
    %103 = vector.shape_cast %102 : vector<1x16x384xf32> to vector<16x384xf32>
    %104 = arith.truncf %100 : vector<16x128xf32> to vector<16x128xbf16>
    %cst_23 = arith.constant dense<0.000000e+00> : vector<16x384xf32>
    %105 = tpu.matmul %104, %0, %cst_23 {dimension_numbers = #tpu.dot_dimension_numbers<[1], [0], [0], [1], [0, 0, 1, 1], [], []>} : vector<16x128xbf16>, vector<128x384xbf16>, vector<16x384xf32> -> vector<16x384xf32>
    %106 = vector.extract_strided_slice %103 {offsets = [0, 0], sizes = [16, 128], strides = [1, 1]} : vector<16x384xf32> to vector<16x128xf32>
    %107 = vector.extract_strided_slice %105 {offsets = [0, 0], sizes = [16, 128], strides = [1, 1]} : vector<16x384xf32> to vector<16x128xf32>
    %108 = arith.addf %106, %107 : vector<16x128xf32>
    %109 = arith.negf %108 : vector<16x128xf32>
    %110 = math.exp %109 : vector<16x128xf32>
    %cst_24 = arith.constant 1.000000e+00 : f32
    %111 = vector.broadcast %cst_24 : f32 to vector<16x128xf32>
    %112 = arith.addf %111, %110 : vector<16x128xf32>
    %113 = arith.divf %111, %112 : vector<16x128xf32>
    %114 = vector.extract_strided_slice %103 {offsets = [0, 128], sizes = [16, 128], strides = [1, 1]} : vector<16x384xf32> to vector<16x128xf32>
    %115 = vector.extract_strided_slice %105 {offsets = [0, 128], sizes = [16, 128], strides = [1, 1]} : vector<16x384xf32> to vector<16x128xf32>
    %116 = arith.addf %114, %115 : vector<16x128xf32>
    %117 = arith.negf %116 : vector<16x128xf32>
    %118 = math.exp %117 : vector<16x128xf32>
    %cst_25 = arith.constant 1.000000e+00 : f32
    %119 = vector.broadcast %cst_25 : f32 to vector<16x128xf32>
    %120 = arith.addf %119, %118 : vector<16x128xf32>
    %121 = arith.divf %119, %120 : vector<16x128xf32>
    %122 = vector.extract_strided_slice %103 {offsets = [0, 256], sizes = [16, 128], strides = [1, 1]} : vector<16x384xf32> to vector<16x128xf32>
    %123 = vector.extract_strided_slice %105 {offsets = [0, 256], sizes = [16, 128], strides = [1, 1]} : vector<16x384xf32> to vector<16x128xf32>
    %124 = arith.addf %123, %3 : vector<16x128xf32>
    %125 = arith.mulf %113, %124 : vector<16x128xf32>
    %126 = arith.addf %122, %125 : vector<16x128xf32>
    %127 = math.tanh %126 : vector<16x128xf32>
    %cst_26 = arith.constant 1.000000e+00 : f32
    %128 = vector.broadcast %cst_26 : f32 to vector<16x128xf32>
    %129 = arith.subf %128, %121 : vector<16x128xf32>
    %130 = arith.mulf %129, %127 : vector<16x128xf32>
    %131 = arith.mulf %121, %100 : vector<16x128xf32>
    %132 = arith.addf %130, %131 : vector<16x128xf32>
    %c4_i32 = arith.constant 4 : i32
    %133 = arith.index_cast %c4_i32 : i32 to index
    %c0_27 = arith.constant 0 : index
    %c0_28 = arith.constant 0 : index
    %134 = vector.load %arg1[%133, %c0_27, %c0_28] : memref<8x16x384xf32, #tpu.memory_space<vmem>>, vector<1x16x384xf32>
    %135 = vector.shape_cast %134 : vector<1x16x384xf32> to vector<16x384xf32>
    %136 = arith.truncf %132 : vector<16x128xf32> to vector<16x128xbf16>
    %cst_29 = arith.constant dense<0.000000e+00> : vector<16x384xf32>
    %137 = tpu.matmul %136, %0, %cst_29 {dimension_numbers = #tpu.dot_dimension_numbers<[1], [0], [0], [1], [0, 0, 1, 1], [], []>} : vector<16x128xbf16>, vector<128x384xbf16>, vector<16x384xf32> -> vector<16x384xf32>
    %138 = vector.extract_strided_slice %135 {offsets = [0, 0], sizes = [16, 128], strides = [1, 1]} : vector<16x384xf32> to vector<16x128xf32>
    %139 = vector.extract_strided_slice %137 {offsets = [0, 0], sizes = [16, 128], strides = [1, 1]} : vector<16x384xf32> to vector<16x128xf32>
    %140 = arith.addf %138, %139 : vector<16x128xf32>
    %141 = arith.negf %140 : vector<16x128xf32>
    %142 = math.exp %141 : vector<16x128xf32>
    %cst_30 = arith.constant 1.000000e+00 : f32
    %143 = vector.broadcast %cst_30 : f32 to vector<16x128xf32>
    %144 = arith.addf %143, %142 : vector<16x128xf32>
    %145 = arith.divf %143, %144 : vector<16x128xf32>
    %146 = vector.extract_strided_slice %135 {offsets = [0, 128], sizes = [16, 128], strides = [1, 1]} : vector<16x384xf32> to vector<16x128xf32>
    %147 = vector.extract_strided_slice %137 {offsets = [0, 128], sizes = [16, 128], strides = [1, 1]} : vector<16x384xf32> to vector<16x128xf32>
    %148 = arith.addf %146, %147 : vector<16x128xf32>
    %149 = arith.negf %148 : vector<16x128xf32>
    %150 = math.exp %149 : vector<16x128xf32>
    %cst_31 = arith.constant 1.000000e+00 : f32
    %151 = vector.broadcast %cst_31 : f32 to vector<16x128xf32>
    %152 = arith.addf %151, %150 : vector<16x128xf32>
    %153 = arith.divf %151, %152 : vector<16x128xf32>
    %154 = vector.extract_strided_slice %135 {offsets = [0, 256], sizes = [16, 128], strides = [1, 1]} : vector<16x384xf32> to vector<16x128xf32>
    %155 = vector.extract_strided_slice %137 {offsets = [0, 256], sizes = [16, 128], strides = [1, 1]} : vector<16x384xf32> to vector<16x128xf32>
    %156 = arith.addf %155, %3 : vector<16x128xf32>
    %157 = arith.mulf %145, %156 : vector<16x128xf32>
    %158 = arith.addf %154, %157 : vector<16x128xf32>
    %159 = math.tanh %158 : vector<16x128xf32>
    %cst_32 = arith.constant 1.000000e+00 : f32
    %160 = vector.broadcast %cst_32 : f32 to vector<16x128xf32>
    %161 = arith.subf %160, %153 : vector<16x128xf32>
    %162 = arith.mulf %161, %159 : vector<16x128xf32>
    %163 = arith.mulf %153, %132 : vector<16x128xf32>
    %164 = arith.addf %162, %163 : vector<16x128xf32>
    %c5_i32 = arith.constant 5 : i32
    %165 = arith.index_cast %c5_i32 : i32 to index
    %c0_33 = arith.constant 0 : index
    %c0_34 = arith.constant 0 : index
    %166 = vector.load %arg1[%165, %c0_33, %c0_34] : memref<8x16x384xf32, #tpu.memory_space<vmem>>, vector<1x16x384xf32>
    %167 = vector.shape_cast %166 : vector<1x16x384xf32> to vector<16x384xf32>
    %168 = arith.truncf %164 : vector<16x128xf32> to vector<16x128xbf16>
    %cst_35 = arith.constant dense<0.000000e+00> : vector<16x384xf32>
    %169 = tpu.matmul %168, %0, %cst_35 {dimension_numbers = #tpu.dot_dimension_numbers<[1], [0], [0], [1], [0, 0, 1, 1], [], []>} : vector<16x128xbf16>, vector<128x384xbf16>, vector<16x384xf32> -> vector<16x384xf32>
    %170 = vector.extract_strided_slice %167 {offsets = [0, 0], sizes = [16, 128], strides = [1, 1]} : vector<16x384xf32> to vector<16x128xf32>
    %171 = vector.extract_strided_slice %169 {offsets = [0, 0], sizes = [16, 128], strides = [1, 1]} : vector<16x384xf32> to vector<16x128xf32>
    %172 = arith.addf %170, %171 : vector<16x128xf32>
    %173 = arith.negf %172 : vector<16x128xf32>
    %174 = math.exp %173 : vector<16x128xf32>
    %cst_36 = arith.constant 1.000000e+00 : f32
    %175 = vector.broadcast %cst_36 : f32 to vector<16x128xf32>
    %176 = arith.addf %175, %174 : vector<16x128xf32>
    %177 = arith.divf %175, %176 : vector<16x128xf32>
    %178 = vector.extract_strided_slice %167 {offsets = [0, 128], sizes = [16, 128], strides = [1, 1]} : vector<16x384xf32> to vector<16x128xf32>
    %179 = vector.extract_strided_slice %169 {offsets = [0, 128], sizes = [16, 128], strides = [1, 1]} : vector<16x384xf32> to vector<16x128xf32>
    %180 = arith.addf %178, %179 : vector<16x128xf32>
    %181 = arith.negf %180 : vector<16x128xf32>
    %182 = math.exp %181 : vector<16x128xf32>
    %cst_37 = arith.constant 1.000000e+00 : f32
    %183 = vector.broadcast %cst_37 : f32 to vector<16x128xf32>
    %184 = arith.addf %183, %182 : vector<16x128xf32>
    %185 = arith.divf %183, %184 : vector<16x128xf32>
    %186 = vector.extract_strided_slice %167 {offsets = [0, 256], sizes = [16, 128], strides = [1, 1]} : vector<16x384xf32> to vector<16x128xf32>
    %187 = vector.extract_strided_slice %169 {offsets = [0, 256], sizes = [16, 128], strides = [1, 1]} : vector<16x384xf32> to vector<16x128xf32>
    %188 = arith.addf %187, %3 : vector<16x128xf32>
    %189 = arith.mulf %177, %188 : vector<16x128xf32>
    %190 = arith.addf %186, %189 : vector<16x128xf32>
    %191 = math.tanh %190 : vector<16x128xf32>
    %cst_38 = arith.constant 1.000000e+00 : f32
    %192 = vector.broadcast %cst_38 : f32 to vector<16x128xf32>
    %193 = arith.subf %192, %185 : vector<16x128xf32>
    %194 = arith.mulf %193, %191 : vector<16x128xf32>
    %195 = arith.mulf %185, %164 : vector<16x128xf32>
    %196 = arith.addf %194, %195 : vector<16x128xf32>
    %c6_i32 = arith.constant 6 : i32
    %197 = arith.index_cast %c6_i32 : i32 to index
    %c0_39 = arith.constant 0 : index
    %c0_40 = arith.constant 0 : index
    %198 = vector.load %arg1[%197, %c0_39, %c0_40] : memref<8x16x384xf32, #tpu.memory_space<vmem>>, vector<1x16x384xf32>
    %199 = vector.shape_cast %198 : vector<1x16x384xf32> to vector<16x384xf32>
    %200 = arith.truncf %196 : vector<16x128xf32> to vector<16x128xbf16>
    %cst_41 = arith.constant dense<0.000000e+00> : vector<16x384xf32>
    %201 = tpu.matmul %200, %0, %cst_41 {dimension_numbers = #tpu.dot_dimension_numbers<[1], [0], [0], [1], [0, 0, 1, 1], [], []>} : vector<16x128xbf16>, vector<128x384xbf16>, vector<16x384xf32> -> vector<16x384xf32>
    %202 = vector.extract_strided_slice %199 {offsets = [0, 0], sizes = [16, 128], strides = [1, 1]} : vector<16x384xf32> to vector<16x128xf32>
    %203 = vector.extract_strided_slice %201 {offsets = [0, 0], sizes = [16, 128], strides = [1, 1]} : vector<16x384xf32> to vector<16x128xf32>
    %204 = arith.addf %202, %203 : vector<16x128xf32>
    %205 = arith.negf %204 : vector<16x128xf32>
    %206 = math.exp %205 : vector<16x128xf32>
    %cst_42 = arith.constant 1.000000e+00 : f32
    %207 = vector.broadcast %cst_42 : f32 to vector<16x128xf32>
    %208 = arith.addf %207, %206 : vector<16x128xf32>
    %209 = arith.divf %207, %208 : vector<16x128xf32>
    %210 = vector.extract_strided_slice %199 {offsets = [0, 128], sizes = [16, 128], strides = [1, 1]} : vector<16x384xf32> to vector<16x128xf32>
    %211 = vector.extract_strided_slice %201 {offsets = [0, 128], sizes = [16, 128], strides = [1, 1]} : vector<16x384xf32> to vector<16x128xf32>
    %212 = arith.addf %210, %211 : vector<16x128xf32>
    %213 = arith.negf %212 : vector<16x128xf32>
    %214 = math.exp %213 : vector<16x128xf32>
    %cst_43 = arith.constant 1.000000e+00 : f32
    %215 = vector.broadcast %cst_43 : f32 to vector<16x128xf32>
    %216 = arith.addf %215, %214 : vector<16x128xf32>
    %217 = arith.divf %215, %216 : vector<16x128xf32>
    %218 = vector.extract_strided_slice %199 {offsets = [0, 256], sizes = [16, 128], strides = [1, 1]} : vector<16x384xf32> to vector<16x128xf32>
    %219 = vector.extract_strided_slice %201 {offsets = [0, 256], sizes = [16, 128], strides = [1, 1]} : vector<16x384xf32> to vector<16x128xf32>
    %220 = arith.addf %219, %3 : vector<16x128xf32>
    %221 = arith.mulf %209, %220 : vector<16x128xf32>
    %222 = arith.addf %218, %221 : vector<16x128xf32>
    %223 = math.tanh %222 : vector<16x128xf32>
    %cst_44 = arith.constant 1.000000e+00 : f32
    %224 = vector.broadcast %cst_44 : f32 to vector<16x128xf32>
    %225 = arith.subf %224, %217 : vector<16x128xf32>
    %226 = arith.mulf %225, %223 : vector<16x128xf32>
    %227 = arith.mulf %217, %196 : vector<16x128xf32>
    %228 = arith.addf %226, %227 : vector<16x128xf32>
    %c7_i32 = arith.constant 7 : i32
    %229 = arith.index_cast %c7_i32 : i32 to index
    %c0_45 = arith.constant 0 : index
    %c0_46 = arith.constant 0 : index
    %230 = vector.load %arg1[%229, %c0_45, %c0_46] : memref<8x16x384xf32, #tpu.memory_space<vmem>>, vector<1x16x384xf32>
    %231 = vector.shape_cast %230 : vector<1x16x384xf32> to vector<16x384xf32>
    %232 = arith.truncf %228 : vector<16x128xf32> to vector<16x128xbf16>
    %cst_47 = arith.constant dense<0.000000e+00> : vector<16x384xf32>
    %233 = tpu.matmul %232, %0, %cst_47 {dimension_numbers = #tpu.dot_dimension_numbers<[1], [0], [0], [1], [0, 0, 1, 1], [], []>} : vector<16x128xbf16>, vector<128x384xbf16>, vector<16x384xf32> -> vector<16x384xf32>
    %234 = vector.extract_strided_slice %231 {offsets = [0, 0], sizes = [16, 128], strides = [1, 1]} : vector<16x384xf32> to vector<16x128xf32>
    %235 = vector.extract_strided_slice %233 {offsets = [0, 0], sizes = [16, 128], strides = [1, 1]} : vector<16x384xf32> to vector<16x128xf32>
    %236 = arith.addf %234, %235 : vector<16x128xf32>
    %237 = arith.negf %236 : vector<16x128xf32>
    %238 = math.exp %237 : vector<16x128xf32>
    %cst_48 = arith.constant 1.000000e+00 : f32
    %239 = vector.broadcast %cst_48 : f32 to vector<16x128xf32>
    %240 = arith.addf %239, %238 : vector<16x128xf32>
    %241 = arith.divf %239, %240 : vector<16x128xf32>
    %242 = vector.extract_strided_slice %231 {offsets = [0, 128], sizes = [16, 128], strides = [1, 1]} : vector<16x384xf32> to vector<16x128xf32>
    %243 = vector.extract_strided_slice %233 {offsets = [0, 128], sizes = [16, 128], strides = [1, 1]} : vector<16x384xf32> to vector<16x128xf32>
    %244 = arith.addf %242, %243 : vector<16x128xf32>
    %245 = arith.negf %244 : vector<16x128xf32>
    %246 = math.exp %245 : vector<16x128xf32>
    %cst_49 = arith.constant 1.000000e+00 : f32
    %247 = vector.broadcast %cst_49 : f32 to vector<16x128xf32>
    %248 = arith.addf %247, %246 : vector<16x128xf32>
    %249 = arith.divf %247, %248 : vector<16x128xf32>
    %250 = vector.extract_strided_slice %231 {offsets = [0, 256], sizes = [16, 128], strides = [1, 1]} : vector<16x384xf32> to vector<16x128xf32>
    %251 = vector.extract_strided_slice %233 {offsets = [0, 256], sizes = [16, 128], strides = [1, 1]} : vector<16x384xf32> to vector<16x128xf32>
    %252 = arith.addf %251, %3 : vector<16x128xf32>
    %253 = arith.mulf %241, %252 : vector<16x128xf32>
    %254 = arith.addf %250, %253 : vector<16x128xf32>
    %255 = math.tanh %254 : vector<16x128xf32>
    %cst_50 = arith.constant 1.000000e+00 : f32
    %256 = vector.broadcast %cst_50 : f32 to vector<16x128xf32>
    %257 = arith.subf %256, %249 : vector<16x128xf32>
    %258 = arith.mulf %257, %255 : vector<16x128xf32>
    %259 = arith.mulf %249, %228 : vector<16x128xf32>
    %260 = arith.addf %258, %259 : vector<16x128xf32>
    %c8_i32 = arith.constant 8 : i32
    %c0_51 = arith.constant 0 : index
    %c0_52 = arith.constant 0 : index
    %261 = vector.load %arg4[%c0_51, %c0_52] : memref<16x128xf32, #tpu.memory_space<vmem>>, vector<16x128xf32>
    tpu.vector_store %arg4[%c0_51, %c0_52], %260 {strides = array<i32>} : memref<16x128xf32, #tpu.memory_space<vmem>>, vector<16x128xf32>,
    return
  }
  func.func @transform_0(%arg0: i32) -> (i32, i32, i32) {
    %c0_i32 = arith.constant 0 : i32
    %c0_i32_0 = arith.constant 0 : i32
    %c0_i32_1 = arith.constant 0 : i32
    return %c0_i32, %arg0, %c0_i32_0 : i32, i32, i32
  }
  func.func @transform_1(%arg0: i32) -> (i32, i32) {
    %c0_i32 = arith.constant 0 : i32
    %c0_i32_0 = arith.constant 0 : i32
    %c0_i32_1 = arith.constant 0 : i32
    return %c0_i32, %c0_i32_0 : i32, i32
  }
  func.func @transform_2(%arg0: i32) -> (i32, i32) {
    %c0_i32 = arith.constant 0 : i32
    %c0_i32_0 = arith.constant 0 : i32
    %c0_i32_1 = arith.constant 0 : i32
    return %c0_i32, %c0_i32_0 : i32, i32
  }
  func.func @transform_3(%arg0: i32) -> (i32, i32) {
    %c0_i32 = arith.constant 0 : i32
    %c0_i32_0 = arith.constant 0 : i32
    return %arg0, %c0_i32 : i32, i32
  }
}

</mosaic_0001>

<bundles_post_ra>
// kernel: tpu_custom_call.1
= control target key start
LH: loop header
LB: loop body
LE: loop exit
PB: predicated region body
PF: predicated region fallthrough
CT: control target
= control target key end

     0   :  { %8 = vsyncpa [#allocation3], 0  ;;  %s2428_s0 = inlined_call_operand.hbm [shape: f32[8,16,384], index: 0, kind: input, shape index: {}]   ;;  %s2429_s1 = inlined_call_operand.hbm [shape: bf16[128,384], index: 1, kind: input, shape index: {}]   ;;  %s2430_s2 = inlined_call_operand.vmem [shape: f32[1,128], index: 2, kind: input, shape index: {}]   ;;  %s2431_s3 = inlined_call_operand.hbm [shape: f32[16,128], index: 3, kind: output, shape index: {}]  }
   0x1   :  { %9 = vsyncpa [#allocation6], 0 }
   0x2   :  { %10 = vsyncpa [#allocation4], 0  ;;  %s1907_s12 = smov [#allocation2]   ;;  %s1835_s16 = scalar_lea.hbm %s2428_s0, 6144 }
   0x3   :  { %s16_s13 = sshll.u32 %s1907_s12, 4  ;;  %p1836_p0 = scmp.ne.s32.totalorder %s2428_s0, %s1835_s16  ;;  %s17_s13 = int_to_ptr.vmem [resolvable:$true] %s16_s13 }
   0x4   :  { %p1839_p1 = scmp.lt.u32.totalorder %s1835_s16, %s2428_s0 }
   0x6   :  { %p1841_p2 = pnand %p1839_p1, %p1836_p0 }
   0x8   :  { %1844 = shalt.err (!%p1841_p2)
}
   0x9   :  { %s1845_s21 = scalar_lea.vmem %s17_s13, 6144  ;;  %p1850_p4 = scmp.lt.s32.totalorder %s17_s13, %s17_s13 }
   0xa   :  { %p1846_p3 = scmp.ne.s32.totalorder %s17_s13, %s1845_s21  ;;  %p1851_p5 = scmp.lt.s32.totalorder %s1845_s21, %s1845_s21 }
   0xc   :  { %p1852_p6 = por %p1851_p5, %p1850_p4 }
   0xe   :  { %p1853_p7 = pnand %p1852_p6, %p1846_p3 }
  0x10   :  { %1856 = shalt.err (!%p1853_p7)
}
  0x11   :  { %s1908_s22 = smov 384   ;;  %s1909_s23 = smov 24  }
  0x12   :  { %22 = dma.hbm_to_vmem [thread:$0]  %s2428_s0, 6144, %s17_s13, [#allocation3], %s1908_s22, %s1908_s22, %s1909_s23  }
  0x13   :  { %s1910_s26 = smov [#allocation5]   ;;  %s1857_s30 = scalar_lea.hbm %s2429_s1, 3072 }
  0x14   :  { %s28_s27 = sshll.u32 %s1910_s26, 4  ;;  %p1858_p8 = scmp.ne.s32.totalorder %s2429_s1, %s1857_s30  ;;  %s29_s27 = int_to_ptr.vmem [resolvable:$true] %s28_s27 }
  0x15   :  { %p1861_p9 = scmp.lt.u32.totalorder %s1857_s30, %s2429_s1 }
  0x17   :  { %p1863_p10 = pnand %p1861_p9, %p1858_p8 }
  0x19   :  { %1866 = shalt.err (!%p1863_p10)
}
  0x1a   :  { %s1867_s8 = scalar_lea.vmem %s29_s27, 3072  ;;  %p1872_p12 = scmp.lt.s32.totalorder %s29_s27, %s29_s27 }
  0x1b   :  { %p1868_p11 = scmp.ne.s32.totalorder %s29_s27, %s1867_s8  ;;  %p1873_p13 = scmp.lt.s32.totalorder %s1867_s8, %s1867_s8 }
  0x1d   :  { %p1874_p0 = por %p1873_p13, %p1872_p12 }
  0x1f   :  { %p1875_p1 = pnand %p1874_p0, %p1868_p11 }
  0x21   :  { %1878 = shalt.err (!%p1875_p1)
}
  0x22   :  { %s1911_s0 = smov 192   ;;  %s1912_s9 = smov 12  }
  0x23   :  { %34 = dma.hbm_to_vmem [thread:$0]  %s2429_s1, 3072, %s29_s27, [#allocation6], %s1911_s0, %s1911_s0, %s1912_s9  }
  0x24   :  { %1901 = dma.done.wait [#allocation3], 6144  }
  0x25   :  { %1902 = vsyncadd [#allocation3], 4294961152 }
  0x26   :  { %1903 = dma.done.wait [#allocation6], 3072  }
  0x27   :  { %1904 = vsyncadd [#allocation6], 4294964224  ;;  %v1913_v0 = vmov 0.0   ;;  %v1914_v1 = vmov 0   ;;  %vm1915_vm0 = vmmov 0   ;;  %v83_v26 = vld [vmem:[#allocation2] sm:$0xff] }
  0x28   :  { %1446 = vmatprep.subr.bf16.mxu1 %v1913_v0  ;;  %249 = vmatprep.mubr.bf16.mxu0 %v1914_v1  ;;  %v1967_v2 = vld [vmem:[#allocation5 + $0x4] ss:$12 sps:$4 sm:$0xff]   ;;  %v1969_v3 = vld [vmem:[#allocation5] ss:$12 sps:$4 sm:$0xff]   ;;  %v1972_v4 = vld [vmem:[#allocation5 + $0x1c] ss:$12 sps:$4 sm:$0xff]  }
  0x29   :  { %1462 = vmatprep.mubr.msk.bf16.mxu1 %vm1915_vm0, %v1913_v0  ;;  %217 = vmatprep.subr.bf16.mxu0 %v1967_v2  ;;  %v1975_v5 = vld [vmem:[#allocation5 + $0x18] ss:$12 sps:$4 sm:$0xff]   ;;  %v1978_v6 = vld [vmem:[#allocation5 + $0x34] ss:$12 sps:$4 sm:$0xff]   ;;  %v1981_v7 = vld [vmem:[#allocation5 + $0x30] ss:$12 sps:$4 sm:$0xff]  }
  0x2a   :  { %218 = vmatpush1.bf16.msra.mxu0 %v1969_v3  ;;  %v1984_v8 = vld [vmem:[#allocation5 + $0x4c] ss:$12 sps:$4 sm:$0xff]   ;;  %v1986_v9 = vld [vmem:[#allocation5 + $0x8] ss:$12 sps:$4 sm:$0xff]   ;;  %v1993_v11 = vld [vmem:[#allocation5 + $0x64] ss:$12 sps:$4 sm:$0xff]  }
  0x2b   :  { %219 = vmatprep.subr.bf16.mxu0 %v1972_v4  ;;  %v1989_v10 = vld [vmem:[#allocation5 + $0x48] ss:$12 sps:$4 sm:$0xff]   ;;  %1447 = vmatpush3.bf16.msra.mxu1 %v1986_v9  ;;  %v1996_v12 = vld [vmem:[#allocation5 + $0x20] ss:$12 sps:$4 sm:$0xff]   ;;  %v2002_v14 = vld [vmem:[#allocation5 + $0x38] ss:$12 sps:$4 sm:$0xff]  }
  0x2c   :  { %1448 = vmatprep.subr.bf16.mxu1 %v1913_v0  ;;  %v1998_v13 = vld [vmem:[#allocation5 + $0x60] ss:$12 sps:$4 sm:$0xff]   ;;  %v2005_v15 = vld [vmem:[#allocation5 + $0x7c] ss:$12 sps:$4 sm:$0xff]   ;;  %v2009_v16 = vld [vmem:[#allocation5 + $0x78] ss:$12 sps:$4 sm:$0xff]  }
  0x2d   :  { %v2012_v17 = vld [vmem:[#allocation5 + $0x50] ss:$12 sps:$4 sm:$0xff]   ;;  %v2015_v18 = vld [vmem:[#allocation5 + $0x94] ss:$12 sps:$4 sm:$0xff]   ;;  %v2025_v21 = vld [vmem:[#allocation5 + $0xac] ss:$12 sps:$4 sm:$0xff]  }
  0x2e   :  { %220 = vmatpush1.bf16.msra.mxu0 %v1975_v5  ;;  %v2019_v19 = vld [vmem:[#allocation5 + $0x90] ss:$12 sps:$4 sm:$0xff]   ;;  %v2022_v20 = vld [vmem:[#allocation5 + $0x68] ss:$12 sps:$4 sm:$0xff]   ;;  %v2032_v23 = vld [vmem:[#allocation5 + $0x80] ss:$12 sps:$4 sm:$0xff]  }
  0x2f   :  { %221 = vmatprep.subr.bf16.mxu0 %v1978_v6  ;;  %1449 = vmatpush3.bf16.msra.mxu1 %v1996_v12  ;;  %v2029_v22 = vld [vmem:[#allocation5 + $0xa8] ss:$12 sps:$4 sm:$0xff]   ;;  %v2038_v24 = vld [vmem:[#allocation5 + $0x98] ss:$12 sps:$4 sm:$0xff]   ;;  %v2044_v25 = vld [vmem:[#allocation5 + $0xb0] ss:$12 sps:$4 sm:$0xff]  }
  0x30   :  { %1450 = vmatprep.subr.bf16.mxu1 %v1913_v0  ;;  %v86_v28 = vld [vmem:[#allocation2 + $0x18] sm:$0xff]  ;;  %v84_v30 = vld [vmem:[#allocation2 + $0x8] sm:$0xff]  ;;  %v87_v35 = vld [vmem:[#allocation2 + $0x20] sm:$0xff] }
  0x31   :  { %v2088_v51 = vld [vmem:[%s2430_s2] ss:$0 sm:$0xff]  ;;  %v85_v57 = vld [vmem:[#allocation2 + $0x10] sm:$0xff]  ;;  %v88_v61 = vld [vmem:[#allocation2 + $0x28] sm:$0xff] }
  0x32   :  { %222 = vmatpush1.bf16.msra.mxu0 %v1981_v7 }
  0x33   :  { %223 = vmatprep.subr.bf16.mxu0 %v1984_v8  ;;  %1451 = vmatpush3.bf16.msra.mxu1 %v2002_v14 }
  0x34   :  { %1452 = vmatprep.subr.bf16.mxu1 %v1913_v0 }
  0x36   :  { %224 = vmatpush1.bf16.msra.mxu0 %v1989_v10 }
  0x37   :  { %225 = vmatprep.subr.bf16.mxu0 %v1993_v11  ;;  %1453 = vmatpush3.bf16.msra.mxu1 %v2012_v17 }
  0x38   :  { %1454 = vmatprep.subr.bf16.mxu1 %v1913_v0 }
  0x3a   :  { %226 = vmatpush1.bf16.msra.mxu0 %v1998_v13 }
  0x3b   :  { %227 = vmatprep.subr.bf16.mxu0 %v2005_v15  ;;  %1455 = vmatpush3.bf16.msra.mxu1 %v2022_v20 }
  0x3c   :  { %1456 = vmatprep.subr.bf16.mxu1 %v1913_v0 }
  0x3e   :  { %228 = vmatpush1.bf16.msra.mxu0 %v2009_v16 }
  0x3f   :  { %229 = vmatprep.subr.bf16.mxu0 %v2015_v18  ;;  %1457 = vmatpush3.bf16.msra.mxu1 %v2032_v23 }
  0x40   :  { %1458 = vmatprep.subr.bf16.mxu1 %v1913_v0 }
  0x42   :  { %230 = vmatpush1.bf16.msra.mxu0 %v2019_v19 }
  0x43   :  { %231 = vmatprep.subr.bf16.mxu0 %v2025_v21  ;;  %1459 = vmatpush3.bf16.msra.mxu1 %v2038_v24 }
  0x44   :  { %1460 = vmatprep.subr.bf16.mxu1 %v1913_v0 }
  0x46   :  { %232 = vmatpush1.bf16.msra.mxu0 %v2029_v22 }
  0x47   :  { %353 = vmatprep.subr.bf16.mxu0 %v1967_v2  ;;  %1461 = vmatpush3.bf16.msra.mxu1 %v2044_v25 }
  0x48   :  { %1466 = vmatprep.subr.bf16.mxu1 %v1913_v0 }
  0x49   :  { %250 = vmatmul.mubr.bf16.vlgmr.msra.gmra.mrb[0].mxu0 %v1914_v1 }
  0x4a   :  { %354 = vmatpush1.bf16.msra.mxu0 %v1969_v3  ;;  %385 = vmatprep.mubr.bf16.mxu0 %v1914_v1 }
  0x4b   :  { %355 = vmatprep.subr.bf16.mxu0 %v1972_v4  ;;  %1463 = vmatmul.mubr.bf16.vlgmr.msra.gmra.mrb[0].mxu1 %v1914_v1 }
  0x4c   :  { %1467 = vmatpush3.bf16.msra.mxu1 %v1986_v9  ;;  %1482 = vmatprep.mubr.msk.bf16.mxu1 %vm1915_vm0, %v1913_v0 }
  0x4d   :  { %1468 = vmatprep.subr.bf16.mxu1 %v1913_v0 }
  0x4e   :  { %356 = vmatpush1.bf16.msra.mxu0 %v1975_v5 }
  0x4f   :  { %357 = vmatprep.subr.bf16.mxu0 %v1978_v6 }
  0x50   :  { %1469 = vmatpush3.bf16.msra.mxu1 %v1996_v12 }
  0x51   :  { %1470 = vmatprep.subr.bf16.mxu1 %v1913_v0 }
  0x52   :  { %358 = vmatpush1.bf16.msra.mxu0 %v1981_v7 }
  0x53   :  { %359 = vmatprep.subr.bf16.mxu0 %v1984_v8 }
  0x54   :  { %1471 = vmatpush3.bf16.msra.mxu1 %v2002_v14 }
  0x55   :  { %1472 = vmatprep.subr.bf16.mxu1 %v1913_v0 }
  0x56   :  { %360 = vmatpush1.bf16.msra.mxu0 %v1989_v10 }
  0x57   :  { %361 = vmatprep.subr.bf16.mxu0 %v1993_v11 }
  0x58   :  { %1473 = vmatpush3.bf16.msra.mxu1 %v2012_v17 }
  0x59   :  { %1474 = vmatprep.subr.bf16.mxu1 %v1913_v0 }
  0x5a   :  { %362 = vmatpush1.bf16.msra.mxu0 %v1998_v13 }
  0x5b   :  { %363 = vmatprep.subr.bf16.mxu0 %v2005_v15 }
  0x5c   :  { %1475 = vmatpush3.bf16.msra.mxu1 %v2022_v20 }
  0x5d   :  { %1476 = vmatprep.subr.bf16.mxu1 %v1913_v0 }
  0x5e   :  { %364 = vmatpush1.bf16.msra.mxu0 %v2009_v16 }
  0x5f   :  { %365 = vmatprep.subr.bf16.mxu0 %v2015_v18 }
  0x60   :  { %1477 = vmatpush3.bf16.msra.mxu1 %v2032_v23 }
  0x61   :  { %1478 = vmatprep.subr.bf16.mxu1 %v1913_v0 }
  0x62   :  { %366 = vmatpush1.bf16.msra.mxu0 %v2019_v19 }
  0x63   :  { %367 = vmatprep.subr.bf16.mxu0 %v2025_v21 }
  0x64   :  { %1479 = vmatpush3.bf16.msra.mxu1 %v2038_v24 }
  0x65   :  { %1480 = vmatprep.subr.bf16.mxu1 %v1913_v0 }
  0x66   :  { %368 = vmatpush1.bf16.msra.mxu0 %v2029_v22 }
  0x67   :  { %489 = vmatprep.subr.bf16.mxu0 %v1967_v2 }
  0x68   :  { %1481 = vmatpush3.bf16.msra.mxu1 %v2044_v25 }
  0x69   :  { %1486 = vmatprep.subr.bf16.mxu1 %v1913_v0 }
 0x11c   :  { %v251_v27 = vpop.f32.mrb[0].mxu0 }
 0x11d   :  { %v301_v29 = vadd.f32 %v251_v27, %v83_v26  ;;  %v253_v31 = vpop.f32.mrb[1].mxu0 }
 0x11e   :  { %v255_v32 = vpop.f32.mrb[2].mxu0  ;;  %v315_v37 = vadd.f32 %v253_v31, %v84_v30  ;;  %v294_v41 = vpop.f32.mrb[0].mxu1 }
 0x11f   :  { %v1342_v33 = vmul.f32 -1.442695, %v301_v29  ;;  %v302_v34 = vadd.f32 %v255_v32, %v86_v28  ;;  %v257_v36 = vpop.f32.mrb[3].mxu0  ;;  %v1464_v42 = vpop.f32.mrb[1].mxu1  ;;  %v329_v54 = vadd.f32 %v2088_v51, %v294_v41 }
 0x120   :  { %v316_v39 = vadd.f32 %v257_v36, %v87_v35  ;;  %v1344_v40 = vmul.f32 -1.442695, %v315_v37  ;;  %v297_v44 = vpop.f32.mrb[2].mxu1 }
 0x121   :  { %1650 = vpow2.f32 %v1342_v33  ;;  %v1343_v38 = vmul.f32 -1.442695, %v302_v34  ;;  %v1465_v45 = vpop.f32.mrb[3].mxu1  ;;  %v330_v59 = vadd.f32 %v2088_v51, %v297_v44 }
 0x122   :  { %v1345_v43 = vmul.f32 -1.442695, %v316_v39  ;;  %v347_v45 = vld [vmem:[#allocation2 + $0x38] sm:$0xff] }
 0x123   :  { %1652 = vpow2.f32 %v1343_v38 }
 0x124   :  { %1654 = vpow2.f32 %v1344_v40  ;;  %v346_v40 = vld [vmem:[#allocation2 + $0x30] sm:$0xff] }
 0x125   :  { %1656 = vpow2.f32 %v1345_v43  ;;  %v349_v43 = vld [vmem:[#allocation2 + $0x48] sm:$0xff] }
 0x12b   :  { %v1651_v46 = vpop.eup %1650 }
 0x12c   :  { %v309_v47 = vadd.f32 1.0, %v1651_v46 }
 0x12d   :  { %v1653_v48 = vpop.eup %1652 }
 0x12e   :  { %1658 = vrcp.f32 %v309_v47  ;;  %v310_v49 = vadd.f32 1.0, %v1653_v48  ;;  %v1655_v50 = vpop.eup %1654 }
 0x12f   :  { %v1657_v52 = vpop.eup %1656  ;;  %v323_v53 = vadd.f32 1.0, %v1655_v50 }
 0x130   :  { %1660 = vrcp.f32 %v310_v49  ;;  %v324_v55 = vadd.f32 1.0, %v1657_v52 }
 0x131   :  { %1662 = vrcp.f32 %v323_v53  ;;  %v350_v53 = vld [vmem:[#allocation2 + $0x50] sm:$0xff] }
 0x132   :  { %1664 = vrcp.f32 %v324_v55 }
 0x138   :  { %v1659_v56 = vpop.eup %1658 }
 0x139   :  { %v331_v58 = vmul.f32 %v1659_v56, %v329_v54 }
 0x13a   :  { %v1661_v60 = vpop.eup %1660 }
 0x13b   :  { %v333_v62 = vadd.f32 %v331_v58, %v85_v57  ;;  %v332_v63 = vmul.f32 %v1661_v60, %v330_v59  ;;  %v1663_v27 = vpop.eup %1662 }
 0x13c   :  { %v1665_v28 = vpop.eup %1664  ;;  %v337_v29 = vsub.f32 1.0, %v1663_v27  ;;  %v341_v33 = vmul.f32 0.0, %v1663_v27 }
 0x13d   :  { %1666 = vtanh.f32 %v333_v62  ;;  %v334_v26 = vadd.f32 %v332_v63, %v88_v61  ;;  %v338_v31 = vsub.f32 1.0, %v1665_v28  ;;  %v342_v36 = vmul.f32 0.0, %v1665_v28 }
 0x13f   :  { %1668 = vtanh.f32 %v334_v26 }
 0x147   :  { %v1667_v30 = vpop.eup %1666 }
 0x148   :  { %v339_v32 = vmul.f32 %v1667_v30, %v337_v29 }
 0x149   :  { %v1669_v34 = vpop.eup %1668 }
 0x14a   :  { %v340_v35 = vmul.f32 %v1669_v34, %v338_v31  ;;  %v2092_v37 = vadd.f32 %v341_v33, %v339_v32  ;;  %v348_v33 = vld [vmem:[#allocation2 + $0x40] sm:$0xff] }
 0x14c   :  { %v2094_v38 = vadd.f32 %v342_v36, %v340_v35 }
 0x14e   :  { %v352_v39 = vpack.c.bf16 %v2094_v38, %v2092_v37 }
 0x150   :  { %386 = vmatmul.mubr.bf16.vlgmr.msra.gmra.mrb[4].mxu0 %v352_v39  ;;  %1483 = vmatmul.mubr.bf16.vlgmr.msra.gmra.mrb[4].mxu1 %v352_v39  ;;  %v351_v39 = vld [vmem:[#allocation2 + $0x58] sm:$0xff] }
 0x151   :  { %490 = vmatpush1.bf16.msra.mxu0 %v1969_v3  ;;  %1487 = vmatpush3.bf16.msra.mxu1 %v1986_v9 }
 0x152   :  { %491 = vmatprep.subr.bf16.mxu0 %v1972_v4  ;;  %1488 = vmatprep.subr.bf16.mxu1 %v1913_v0 }
 0x153   :  { %521 = vmatprep.mubr.bf16.mxu0 %v1914_v1  ;;  %1502 = vmatprep.mubr.msk.bf16.mxu1 %vm1915_vm0, %v1913_v0 }
 0x155   :  { %492 = vmatpush1.bf16.msra.mxu0 %v1975_v5  ;;  %1489 = vmatpush3.bf16.msra.mxu1 %v1996_v12 }
 0x156   :  { %493 = vmatprep.subr.bf16.mxu0 %v1978_v6  ;;  %1490 = vmatprep.subr.bf16.mxu1 %v1913_v0 }
 0x159   :  { %494 = vmatpush1.bf16.msra.mxu0 %v1981_v7  ;;  %1491 = vmatpush3.bf16.msra.mxu1 %v2002_v14 }
 0x15a   :  { %495 = vmatprep.subr.bf16.mxu0 %v1984_v8  ;;  %1492 = vmatprep.subr.bf16.mxu1 %v1913_v0 }
 0x15d   :  { %496 = vmatpush1.bf16.msra.mxu0 %v1989_v10  ;;  %1493 = vmatpush3.bf16.msra.mxu1 %v2012_v17 }
 0x15e   :  { %497 = vmatprep.subr.bf16.mxu0 %v1993_v11  ;;  %1494 = vmatprep.subr.bf16.mxu1 %v1913_v0 }
 0x161   :  { %498 = vmatpush1.bf16.msra.mxu0 %v1998_v13  ;;  %1495 = vmatpush3.bf16.msra.mxu1 %v2022_v20 }
 0x162   :  { %499 = vmatprep.subr.bf16.mxu0 %v2005_v15  ;;  %1496 = vmatprep.subr.bf16.mxu1 %v1913_v0 }
 0x165   :  { %500 = vmatpush1.bf16.msra.mxu0 %v2009_v16  ;;  %1497 = vmatpush3.bf16.msra.mxu1 %v2032_v23 }
 0x166   :  { %501 = vmatprep.subr.bf16.mxu0 %v2015_v18  ;;  %1498 = vmatprep.subr.bf16.mxu1 %v1913_v0 }
 0x169   :  { %502 = vmatpush1.bf16.msra.mxu0 %v2019_v19  ;;  %1499 = vmatpush3.bf16.msra.mxu1 %v2038_v24 }
 0x16a   :  { %503 = vmatprep.subr.bf16.mxu0 %v2025_v21  ;;  %1500 = vmatprep.subr.bf16.mxu1 %v1913_v0 }
 0x16d   :  { %504 = vmatpush1.bf16.msra.mxu0 %v2029_v22  ;;  %1501 = vmatpush3.bf16.msra.mxu1 %v2044_v25 }
 0x16e   :  { %625 = vmatprep.subr.bf16.mxu0 %v1967_v2  ;;  %1506 = vmatprep.subr.bf16.mxu1 %v1913_v0 }
 0x223   :  { %v387_v41 = vpop.f32.mrb[4].mxu0  ;;  %v430_v42 = vpop.f32.mrb[4].mxu1 }
 0x224   :  { %v437_v44 = vadd.f32 %v387_v41, %v346_v40  ;;  %v389_v46 = vpop.f32.mrb[5].mxu0  ;;  %v1484_v47 = vpop.f32.mrb[5].mxu1  ;;  %v465_v30 = vadd.f32 %v2088_v51, %v430_v42 }
 0x225   :  { %v391_v48 = vpop.f32.mrb[6].mxu0  ;;  %v433_v49 = vpop.f32.mrb[6].mxu1  ;;  %v451_v56 = vadd.f32 %v389_v46, %v347_v45 }
 0x226   :  { %v1346_v50 = vmul.f32 -1.442695, %v437_v44  ;;  %v438_v52 = vadd.f32 %v391_v48, %v349_v43  ;;  %v393_v54 = vpop.f32.mrb[7].mxu0  ;;  %v1485_v55 = vpop.f32.mrb[7].mxu1  ;;  %v466_v35 = vadd.f32 %v2088_v51, %v433_v49 }
 0x227   :  { %v452_v58 = vadd.f32 %v393_v54, %v350_v53  ;;  %v1348_v59 = vmul.f32 -1.442695, %v451_v56 }
 0x228   :  { %1670 = vpow2.f32 %v1346_v50  ;;  %v1347_v57 = vmul.f32 -1.442695, %v438_v52 }
 0x229   :  { %v1349_v60 = vmul.f32 -1.442695, %v452_v58  ;;  %v485_v58 = vld [vmem:[#allocation2 + $0x78] sm:$0xff] }
 0x22a   :  { %1672 = vpow2.f32 %v1347_v57 }
 0x22b   :  { %1674 = vpow2.f32 %v1348_v59 }
 0x22c   :  { %1676 = vpow2.f32 %v1349_v60  ;;  %v483_v60 = vld [vmem:[#allocation2 + $0x68] sm:$0xff] }
 0x232   :  { %v1671_v61 = vpop.eup %1670 }
 0x233   :  { %v445_v62 = vadd.f32 1.0, %v1671_v61 }
 0x234   :  { %v1673_v63 = vpop.eup %1672 }
 0x235   :  { %1678 = vrcp.f32 %v445_v62  ;;  %v446_v26 = vadd.f32 1.0, %v1673_v63  ;;  %v1675_v27 = vpop.eup %1674 }
 0x236   :  { %v1677_v28 = vpop.eup %1676  ;;  %v459_v29 = vadd.f32 1.0, %v1675_v27 }
 0x237   :  { %1680 = vrcp.f32 %v446_v26  ;;  %v460_v31 = vadd.f32 1.0, %v1677_v28 }
 0x238   :  { %1682 = vrcp.f32 %v459_v29  ;;  %v486_v29 = vld [vmem:[#allocation2 + $0x80] sm:$0xff] }
 0x239   :  { %1684 = vrcp.f32 %v460_v31 }
 0x23f   :  { %v1679_v32 = vpop.eup %1678 }
 0x240   :  { %v467_v34 = vmul.f32 %v1679_v32, %v465_v30 }
 0x241   :  { %v1681_v36 = vpop.eup %1680 }
 0x242   :  { %v469_v40 = vadd.f32 %v467_v34, %v348_v33  ;;  %v468_v41 = vmul.f32 %v1681_v36, %v466_v35  ;;  %v1683_v44 = vpop.eup %1682 }
 0x243   :  { %v1685_v45 = vpop.eup %1684  ;;  %v473_v46 = vsub.f32 1.0, %v1683_v44  ;;  %v477_v50 = vmul.f32 %v1683_v44, %v2092_v37  ;;  %v482_v37 = vld [vmem:[#allocation2 + $0x60] sm:$0xff] }
 0x244   :  { %1686 = vtanh.f32 %v469_v40  ;;  %v470_v43 = vadd.f32 %v468_v41, %v351_v39  ;;  %v474_v42 = vsub.f32 1.0, %v1685_v45  ;;  %v478_v49 = vmul.f32 %v1685_v45, %v2094_v38 }
 0x246   :  { %1688 = vtanh.f32 %v470_v43 }
 0x24e   :  { %v1687_v47 = vpop.eup %1686 }
 0x24f   :  { %v475_v48 = vmul.f32 %v1687_v47, %v473_v46 }
 0x250   :  { %v1689_v52 = vpop.eup %1688 }
 0x251   :  { %v476_v53 = vmul.f32 %v1689_v52, %v474_v42  ;;  %v2137_v54 = vadd.f32 %v477_v50, %v475_v48  ;;  %v484_v50 = vld [vmem:[#allocation2 + $0x70] sm:$0xff] }
 0x253   :  { %v2139_v55 = vadd.f32 %v478_v49, %v476_v53 }
 0x255   :  { %v488_v56 = vpack.c.bf16 %v2139_v55, %v2137_v54 }
 0x257   :  { %522 = vmatmul.mubr.bf16.vlgmr.msra.gmra.mrb[8].mxu0 %v488_v56  ;;  %1503 = vmatmul.mubr.bf16.vlgmr.msra.gmra.mrb[8].mxu1 %v488_v56  ;;  %v487_v56 = vld [vmem:[#allocation2 + $0x88] sm:$0xff] }
 0x258   :  { %626 = vmatpush1.bf16.msra.mxu0 %v1969_v3  ;;  %1507 = vmatpush3.bf16.msra.mxu1 %v1986_v9 }
 0x259   :  { %627 = vmatprep.subr.bf16.mxu0 %v1972_v4  ;;  %1508 = vmatprep.subr.bf16.mxu1 %v1913_v0 }
 0x25a   :  { %657 = vmatprep.mubr.bf16.mxu0 %v1914_v1  ;;  %1522 = vmatprep.mubr.msk.bf16.mxu1 %vm1915_vm0, %v1913_v0 }
 0x25c   :  { %628 = vmatpush1.bf16.msra.mxu0 %v1975_v5  ;;  %1509 = vmatpush3.bf16.msra.mxu1 %v1996_v12 }
 0x25d   :  { %629 = vmatprep.subr.bf16.mxu0 %v1978_v6  ;;  %1510 = vmatprep.subr.bf16.mxu1 %v1913_v0 }
 0x260   :  { %630 = vmatpush1.bf16.msra.mxu0 %v1981_v7  ;;  %1511 = vmatpush3.bf16.msra.mxu1 %v2002_v14 }
 0x261   :  { %631 = vmatprep.subr.bf16.mxu0 %v1984_v8  ;;  %1512 = vmatprep.subr.bf16.mxu1 %v1913_v0 }
 0x264   :  { %632 = vmatpush1.bf16.msra.mxu0 %v1989_v10  ;;  %1513 = vmatpush3.bf16.msra.mxu1 %v2012_v17 }
 0x265   :  { %633 = vmatprep.subr.bf16.mxu0 %v1993_v11  ;;  %1514 = vmatprep.subr.bf16.mxu1 %v1913_v0 }
 0x268   :  { %634 = vmatpush1.bf16.msra.mxu0 %v1998_v13  ;;  %1515 = vmatpush3.bf16.msra.mxu1 %v2022_v20 }
 0x269   :  { %635 = vmatprep.subr.bf16.mxu0 %v2005_v15  ;;  %1516 = vmatprep.subr.bf16.mxu1 %v1913_v0 }
 0x26c   :  { %636 = vmatpush1.bf16.msra.mxu0 %v2009_v16  ;;  %1517 = vmatpush3.bf16.msra.mxu1 %v2032_v23 }
 0x26d   :  { %637 = vmatprep.subr.bf16.mxu0 %v2015_v18  ;;  %1518 = vmatprep.subr.bf16.mxu1 %v1913_v0 }
 0x270   :  { %638 = vmatpush1.bf16.msra.mxu0 %v2019_v19  ;;  %1519 = vmatpush3.bf16.msra.mxu1 %v2038_v24 }
 0x271   :  { %639 = vmatprep.subr.bf16.mxu0 %v2025_v21  ;;  %1520 = vmatprep.subr.bf16.mxu1 %v1913_v0 }
 0x274   :  { %640 = vmatpush1.bf16.msra.mxu0 %v2029_v22  ;;  %1521 = vmatpush3.bf16.msra.mxu1 %v2044_v25 }
 0x275   :  { %761 = vmatprep.subr.bf16.mxu0 %v1967_v2  ;;  %1526 = vmatprep.subr.bf16.mxu1 %v1913_v0 }
 0x32a   :  { %v523_v38 = vpop.f32.mrb[8].mxu0  ;;  %v566_v57 = vpop.f32.mrb[8].mxu1 }
 0x32b   :  { %v573_v59 = vadd.f32 %v523_v38, %v482_v37  ;;  %v525_v61 = vpop.f32.mrb[9].mxu0  ;;  %v1504_v62 = vpop.f32.mrb[9].mxu1  ;;  %v601_v47 = vadd.f32 %v2088_v51, %v566_v57 }
 0x32c   :  { %v527_v63 = vpop.f32.mrb[10].mxu0  ;;  %v569_v26 = vpop.f32.mrb[10].mxu1  ;;  %v587_v32 = vadd.f32 %v525_v61, %v483_v60 }
 0x32d   :  { %v1350_v27 = vmul.f32 -1.442695, %v573_v59  ;;  %v574_v28 = vadd.f32 %v527_v63, %v485_v58  ;;  %v529_v30 = vpop.f32.mrb[11].mxu0  ;;  %v1505_v31 = vpop.f32.mrb[11].mxu1  ;;  %v602_v53 = vadd.f32 %v2088_v51, %v569_v26 }
 0x32e   :  { %v588_v34 = vadd.f32 %v529_v30, %v486_v29  ;;  %v1352_v35 = vmul.f32 -1.442695, %v587_v32 }
 0x32f   :  { %1690 = vpow2.f32 %v1350_v27  ;;  %v1351_v33 = vmul.f32 -1.442695, %v574_v28 }
 0x330   :  { %v1353_v36 = vmul.f32 -1.442695, %v588_v34  ;;  %v621_v34 = vld [vmem:[#allocation2 + $0xa8] sm:$0xff] }
 0x331   :  { %1692 = vpow2.f32 %v1351_v33 }
 0x332   :  { %1694 = vpow2.f32 %v1352_v35 }
 0x333   :  { %1696 = vpow2.f32 %v1353_v36  ;;  %v619_v36 = vld [vmem:[#allocation2 + $0x98] sm:$0xff] }
 0x339   :  { %v1691_v39 = vpop.eup %1690 }
 0x33a   :  { %v581_v40 = vadd.f32 1.0, %v1691_v39 }
 0x33b   :  { %v1693_v41 = vpop.eup %1692 }
 0x33c   :  { %1698 = vrcp.f32 %v581_v40  ;;  %v582_v43 = vadd.f32 1.0, %v1693_v41  ;;  %v1695_v44 = vpop.eup %1694 }
 0x33d   :  { %v1697_v45 = vpop.eup %1696  ;;  %v595_v46 = vadd.f32 1.0, %v1695_v44 }
 0x33e   :  { %1700 = vrcp.f32 %v582_v43  ;;  %v596_v42 = vadd.f32 1.0, %v1697_v45 }
 0x33f   :  { %1702 = vrcp.f32 %v595_v46  ;;  %v622_v46 = vld [vmem:[#allocation2 + $0xb0] sm:$0xff] }
 0x340   :  { %1704 = vrcp.f32 %v596_v42 }
 0x346   :  { %v1699_v48 = vpop.eup %1698 }
 0x347   :  { %v603_v52 = vmul.f32 %v1699_v48, %v601_v47 }
 0x348   :  { %v1701_v49 = vpop.eup %1700 }
 0x349   :  { %v605_v37 = vadd.f32 %v603_v52, %v484_v50  ;;  %v604_v38 = vmul.f32 %v1701_v49, %v602_v53  ;;  %v1703_v59 = vpop.eup %1702 }
 0x34a   :  { %v1705_v60 = vpop.eup %1704  ;;  %v609_v61 = vsub.f32 1.0, %v1703_v59  ;;  %v613_v27 = vmul.f32 %v1703_v59, %v2137_v54  ;;  %v618_v54 = vld [vmem:[#allocation2 + $0x90] sm:$0xff] }
 0x34b   :  { %1706 = vtanh.f32 %v605_v37  ;;  %v606_v58 = vadd.f32 %v604_v38, %v487_v56  ;;  %v610_v57 = vsub.f32 1.0, %v1705_v60  ;;  %v614_v26 = vmul.f32 %v1705_v60, %v2139_v55 }
 0x34d   :  { %1708 = vtanh.f32 %v606_v58 }
 0x355   :  { %v1707_v62 = vpop.eup %1706 }
 0x356   :  { %v611_v63 = vmul.f32 %v1707_v62, %v609_v61 }
 0x357   :  { %v1709_v28 = vpop.eup %1708 }
 0x358   :  { %v612_v29 = vmul.f32 %v1709_v28, %v610_v57  ;;  %v2182_v30 = vadd.f32 %v613_v27, %v611_v63  ;;  %v620_v27 = vld [vmem:[#allocation2 + $0xa0] sm:$0xff] }
 0x35a   :  { %v2184_v31 = vadd.f32 %v614_v26, %v612_v29 }
 0x35c   :  { %v624_v32 = vpack.c.bf16 %v2184_v31, %v2182_v30 }
 0x35e   :  { %658 = vmatmul.mubr.bf16.vlgmr.msra.gmra.mrb[12].mxu0 %v624_v32  ;;  %1523 = vmatmul.mubr.bf16.vlgmr.msra.gmra.mrb[12].mxu1 %v624_v32  ;;  %v623_v32 = vld [vmem:[#allocation2 + $0xb8] sm:$0xff] }
 0x35f   :  { %762 = vmatpush1.bf16.msra.mxu0 %v1969_v3  ;;  %1527 = vmatpush3.bf16.msra.mxu1 %v1986_v9 }
 0x360   :  { %763 = vmatprep.subr.bf16.mxu0 %v1972_v4  ;;  %1528 = vmatprep.subr.bf16.mxu1 %v1913_v0 }
 0x361   :  { %793 = vmatprep.mubr.bf16.mxu0 %v1914_v1  ;;  %1542 = vmatprep.mubr.msk.bf16.mxu1 %vm1915_vm0, %v1913_v0 }
 0x363   :  { %764 = vmatpush1.bf16.msra.mxu0 %v1975_v5  ;;  %1529 = vmatpush3.bf16.msra.mxu1 %v1996_v12 }
 0x364   :  { %765 = vmatprep.subr.bf16.mxu0 %v1978_v6  ;;  %1530 = vmatprep.subr.bf16.mxu1 %v1913_v0 }
 0x367   :  { %766 = vmatpush1.bf16.msra.mxu0 %v1981_v7  ;;  %1531 = vmatpush3.bf16.msra.mxu1 %v2002_v14 }
 0x368   :  { %767 = vmatprep.subr.bf16.mxu0 %v1984_v8  ;;  %1532 = vmatprep.subr.bf16.mxu1 %v1913_v0 }
 0x36b   :  { %768 = vmatpush1.bf16.msra.mxu0 %v1989_v10  ;;  %1533 = vmatpush3.bf16.msra.mxu1 %v2012_v17 }
 0x36c   :  { %769 = vmatprep.subr.bf16.mxu0 %v1993_v11  ;;  %1534 = vmatprep.subr.bf16.mxu1 %v1913_v0 }
 0x36f   :  { %770 = vmatpush1.bf16.msra.mxu0 %v1998_v13  ;;  %1535 = vmatpush3.bf16.msra.mxu1 %v2022_v20 }
 0x370   :  { %771 = vmatprep.subr.bf16.mxu0 %v2005_v15  ;;  %1536 = vmatprep.subr.bf16.mxu1 %v1913_v0 }
 0x373   :  { %772 = vmatpush1.bf16.msra.mxu0 %v2009_v16  ;;  %1537 = vmatpush3.bf16.msra.mxu1 %v2032_v23 }
 0x374   :  { %773 = vmatprep.subr.bf16.mxu0 %v2015_v18  ;;  %1538 = vmatprep.subr.bf16.mxu1 %v1913_v0 }
 0x377   :  { %774 = vmatpush1.bf16.msra.mxu0 %v2019_v19  ;;  %1539 = vmatpush3.bf16.msra.mxu1 %v2038_v24 }
 0x378   :  { %775 = vmatprep.subr.bf16.mxu0 %v2025_v21  ;;  %1540 = vmatprep.subr.bf16.mxu1 %v1913_v0 }
 0x37b   :  { %776 = vmatpush1.bf16.msra.mxu0 %v2029_v22  ;;  %1541 = vmatpush3.bf16.msra.mxu1 %v2044_v25 }
 0x37c   :  { %897 = vmatprep.subr.bf16.mxu0 %v1967_v2  ;;  %1546 = vmatprep.subr.bf16.mxu1 %v1913_v0 }
 0x431   :  { %v659_v55 = vpop.f32.mrb[12].mxu0  ;;  %v702_v33 = vpop.f32.mrb[12].mxu1 }
 0x432   :  { %v709_v35 = vadd.f32 %v659_v55, %v618_v54  ;;  %v661_v39 = vpop.f32.mrb[13].mxu0  ;;  %v1524_v40 = vpop.f32.mrb[13].mxu1  ;;  %v737_v62 = vadd.f32 %v2088_v51, %v702_v33 }
 0x433   :  { %v663_v41 = vpop.f32.mrb[14].mxu0  ;;  %v705_v43 = vpop.f32.mrb[14].mxu1  ;;  %v723_v48 = vadd.f32 %v661_v39, %v619_v36 }
 0x434   :  { %v1354_v44 = vmul.f32 -1.442695, %v709_v35  ;;  %v710_v45 = vadd.f32 %v663_v41, %v621_v34  ;;  %v665_v47 = vpop.f32.mrb[15].mxu0  ;;  %v1525_v42 = vpop.f32.mrb[15].mxu1  ;;  %v738_v29 = vadd.f32 %v2088_v51, %v705_v43 }
 0x435   :  { %v724_v52 = vadd.f32 %v665_v47, %v622_v46  ;;  %v1356_v53 = vmul.f32 -1.442695, %v723_v48 }
 0x436   :  { %1710 = vpow2.f32 %v1354_v44  ;;  %v1355_v50 = vmul.f32 -1.442695, %v710_v45 }
 0x437   :  { %v1357_v49 = vmul.f32 -1.442695, %v724_v52 }
 0x438   :  { %1712 = vpow2.f32 %v1355_v50 }
 0x439   :  { %1714 = vpow2.f32 %v1356_v53 }
 0x43a   :  { %1716 = vpow2.f32 %v1357_v49 }
 0x440   :  { %v1711_v56 = vpop.eup %1710 }
 0x441   :  { %v717_v37 = vadd.f32 1.0, %v1711_v56  ;;  %v756_v56 = vld [vmem:[#allocation2 + $0xd0] sm:$0xff] }
 0x442   :  { %v1713_v38 = vpop.eup %1712 }
 0x443   :  { %1718 = vrcp.f32 %v717_v37  ;;  %v718_v58 = vadd.f32 1.0, %v1713_v38  ;;  %v1715_v59 = vpop.eup %1714 }
 0x444   :  { %v1717_v60 = vpop.eup %1716  ;;  %v731_v61 = vadd.f32 1.0, %v1715_v59  ;;  %v759_v59 = vld [vmem:[#allocation2 + $0xe8] sm:$0xff] }
 0x445   :  { %1720 = vrcp.f32 %v718_v58  ;;  %v732_v57 = vadd.f32 1.0, %v1717_v60 }
 0x446   :  { %1722 = vrcp.f32 %v731_v61 }
 0x447   :  { %1724 = vrcp.f32 %v732_v57 }
 0x44d   :  { %v1719_v63 = vpop.eup %1718 }
 0x44e   :  { %v739_v28 = vmul.f32 %v1719_v63, %v737_v62 }
 0x44f   :  { %v1721_v26 = vpop.eup %1720 }
 0x450   :  { %v741_v54 = vadd.f32 %v739_v28, %v620_v27  ;;  %v740_v55 = vmul.f32 %v1721_v26, %v738_v29  ;;  %v1723_v35 = vpop.eup %1722 }
 0x451   :  { %v1725_v36 = vpop.eup %1724  ;;  %v745_v39 = vsub.f32 1.0, %v1723_v35  ;;  %v749_v44 = vmul.f32 %v1723_v35, %v2182_v30 }
 0x452   :  { %1726 = vtanh.f32 %v741_v54  ;;  %v742_v34 = vadd.f32 %v740_v55, %v623_v32  ;;  %v746_v33 = vsub.f32 1.0, %v1725_v36  ;;  %v750_v43 = vmul.f32 %v1725_v36, %v2184_v31 }
 0x454   :  { %1728 = vtanh.f32 %v742_v34 }
 0x45c   :  { %v1727_v40 = vpop.eup %1726 }
 0x45d   :  { %v747_v41 = vmul.f32 %v1727_v40, %v745_v39  ;;  %v2278_v40 = vld [vmem:[#allocation5] ss:$12 sps:$4 sm:$0xff]  }
 0x45e   :  { %v1729_v45 = vpop.eup %1728 }
 0x45f   :  { %v748_v46 = vmul.f32 %v1729_v45, %v746_v33  ;;  %v2227_v47 = vadd.f32 %v749_v44, %v747_v41  ;;  %v2281_v33 = vld [vmem:[#allocation5 + $0x8] ss:$12 sps:$4 sm:$0xff]   ;;  %v2291_v44 = vld [vmem:[#allocation5 + $0x18] ss:$12 sps:$4 sm:$0xff]   ;;  %v2294_v45 = vld [vmem:[#allocation5 + $0x20] ss:$12 sps:$4 sm:$0xff]  }
 0x460   :  { %v2284_v41 = vld [vmem:[#allocation5 + $0x1c] ss:$12 sps:$4 sm:$0xff]  }
 0x461   :  { %v2229_v42 = vadd.f32 %v750_v43, %v748_v46  ;;  %v2297_v46 = vld [vmem:[#allocation5 + $0x34] ss:$12 sps:$4 sm:$0xff]   ;;  %v2301_v43 = vld [vmem:[#allocation5 + $0x30] ss:$12 sps:$4 sm:$0xff]  }
 0x463   :  { %v760_v48 = vpack.c.bf16 %v2229_v42, %v2227_v47 }
 0x465   :  { %794 = vmatmul.mubr.bf16.vlgmr.msra.gmra.mrb[16].mxu0 %v760_v48  ;;  %1543 = vmatmul.mubr.bf16.vlgmr.msra.gmra.mrb[16].mxu1 %v760_v48  ;;  %v2311_v48 = vld [vmem:[#allocation5 + $0x48] ss:$12 sps:$4 sm:$0xff]  }
 0x466   :  { %898 = vmatpush1.bf16.msra.mxu0 %v1969_v3  ;;  %1547 = vmatpush3.bf16.msra.mxu1 %v1986_v9  ;;  %v754_v3 = vld [vmem:[#allocation2 + $0xc0] sm:$0xff] }
 0x467   :  { %899 = vmatprep.subr.bf16.mxu0 %v1972_v4  ;;  %1548 = vmatprep.subr.bf16.mxu1 %v1913_v0 }
 0x468   :  { %929 = vmatprep.mubr.bf16.mxu0 %v1914_v1  ;;  %1562 = vmatprep.mubr.msk.bf16.mxu1 %vm1915_vm0, %v1913_v0 }
 0x46a   :  { %900 = vmatpush1.bf16.msra.mxu0 %v1975_v5  ;;  %1549 = vmatpush3.bf16.msra.mxu1 %v1996_v12 }
 0x46b   :  { %901 = vmatprep.subr.bf16.mxu0 %v1978_v6  ;;  %1550 = vmatprep.subr.bf16.mxu1 %v1913_v0  ;;  %v757_v6 = vld [vmem:[#allocation2 + $0xd8] sm:$0xff] }
 0x46e   :  { %902 = vmatpush1.bf16.msra.mxu0 %v1981_v7  ;;  %1551 = vmatpush3.bf16.msra.mxu1 %v2002_v14 }
 0x46f   :  { %903 = vmatprep.subr.bf16.mxu0 %v1984_v8  ;;  %1552 = vmatprep.subr.bf16.mxu1 %v1913_v0  ;;  %v755_v8 = vld [vmem:[#allocation2 + $0xc8] sm:$0xff] }
 0x472   :  { %904 = vmatpush1.bf16.msra.mxu0 %v1989_v10  ;;  %1553 = vmatpush3.bf16.msra.mxu1 %v2012_v17 }
 0x473   :  { %905 = vmatprep.subr.bf16.mxu0 %v1993_v11  ;;  %1554 = vmatprep.subr.bf16.mxu1 %v1913_v0 }
 0x476   :  { %906 = vmatpush1.bf16.msra.mxu0 %v1998_v13  ;;  %1555 = vmatpush3.bf16.msra.mxu1 %v2022_v20 }
 0x477   :  { %907 = vmatprep.subr.bf16.mxu0 %v2005_v15  ;;  %1556 = vmatprep.subr.bf16.mxu1 %v1913_v0  ;;  %v758_v15 = vld [vmem:[#allocation2 + $0xe0] sm:$0xff] }
 0x47a   :  { %908 = vmatpush1.bf16.msra.mxu0 %v2009_v16  ;;  %1557 = vmatpush3.bf16.msra.mxu1 %v2032_v23 }
 0x47b   :  { %909 = vmatprep.subr.bf16.mxu0 %v2015_v18  ;;  %1558 = vmatprep.subr.bf16.mxu1 %v1913_v0 }
 0x47e   :  { %910 = vmatpush1.bf16.msra.mxu0 %v2019_v19  ;;  %1559 = vmatpush3.bf16.msra.mxu1 %v2038_v24 }
 0x47f   :  { %911 = vmatprep.subr.bf16.mxu0 %v2025_v21  ;;  %1560 = vmatprep.subr.bf16.mxu1 %v1913_v0 }
 0x482   :  { %912 = vmatpush1.bf16.msra.mxu0 %v2029_v22  ;;  %1561 = vmatpush3.bf16.msra.mxu1 %v2044_v25 }
 0x483   :  { %1033 = vmatprep.subr.bf16.mxu0 %v1967_v2  ;;  %1566 = vmatprep.subr.bf16.mxu1 %v1913_v0 }
 0x538   :  { %v795_v4 = vpop.f32.mrb[16].mxu0  ;;  %v838_v5 = vpop.f32.mrb[16].mxu1 }
 0x539   :  { %v845_v7 = vadd.f32 %v795_v4, %v754_v3  ;;  %v797_v9 = vpop.f32.mrb[17].mxu0  ;;  %v1544_v10 = vpop.f32.mrb[17].mxu1  ;;  %v873_v52 = vadd.f32 %v2088_v51, %v838_v5  ;;  %v2314_v3 = vld [vmem:[#allocation5 + $0x50] ss:$12 sps:$4 sm:$0xff]   ;;  %v2321_v5 = vld [vmem:[#allocation5 + $0x60] ss:$12 sps:$4 sm:$0xff]  }
 0x53a   :  { %v799_v11 = vpop.f32.mrb[18].mxu0  ;;  %v841_v12 = vpop.f32.mrb[18].mxu1  ;;  %v859_v18 = vadd.f32 %v797_v9, %v755_v8  ;;  %v2317_v4 = vld [vmem:[#allocation5 + $0x64] ss:$12 sps:$4 sm:$0xff]   ;;  %v2334_v9 = vld [vmem:[#allocation5 + $0x80] ss:$12 sps:$4 sm:$0xff]  }
 0x53b   :  { %v1358_v13 = vmul.f32 -1.442695, %v845_v7  ;;  %v846_v14 = vadd.f32 %v799_v11, %v757_v6  ;;  %v801_v16 = vpop.f32.mrb[19].mxu0  ;;  %v1545_v17 = vpop.f32.mrb[19].mxu1  ;;  %v874_v38 = vadd.f32 %v2088_v51, %v841_v12  ;;  %v2324_v6 = vld [vmem:[#allocation5 + $0x68] ss:$12 sps:$4 sm:$0xff]  }
 0x53c   :  { %v860_v19 = vadd.f32 %v801_v16, %v758_v15  ;;  %v1360_v20 = vmul.f32 -1.442695, %v859_v18  ;;  %v2327_v7 = vld [vmem:[#allocation5 + $0x7c] ss:$12 sps:$4 sm:$0xff]   ;;  %v2331_v8 = vld [vmem:[#allocation5 + $0x78] ss:$12 sps:$4 sm:$0xff]  }
 0x53d   :  { %1730 = vpow2.f32 %v1358_v13  ;;  %v1359_v2 = vmul.f32 -1.442695, %v846_v14  ;;  %v2337_v10 = vld [vmem:[#allocation5 + $0x94] ss:$12 sps:$4 sm:$0xff]   ;;  %v2341_v11 = vld [vmem:[#allocation5 + $0x90] ss:$12 sps:$4 sm:$0xff]  }
 0x53e   :  { %v1361_v21 = vmul.f32 -1.442695, %v860_v19  ;;  %v2344_v12 = vld [vmem:[#allocation5 + $0x98] ss:$12 sps:$4 sm:$0xff]   ;;  %v2351_v14 = vld [vmem:[#allocation5 + $0xa8] ss:$12 sps:$4 sm:$0xff]  }
 0x53f   :  { %1732 = vpow2.f32 %v1359_v2  ;;  %v2347_v13 = vld [vmem:[#allocation5 + $0xac] ss:$12 sps:$4 sm:$0xff]   ;;  %v2354_v15 = vld [vmem:[#allocation5 + $0xb0] ss:$12 sps:$4 sm:$0xff]  }
 0x540   :  { %1734 = vpow2.f32 %v1360_v20  ;;  %v1833_v16 = vld [vmem:[#allocation5 + $0x4] ss:$12 sps:$4 sm:$0xff]   ;;  %v893_v19 = vld [vmem:[#allocation2 + $0x108] sm:$0xff] }
 0x541   :  { %1736 = vpow2.f32 %v1361_v21  ;;  %v890_v17 = vld [vmem:[#allocation2 + $0xf0] sm:$0xff]  ;;  %v891_v21 = vld [vmem:[#allocation2 + $0xf8] sm:$0xff] }
 0x547   :  { %v1731_v22 = vpop.eup %1730 }
 0x548   :  { %v853_v23 = vadd.f32 1.0, %v1731_v22 }
 0x549   :  { %v1733_v24 = vpop.eup %1732 }
 0x54a   :  { %1738 = vrcp.f32 %v853_v23  ;;  %v854_v25 = vadd.f32 1.0, %v1733_v24  ;;  %v1735_v30 = vpop.eup %1734 }
 0x54b   :  { %v1737_v31 = vpop.eup %1736  ;;  %v867_v50 = vadd.f32 1.0, %v1735_v30 }
 0x54c   :  { %1740 = vrcp.f32 %v854_v25  ;;  %v868_v53 = vadd.f32 1.0, %v1737_v31 }
 0x54d   :  { %1742 = vrcp.f32 %v867_v50  ;;  %v894_v50 = vld [vmem:[#allocation2 + $0x110] sm:$0xff] }
 0x54e   :  { %1744 = vrcp.f32 %v868_v53 }
 0x554   :  { %v1739_v49 = vpop.eup %1738 }
 0x555   :  { %v875_v37 = vmul.f32 %v1739_v49, %v873_v52 }
 0x556   :  { %v1741_v58 = vpop.eup %1740 }
 0x557   :  { %v877_v60 = vadd.f32 %v875_v37, %v756_v56  ;;  %v876_v61 = vmul.f32 %v1741_v58, %v874_v38  ;;  %v1743_v57 = vpop.eup %1742 }
 0x558   :  { %v1745_v63 = vpop.eup %1744  ;;  %v881_v27 = vsub.f32 1.0, %v1743_v57  ;;  %v885_v32 = vmul.f32 %v1743_v57, %v2227_v47  ;;  %v2304_v47 = vld [vmem:[#allocation5 + $0x38] ss:$12 sps:$4 sm:$0xff]  }
 0x559   :  { %1746 = vtanh.f32 %v877_v60  ;;  %v878_v62 = vadd.f32 %v876_v61, %v759_v59  ;;  %v882_v29 = vsub.f32 1.0, %v1745_v63  ;;  %v886_v34 = vmul.f32 %v1745_v63, %v2229_v42  ;;  %v2307_v42 = vld [vmem:[#allocation5 + $0x4c] ss:$12 sps:$4 sm:$0xff]  }
 0x55b   :  { %1748 = vtanh.f32 %v878_v62 }
 0x563   :  { %v1747_v28 = vpop.eup %1746 }
 0x564   :  { %v883_v26 = vmul.f32 %v1747_v28, %v881_v27 }
 0x565   :  { %v1749_v54 = vpop.eup %1748 }
 0x566   :  { %v884_v55 = vmul.f32 %v1749_v54, %v882_v29  ;;  %v2272_v35 = vadd.f32 %v885_v32, %v883_v26  ;;  %v892_v32 = vld [vmem:[#allocation2 + $0x100] sm:$0xff] }
 0x568   :  { %v2274_v36 = vadd.f32 %v886_v34, %v884_v55 }
 0x56a   :  { %v896_v39 = vpack.c.bf16 %v2274_v36, %v2272_v35 }
 0x56c   :  { %930 = vmatmul.mubr.bf16.vlgmr.msra.gmra.mrb[20].mxu0 %v896_v39  ;;  %1563 = vmatmul.mubr.bf16.vlgmr.msra.gmra.mrb[20].mxu1 %v896_v39  ;;  %v895_v39 = vld [vmem:[#allocation2 + $0x118] sm:$0xff] }
 0x56d   :  { %1034 = vmatpush1.bf16.msra.mxu0 %v2278_v40  ;;  %1567 = vmatpush3.bf16.msra.mxu1 %v2281_v33 }
 0x56e   :  { %1035 = vmatprep.subr.bf16.mxu0 %v2284_v41  ;;  %1568 = vmatprep.subr.bf16.mxu1 %v1913_v0 }
 0x56f   :  { %1065 = vmatprep.mubr.bf16.mxu0 %v1914_v1  ;;  %1582 = vmatprep.mubr.msk.bf16.mxu1 %vm1915_vm0, %v1913_v0 }
 0x571   :  { %1036 = vmatpush1.bf16.msra.mxu0 %v2291_v44  ;;  %1569 = vmatpush3.bf16.msra.mxu1 %v2294_v45 }
 0x572   :  { %1037 = vmatprep.subr.bf16.mxu0 %v2297_v46  ;;  %1570 = vmatprep.subr.bf16.mxu1 %v1913_v0 }
 0x575   :  { %1038 = vmatpush1.bf16.msra.mxu0 %v2301_v43  ;;  %1571 = vmatpush3.bf16.msra.mxu1 %v2304_v47 }
 0x576   :  { %1039 = vmatprep.subr.bf16.mxu0 %v2307_v42  ;;  %1572 = vmatprep.subr.bf16.mxu1 %v1913_v0 }
 0x579   :  { %1040 = vmatpush1.bf16.msra.mxu0 %v2311_v48  ;;  %1573 = vmatpush3.bf16.msra.mxu1 %v2314_v3 }
 0x57a   :  { %1041 = vmatprep.subr.bf16.mxu0 %v2317_v4  ;;  %1574 = vmatprep.subr.bf16.mxu1 %v1913_v0 }
 0x57d   :  { %1042 = vmatpush1.bf16.msra.mxu0 %v2321_v5  ;;  %1575 = vmatpush3.bf16.msra.mxu1 %v2324_v6 }
 0x57e   :  { %1043 = vmatprep.subr.bf16.mxu0 %v2327_v7  ;;  %1576 = vmatprep.subr.bf16.mxu1 %v1913_v0 }
 0x581   :  { %1044 = vmatpush1.bf16.msra.mxu0 %v2331_v8  ;;  %1577 = vmatpush3.bf16.msra.mxu1 %v2334_v9 }
 0x582   :  { %1045 = vmatprep.subr.bf16.mxu0 %v2337_v10  ;;  %1578 = vmatprep.subr.bf16.mxu1 %v1913_v0 }
 0x585   :  { %1046 = vmatpush1.bf16.msra.mxu0 %v2341_v11  ;;  %1579 = vmatpush3.bf16.msra.mxu1 %v2344_v12 }
 0x586   :  { %1047 = vmatprep.subr.bf16.mxu0 %v2347_v13  ;;  %1580 = vmatprep.subr.bf16.mxu1 %v1913_v0 }
 0x589   :  { %1048 = vmatpush1.bf16.msra.mxu0 %v2351_v14  ;;  %1581 = vmatpush3.bf16.msra.mxu1 %v2354_v15 }
 0x58a   :  { %1169 = vmatprep.subr.bf16.mxu0 %v1833_v16  ;;  %1586 = vmatprep.subr.bf16.mxu1 %v1913_v0 }
 0x63f   :  { %v931_v18 = vpop.f32.mrb[20].mxu0  ;;  %v974_v2 = vpop.f32.mrb[20].mxu1 }
 0x640   :  { %v981_v20 = vadd.f32 %v931_v18, %v890_v17  ;;  %v933_v22 = vpop.f32.mrb[21].mxu0  ;;  %v1564_v23 = vpop.f32.mrb[21].mxu1  ;;  %v1009_v28 = vadd.f32 %v2088_v51, %v974_v2 }
 0x641   :  { %v935_v24 = vpop.f32.mrb[22].mxu0  ;;  %v977_v25 = vpop.f32.mrb[22].mxu1  ;;  %v995_v49 = vadd.f32 %v933_v22, %v891_v21 }
 0x642   :  { %v1362_v30 = vmul.f32 -1.442695, %v981_v20  ;;  %v982_v31 = vadd.f32 %v935_v24, %v893_v19  ;;  %v937_v52 = vpop.f32.mrb[23].mxu0  ;;  %v1565_v53 = vpop.f32.mrb[23].mxu1  ;;  %v1010_v55 = vadd.f32 %v2088_v51, %v977_v25 }
 0x643   :  { %v996_v37 = vadd.f32 %v937_v52, %v894_v50  ;;  %v1364_v38 = vmul.f32 -1.442695, %v995_v49  ;;  %v2404_v53 = vld [vmem:[%s2430_s2] ss:$0 sm:$0xff]  ;;  %s1916_s2 = smov [#allocation7]  }
 0x644   :  { %1750 = vpow2.f32 %v1362_v30  ;;  %v1363_v56 = vmul.f32 -1.442695, %v982_v31  ;;  %s1304_s15 = sshll.u32 %s1916_s2, 4  ;;  %s1305_s15 = int_to_ptr.vmem [resolvable:$true] %s1304_s15 }
 0x645   :  { %v1365_v58 = vmul.f32 -1.442695, %v996_v37  ;;  %s1879_s16 = scalar_lea.vmem %s1305_s15, 256  ;;  %p1884_p3 = scmp.lt.s32.totalorder %s1305_s15, %s1305_s15 }
 0x646   :  { %1752 = vpow2.f32 %v1363_v56  ;;  %p1880_p2 = scmp.ne.s32.totalorder %s1305_s15, %s1879_s16  ;;  %p1885_p4 = scmp.lt.s32.totalorder %s1879_s16, %s1879_s16 }
 0x647   :  { %1754 = vpow2.f32 %v1364_v38  ;;  %v1028_v38 = vld [vmem:[#allocation2 + $0x130] sm:$0xff] }
 0x648   :  { %1756 = vpow2.f32 %v1365_v58  ;;  %p1886_p5 = por %p1885_p4, %p1884_p3 }
 0x64a   :  { %p1887_p6 = pnand %p1886_p5, %p1880_p2 }
 0x64e   :  { %v1751_v59 = vpop.eup %1750 }
 0x64f   :  { %v989_v60 = vadd.f32 1.0, %v1751_v59 }
 0x650   :  { %v1753_v61 = vpop.eup %1752 }
 0x651   :  { %1758 = vrcp.f32 %v989_v60  ;;  %v990_v62 = vadd.f32 1.0, %v1753_v61  ;;  %v1755_v57 = vpop.eup %1754  ;;  %v1031_v61 = vld [vmem:[#allocation2 + $0x148] sm:$0xff] }
 0x652   :  { %v1757_v63 = vpop.eup %1756  ;;  %v1003_v27 = vadd.f32 1.0, %v1755_v57 }
 0x653   :  { %1760 = vrcp.f32 %v990_v62  ;;  %v1004_v29 = vadd.f32 1.0, %v1757_v63 }
 0x654   :  { %1762 = vrcp.f32 %v1003_v27 }
 0x655   :  { %1764 = vrcp.f32 %v1004_v29 }
 0x65b   :  { %v1759_v26 = vpop.eup %1758 }
 0x65c   :  { %v1011_v54 = vmul.f32 %v1759_v26, %v1009_v28 }
 0x65d   :  { %v1761_v34 = vpop.eup %1760 }
 0x65e   :  { %v1013_v16 = vadd.f32 %v1011_v54, %v892_v32  ;;  %v1012_v17 = vmul.f32 %v1761_v34, %v1010_v55  ;;  %v1763_v19 = vpop.eup %1762 }
 0x65f   :  { %v1765_v20 = vpop.eup %1764  ;;  %v1017_v21 = vsub.f32 1.0, %v1763_v19  ;;  %v1021_v24 = vmul.f32 %v1763_v19, %v2272_v35 }
 0x660   :  { %1766 = vtanh.f32 %v1013_v16  ;;  %v1014_v18 = vadd.f32 %v1012_v17, %v895_v39  ;;  %v1018_v2 = vsub.f32 1.0, %v1765_v20  ;;  %v1022_v51 = vmul.f32 %v1765_v20, %v2274_v36  ;;  %v1162_v20 = vld [vmem:[#allocation2 + $0x150] sm:$0xff] }
 0x662   :  { %1768 = vtanh.f32 %v1014_v18 }
 0x66a   :  { %v1767_v22 = vpop.eup %1766 }
 0x66b   :  { %v1019_v23 = vmul.f32 %v1767_v22, %v1017_v21 }
 0x66c   :  { %v1769_v30 = vpop.eup %1768 }
 0x66d   :  { %v1020_v31 = vmul.f32 %v1769_v30, %v1018_v2  ;;  %v2362_v25 = vadd.f32 %v1021_v24, %v1019_v23  ;;  %v1165_v2 = vld [vmem:[#allocation2 + $0x168] sm:$0xff]  ;;  %v1163_v24 = vld [vmem:[#allocation2 + $0x158] sm:$0xff] }
 0x66f   :  { %v2364_v50 = vadd.f32 %v1022_v51, %v1020_v31 }
 0x671   :  { %v1032_v52 = vpack.c.bf16 %v2364_v50, %v2362_v25 }
 0x673   :  { %1066 = vmatmul.mubr.bf16.vlgmr.msra.gmra.mrb[24].mxu0 %v1032_v52  ;;  %1583 = vmatmul.mubr.bf16.vlgmr.msra.gmra.mrb[24].mxu1 %v1032_v52 }
 0x674   :  { %1170 = vmatpush1.bf16.msra.mxu0 %v2278_v40  ;;  %1587 = vmatpush3.bf16.msra.mxu1 %v2281_v33  ;;  %v1029_v40 = vld [vmem:[#allocation2 + $0x138] sm:$0xff] }
 0x675   :  { %1171 = vmatprep.subr.bf16.mxu0 %v2284_v41  ;;  %1588 = vmatprep.subr.bf16.mxu1 %v1913_v0  ;;  %v1027_v41 = vld [vmem:[#allocation2 + $0x128] sm:$0xff] }
 0x676   :  { %1201 = vmatprep.mubr.bf16.mxu0 %v1914_v1  ;;  %1602 = vmatprep.mubr.msk.bf16.mxu1 %vm1915_vm0, %v1913_v0  ;;  %v1026_v1 = vld [vmem:[#allocation2 + $0x120] sm:$0xff] }
 0x678   :  { %1172 = vmatpush1.bf16.msra.mxu0 %v2291_v44  ;;  %1589 = vmatpush3.bf16.msra.mxu1 %v2294_v45 }
 0x679   :  { %1173 = vmatprep.subr.bf16.mxu0 %v2297_v46  ;;  %1590 = vmatprep.subr.bf16.mxu1 %v1913_v0 }
 0x67c   :  { %1174 = vmatpush1.bf16.msra.mxu0 %v2301_v43  ;;  %1591 = vmatpush3.bf16.msra.mxu1 %v2304_v47 }
 0x67d   :  { %1175 = vmatprep.subr.bf16.mxu0 %v2307_v42  ;;  %1592 = vmatprep.subr.bf16.mxu1 %v1913_v0 }
 0x680   :  { %1176 = vmatpush1.bf16.msra.mxu0 %v2311_v48  ;;  %1593 = vmatpush3.bf16.msra.mxu1 %v2314_v3  ;;  %v1030_v48 = vld [vmem:[#allocation2 + $0x140] sm:$0xff] }
 0x681   :  { %1177 = vmatprep.subr.bf16.mxu0 %v2317_v4  ;;  %1594 = vmatprep.subr.bf16.mxu1 %v1913_v0 }
 0x684   :  { %1178 = vmatpush1.bf16.msra.mxu0 %v2321_v5  ;;  %1595 = vmatpush3.bf16.msra.mxu1 %v2324_v6 }
 0x685   :  { %1179 = vmatprep.subr.bf16.mxu0 %v2327_v7  ;;  %1596 = vmatprep.subr.bf16.mxu1 %v1913_v0 }
 0x688   :  { %1180 = vmatpush1.bf16.msra.mxu0 %v2331_v8  ;;  %1597 = vmatpush3.bf16.msra.mxu1 %v2334_v9 }
 0x689   :  { %1181 = vmatprep.subr.bf16.mxu0 %v2337_v10  ;;  %1598 = vmatprep.subr.bf16.mxu1 %v1913_v0 }
 0x68c   :  { %1182 = vmatpush1.bf16.msra.mxu0 %v2341_v11  ;;  %1599 = vmatpush3.bf16.msra.mxu1 %v2344_v12 }
 0x68d   :  { %1183 = vmatprep.subr.bf16.mxu0 %v2347_v13  ;;  %1600 = vmatprep.subr.bf16.mxu1 %v1913_v0 }
 0x690   :  { %1184 = vmatpush1.bf16.msra.mxu0 %v2351_v14  ;;  %1601 = vmatpush3.bf16.msra.mxu1 %v2354_v15 }
 0x746   :  { %v1067_v35 = vpop.f32.mrb[24].mxu0  ;;  %v1110_v36 = vpop.f32.mrb[24].mxu1 }
 0x747   :  { %v1117_v33 = vadd.f32 %v1067_v35, %v1026_v1  ;;  %v1069_v44 = vpop.f32.mrb[25].mxu0  ;;  %v1584_v45 = vpop.f32.mrb[25].mxu1  ;;  %v1145_v49 = vadd.f32 %v2404_v53, %v1110_v36 }
 0x748   :  { %v1071_v46 = vpop.f32.mrb[26].mxu0  ;;  %v1113_v43 = vpop.f32.mrb[26].mxu1  ;;  %v1131_v0 = vadd.f32 %v1069_v44, %v1027_v41 }
 0x749   :  { %v1366_v47 = vmul.f32 -1.442695, %v1117_v33  ;;  %v1118_v42 = vadd.f32 %v1071_v46, %v1029_v40  ;;  %v1073_v3 = vpop.f32.mrb[27].mxu0  ;;  %v1585_v4 = vpop.f32.mrb[27].mxu1  ;;  %v1146_v59 = vadd.f32 %v2404_v53, %v1113_v43 }
 0x74a   :  { %v1132_v6 = vadd.f32 %v1073_v3, %v1030_v48  ;;  %v1368_v7 = vmul.f32 -1.442695, %v1131_v0 }
 0x74b   :  { %1770 = vpow2.f32 %v1366_v47  ;;  %v1367_v5 = vmul.f32 -1.442695, %v1118_v42 }
 0x74c   :  { %v1369_v8 = vmul.f32 -1.442695, %v1132_v6 }
 0x74d   :  { %1772 = vpow2.f32 %v1367_v5 }
 0x74e   :  { %1774 = vpow2.f32 %v1368_v7  ;;  %v1164_v7 = vld [vmem:[#allocation2 + $0x160] sm:$0xff] }
 0x74f   :  { %1776 = vpow2.f32 %v1369_v8 }
 0x755   :  { %v1771_v9 = vpop.eup %1770 }
 0x756   :  { %v1125_v10 = vadd.f32 1.0, %v1771_v9 }
 0x757   :  { %v1773_v11 = vpop.eup %1772 }
 0x758   :  { %1778 = vrcp.f32 %v1125_v10  ;;  %v1126_v12 = vadd.f32 1.0, %v1773_v11  ;;  %v1775_v13 = vpop.eup %1774  ;;  %v1167_v11 = vld [vmem:[#allocation2 + $0x178] sm:$0xff] }
 0x759   :  { %v1777_v14 = vpop.eup %1776  ;;  %v1139_v15 = vadd.f32 1.0, %v1775_v13 }
 0x75a   :  { %1780 = vrcp.f32 %v1126_v12  ;;  %v1140_v56 = vadd.f32 1.0, %v1777_v14 }
 0x75b   :  { %1782 = vrcp.f32 %v1139_v15 }
 0x75c   :  { %1784 = vrcp.f32 %v1140_v56 }
 0x762   :  { %v1779_v37 = vpop.eup %1778 }
 0x763   :  { %v1147_v58 = vmul.f32 %v1779_v37, %v1145_v49 }
 0x764   :  { %v1781_v60 = vpop.eup %1780 }
 0x765   :  { %v1149_v62 = vadd.f32 %v1147_v58, %v1028_v38  ;;  %v1148_v57 = vmul.f32 %v1781_v60, %v1146_v59  ;;  %v1783_v27 = vpop.eup %1782 }
 0x766   :  { %v1785_v28 = vpop.eup %1784  ;;  %v1153_v29 = vsub.f32 1.0, %v1783_v27  ;;  %v1157_v55 = vmul.f32 %v1783_v27, %v2362_v25 }
 0x767   :  { %1786 = vtanh.f32 %v1149_v62  ;;  %v1150_v63 = vadd.f32 %v1148_v57, %v1031_v61  ;;  %v1154_v32 = vsub.f32 1.0, %v1785_v28  ;;  %v1158_v16 = vmul.f32 %v1785_v28, %v2364_v50  ;;  %v1166_v50 = vld [vmem:[#allocation2 + $0x170] sm:$0xff] }
 0x769   :  { %1788 = vtanh.f32 %v1150_v63 }
 0x771   :  { %v1787_v26 = vpop.eup %1786 }
 0x772   :  { %v1155_v54 = vmul.f32 %v1787_v26, %v1153_v29 }
 0x773   :  { %v1789_v34 = vpop.eup %1788 }
 0x774   :  { %v1156_v39 = vmul.f32 %v1789_v34, %v1154_v32  ;;  %v1159_v17 = vadd.f32 %v1157_v55, %v1155_v54 }
 0x776   :  { %v2410_v18 = vadd.f32 %v1158_v16, %v1156_v39 }
 0x778   :  { %v1168_v19 = vpack.c.bf16 %v2410_v18, %v1159_v17 }
 0x77a   :  { %1202 = vmatmul.mubr.bf16.vlgmr.msra.gmra.mrb[28].mxu0 %v1168_v19  ;;  %1603 = vmatmul.mubr.bf16.vlgmr.msra.gmra.mrb[28].mxu1 %v1168_v19 }
 0x84d   :  { %v1203_v21 = vpop.f32.mrb[28].mxu0  ;;  %v1246_v22 = vpop.f32.mrb[28].mxu1 }
 0x84e   :  { %v1253_v23 = vadd.f32 %v1203_v21, %v1162_v20  ;;  %v1205_v30 = vpop.f32.mrb[29].mxu0  ;;  %v1604_v31 = vpop.f32.mrb[29].mxu1  ;;  %v1281_v0 = vadd.f32 %v2404_v53, %v1246_v22 }
 0x84f   :  { %v1207_v51 = vpop.f32.mrb[30].mxu0  ;;  %v1249_v25 = vpop.f32.mrb[30].mxu1  ;;  %v1267_v40 = vadd.f32 %v1205_v30, %v1163_v24 }
 0x850   :  { %v1370_v52 = vmul.f32 -1.442695, %v1253_v23  ;;  %v1254_v1 = vadd.f32 %v1207_v51, %v1165_v2  ;;  %v1209_v35 = vpop.f32.mrb[31].mxu0  ;;  %v1605_v36 = vpop.f32.mrb[31].mxu1  ;;  %v1282_v9 = vadd.f32 %v2404_v53, %v1249_v25 }
 0x851   :  { %v1268_v41 = vadd.f32 %v1209_v35, %v1166_v50  ;;  %v1372_v44 = vmul.f32 -1.442695, %v1267_v40 }
 0x852   :  { %1790 = vpow2.f32 %v1370_v52  ;;  %v1371_v33 = vmul.f32 -1.442695, %v1254_v1 }
 0x853   :  { %v1373_v45 = vmul.f32 -1.442695, %v1268_v41 }
 0x854   :  { %1792 = vpow2.f32 %v1371_v33 }
 0x855   :  { %1794 = vpow2.f32 %v1372_v44 }
 0x856   :  { %1796 = vpow2.f32 %v1373_v45 }
 0x85c   :  { %v1791_v46 = vpop.eup %1790 }
 0x85d   :  { %v1261_v43 = vadd.f32 1.0, %v1791_v46 }
 0x85e   :  { %v1793_v47 = vpop.eup %1792 }
 0x85f   :  { %1798 = vrcp.f32 %v1261_v43  ;;  %v1262_v42 = vadd.f32 1.0, %v1793_v47  ;;  %v1795_v48 = vpop.eup %1794 }
 0x860   :  { %v1797_v3 = vpop.eup %1796  ;;  %v1275_v4 = vadd.f32 1.0, %v1795_v48 }
 0x861   :  { %1800 = vrcp.f32 %v1262_v42  ;;  %v1276_v5 = vadd.f32 1.0, %v1797_v3 }
 0x862   :  { %1802 = vrcp.f32 %v1275_v4 }
 0x863   :  { %1804 = vrcp.f32 %v1276_v5 }
 0x869   :  { %v1799_v6 = vpop.eup %1798 }
 0x86a   :  { %v1283_v8 = vmul.f32 %v1799_v6, %v1281_v0 }
 0x86b   :  { %v1801_v10 = vpop.eup %1800 }
 0x86c   :  { %v1285_v12 = vadd.f32 %v1283_v8, %v1164_v7  ;;  %v1284_v13 = vmul.f32 %v1801_v10, %v1282_v9  ;;  %v1803_v15 = vpop.eup %1802 }
 0x86d   :  { %v1805_v49 = vpop.eup %1804  ;;  %v1289_v56 = vsub.f32 1.0, %v1803_v15  ;;  %v1293_v59 = vmul.f32 %v1803_v15, %v1159_v17 }
 0x86e   :  { %1806 = vtanh.f32 %v1285_v12  ;;  %v1286_v14 = vadd.f32 %v1284_v13, %v1167_v11  ;;  %v1290_v38 = vsub.f32 1.0, %v1805_v49  ;;  %v1294_v53 = vmul.f32 %v1805_v49, %v2410_v18 }
 0x870   :  { %1808 = vtanh.f32 %v1286_v14 }
 0x878   :  { %v1807_v37 = vpop.eup %1806 }
 0x879   :  { %v1291_v58 = vmul.f32 %v1807_v37, %v1289_v56 }
 0x87a   :  { %v1809_v60 = vpop.eup %1808 }
 0x87b   :  { %v1292_v61 = vmul.f32 %v1809_v60, %v1290_v38  ;;  %v1295_v62 = vadd.f32 %v1293_v59, %v1291_v58 }
 0x87d   :  { %v1296_v57 = vadd.f32 %v1294_v53, %v1292_v61  ;;  %1297 = vst [vmem:[#allocation7] sm:$0xff] %v1295_v62 }
 0x87f   :  { %1298 = vst [vmem:[#allocation7 + $0x8] sm:$0xff] %v1296_v57 }
 0x880   :  { %1890 = shalt.err (!%p1887_p6)
}
 0x881   :  { %s1891_s19 = scalar_lea.hbm %s2431_s3, 256 }
 0x882   :  { %p1892_p7 = scmp.ne.s32.totalorder %s2431_s3, %s1891_s19  ;;  %p1895_p8 = scmp.lt.u32.totalorder %s1891_s19, %s2431_s3 }
 0x884   :  { %p1897_p9 = pnand %p1895_p8, %p1892_p7 }
 0x886   :  { %1900 = shalt.err (!%p1897_p9)
}
 0x887   :  { %s1917_s24 = smov 128   ;;  %s1918_s25 = smov 8  }
 0x888   :  { %1310 = dma.vmem_to_hbm [thread:$0]  %s1305_s15, 256, %s2431_s3, [#allocation4], %s1917_s24, %s1917_s24, %s1918_s25  }
 0x889   :  { %1905 = dma.done.wait [#allocation4], 256  }
 0x88a   :  { %1906 = vsyncadd [#allocation4], 4294967040 }
 0x88b   :  { %1314 = vsyncpa [#allocation3], 1 }
 0x88c   :  { %1315 = vsyncpa [#allocation6], 1 }
 0x88d   :  { %1316 = vsyncpa [#allocation4], 1 }

// kernel: tpu_custom_call.1
= control target key start
LH: loop header
LB: loop body
LE: loop exit
PB: predicated region body
PF: predicated region fallthrough
CT: control target
= control target key end

     0   :  { %8 = vsyncpa [#allocation3], 0  ;;  %s2428_s0 = inlined_call_operand.hbm [shape: f32[8,16,384], index: 0, kind: input, shape index: {}]   ;;  %s2429_s1 = inlined_call_operand.hbm [shape: bf16[128,384], index: 1, kind: input, shape index: {}]   ;;  %s2430_s2 = inlined_call_operand.vmem [shape: f32[1,128], index: 2, kind: input, shape index: {}]   ;;  %s2431_s3 = inlined_call_operand.hbm [shape: f32[16,128], index: 3, kind: output, shape index: {}]  }
   0x1   :  { %9 = vsyncpa [#allocation6], 0 }
   0x2   :  { %10 = vsyncpa [#allocation4], 0  ;;  %s1907_s12 = smov [#allocation2]   ;;  %s1835_s16 = scalar_lea.hbm %s2428_s0, 6144 }
   0x3   :  { %s16_s13 = sshll.u32 %s1907_s12, 4  ;;  %p1836_p0 = scmp.ne.s32.totalorder %s2428_s0, %s1835_s16  ;;  %s17_s13 = int_to_ptr.vmem [resolvable:$true] %s16_s13 }
   0x4   :  { %p1839_p1 = scmp.lt.u32.totalorder %s1835_s16, %s2428_s0 }
   0x6   :  { %p1841_p2 = pnand %p1839_p1, %p1836_p0 }
   0x8   :  { %1844 = shalt.err (!%p1841_p2)
}
   0x9   :  { %s1845_s21 = scalar_lea.vmem %s17_s13, 6144  ;;  %p1850_p4 = scmp.lt.s32.totalorder %s17_s13, %s17_s13 }
   0xa   :  { %p1846_p3 = scmp.ne.s32.totalorder %s17_s13, %s1845_s21  ;;  %p1851_p5 = scmp.lt.s32.totalorder %s1845_s21, %s1845_s21 }
   0xc   :  { %p1852_p6 = por %p1851_p5, %p1850_p4 }
   0xe   :  { %p1853_p7 = pnand %p1852_p6, %p1846_p3 }
  0x10   :  { %1856 = shalt.err (!%p1853_p7)
}
  0x11   :  { %s1908_s22 = smov 384   ;;  %s1909_s23 = smov 24  }
  0x12   :  { %22 = dma.hbm_to_vmem [thread:$0]  %s2428_s0, 6144, %s17_s13, [#allocation3], %s1908_s22, %s1908_s22, %s1909_s23  }
  0x13   :  { %s1910_s26 = smov [#allocation5]   ;;  %s1857_s30 = scalar_lea.hbm %s2429_s1, 3072 }
  0x14   :  { %s28_s27 = sshll.u32 %s1910_s26, 4  ;;  %p1858_p8 = scmp.ne.s32.totalorder %s2429_s1, %s1857_s30  ;;  %s29_s27 = int_to_ptr.vmem [resolvable:$true] %s28_s27 }
  0x15   :  { %p1861_p9 = scmp.lt.u32.totalorder %s1857_s30, %s2429_s1 }
  0x17   :  { %p1863_p10 = pnand %p1861_p9, %p1858_p8 }
  0x19   :  { %1866 = shalt.err (!%p1863_p10)
}
  0x1a   :  { %s1867_s8 = scalar_lea.vmem %s29_s27, 3072  ;;  %p1872_p12 = scmp.lt.s32.totalorder %s29_s27, %s29_s27 }
  0x1b   :  { %p1868_p11 = scmp.ne.s32.totalorder %s29_s27, %s1867_s8  ;;  %p1873_p13 = scmp.lt.s32.totalorder %s1867_s8, %s1867_s8 }
  0x1d   :  { %p1874_p0 = por %p1873_p13, %p1872_p12 }
  0x1f   :  { %p1875_p1 = pnand %p1874_p0, %p1868_p11 }
  0x21   :  { %1878 = shalt.err (!%p1875_p1)
}
  0x22   :  { %s1911_s0 = smov 192   ;;  %s1912_s9 = smov 12  }
  0x23   :  { %34 = dma.hbm_to_vmem [thread:$0]  %s2429_s1, 3072, %s29_s27, [#allocation6], %s1911_s0, %s1911_s0, %s1912_s9  }
  0x24   :  { %1901 = dma.done.wait [#allocation3], 6144  }
  0x25   :  { %1902 = vsyncadd [#allocation3], 4294961152 }
  0x26   :  { %1903 = dma.done.wait [#allocation6], 3072  }
  0x27   :  { %1904 = vsyncadd [#allocation6], 4294964224  ;;  %v1913_v0 = vmov 0.0   ;;  %v1914_v1 = vmov 0   ;;  %vm1915_vm0 = vmmov 0   ;;  %v83_v26 = vld [vmem:[#allocation2] sm:$0xff] }
  0x28   :  { %1446 = vmatprep.subr.bf16.mxu1 %v1913_v0  ;;  %249 = vmatprep.mubr.bf16.mxu0 %v1914_v1  ;;  %v1967_v2 = vld [vmem:[#allocation5 + $0x4] ss:$12 sps:$4 sm:$0xff]   ;;  %v1969_v3 = vld [vmem:[#allocation5] ss:$12 sps:$4 sm:$0xff]   ;;  %v1972_v4 = vld [vmem:[#allocation5 + $0x1c] ss:$12 sps:$4 sm:$0xff]  }
  0x29   :  { %1462 = vmatprep.mubr.msk.bf16.mxu1 %vm1915_vm0, %v1913_v0  ;;  %217 = vmatprep.subr.bf16.mxu0 %v1967_v2  ;;  %v1975_v5 = vld [vmem:[#allocation5 + $0x18] ss:$12 sps:$4 sm:$0xff]   ;;  %v1978_v6 = vld [vmem:[#allocation5 + $0x34] ss:$12 sps:$4 sm:$0xff]   ;;  %v1981_v7 = vld [vmem:[#allocation5 + $0x30] ss:$12 sps:$4 sm:$0xff]  }
  0x2a   :  { %218 = vmatpush1.bf16.msra.mxu0 %v1969_v3  ;;  %v1984_v8 = vld [vmem:[#allocation5 + $0x4c] ss:$12 sps:$4 sm:$0xff]   ;;  %v1986_v9 = vld [vmem:[#allocation5 + $0x8] ss:$12 sps:$4 sm:$0xff]   ;;  %v1993_v11 = vld [vmem:[#allocation5 + $0x64] ss:$12 sps:$4 sm:$0xff]  }
  0x2b   :  { %219 = vmatprep.subr.bf16.mxu0 %v1972_v4  ;;  %v1989_v10 = vld [vmem:[#allocation5 + $0x48] ss:$12 sps:$4 sm:$0xff]   ;;  %1447 = vmatpush3.bf16.msra.mxu1 %v1986_v9  ;;  %v1996_v12 = vld [vmem:[#allocation5 + $0x20] ss:$12 sps:$4 sm:$0xff]   ;;  %v2002_v14 = vld [vmem:[#allocation5 + $0x38] ss:$12 sps:$4 sm:$0xff]  }
  0x2c   :  { %1448 = vmatprep.subr.bf16.mxu1 %v1913_v0  ;;  %v1998_v13 = vld [vmem:[#allocation5 + $0x60] ss:$12 sps:$4 sm:$0xff]   ;;  %v2005_v15 = vld [vmem:[#allocation5 + $0x7c] ss:$12 sps:$4 sm:$0xff]   ;;  %v2009_v16 = vld [vmem:[#allocation5 + $0x78] ss:$12 sps:$4 sm:$0xff]  }
  0x2d   :  { %v2012_v17 = vld [vmem:[#allocation5 + $0x50] ss:$12 sps:$4 sm:$0xff]   ;;  %v2015_v18 = vld [vmem:[#allocation5 + $0x94] ss:$12 sps:$4 sm:$0xff]   ;;  %v2025_v21 = vld [vmem:[#allocation5 + $0xac] ss:$12 sps:$4 sm:$0xff]  }
  0x2e   :  { %220 = vmatpush1.bf16.msra.mxu0 %v1975_v5  ;;  %v2019_v19 = vld [vmem:[#allocation5 + $0x90] ss:$12 sps:$4 sm:$0xff]   ;;  %v2022_v20 = vld [vmem:[#allocation5 + $0x68] ss:$12 sps:$4 sm:$0xff]   ;;  %v2032_v23 = vld [vmem:[#allocation5 + $0x80] ss:$12 sps:$4 sm:$0xff]  }
  0x2f   :  { %221 = vmatprep.subr.bf16.mxu0 %v1978_v6  ;;  %1449 = vmatpush3.bf16.msra.mxu1 %v1996_v12  ;;  %v2029_v22 = vld [vmem:[#allocation5 + $0xa8] ss:$12 sps:$4 sm:$0xff]   ;;  %v2038_v24 = vld [vmem:[#allocation5 + $0x98] ss:$12 sps:$4 sm:$0xff]   ;;  %v2044_v25 = vld [vmem:[#allocation5 + $0xb0] ss:$12 sps:$4 sm:$0xff]  }
  0x30   :  { %1450 = vmatprep.subr.bf16.mxu1 %v1913_v0  ;;  %v86_v28 = vld [vmem:[#allocation2 + $0x18] sm:$0xff]  ;;  %v84_v30 = vld [vmem:[#allocation2 + $0x8] sm:$0xff]  ;;  %v87_v35 = vld [vmem:[#allocation2 + $0x20] sm:$0xff] }
  0x31   :  { %v2088_v51 = vld [vmem:[%s2430_s2] ss:$0 sm:$0xff]  ;;  %v85_v57 = vld [vmem:[#allocation2 + $0x10] sm:$0xff]  ;;  %v88_v61 = vld [vmem:[#allocation2 + $0x28] sm:$0xff] }
  0x32   :  { %222 = vmatpush1.bf16.msra.mxu0 %v1981_v7 }
  0x33   :  { %223 = vmatprep.subr.bf16.mxu0 %v1984_v8  ;;  %1451 = vmatpush3.bf16.msra.mxu1 %v2002_v14 }
  0x34   :  { %1452 = vmatprep.subr.bf16.mxu1 %v1913_v0 }
  0x36   :  { %224 = vmatpush1.bf16.msra.mxu0 %v1989_v10 }
  0x37   :  { %225 = vmatprep.subr.bf16.mxu0 %v1993_v11  ;;  %1453 = vmatpush3.bf16.msra.mxu1 %v2012_v17 }
  0x38   :  { %1454 = vmatprep.subr.bf16.mxu1 %v1913_v0 }
  0x3a   :  { %226 = vmatpush1.bf16.msra.mxu0 %v1998_v13 }
  0x3b   :  { %227 = vmatprep.subr.bf16.mxu0 %v2005_v15  ;;  %1455 = vmatpush3.bf16.msra.mxu1 %v2022_v20 }
  0x3c   :  { %1456 = vmatprep.subr.bf16.mxu1 %v1913_v0 }
  0x3e   :  { %228 = vmatpush1.bf16.msra.mxu0 %v2009_v16 }
  0x3f   :  { %229 = vmatprep.subr.bf16.mxu0 %v2015_v18  ;;  %1457 = vmatpush3.bf16.msra.mxu1 %v2032_v23 }
  0x40   :  { %1458 = vmatprep.subr.bf16.mxu1 %v1913_v0 }
  0x42   :  { %230 = vmatpush1.bf16.msra.mxu0 %v2019_v19 }
  0x43   :  { %231 = vmatprep.subr.bf16.mxu0 %v2025_v21  ;;  %1459 = vmatpush3.bf16.msra.mxu1 %v2038_v24 }
  0x44   :  { %1460 = vmatprep.subr.bf16.mxu1 %v1913_v0 }
  0x46   :  { %232 = vmatpush1.bf16.msra.mxu0 %v2029_v22 }
  0x47   :  { %353 = vmatprep.subr.bf16.mxu0 %v1967_v2  ;;  %1461 = vmatpush3.bf16.msra.mxu1 %v2044_v25 }
  0x48   :  { %1466 = vmatprep.subr.bf16.mxu1 %v1913_v0 }
  0x49   :  { %250 = vmatmul.mubr.bf16.vlgmr.msra.gmra.mrb[0].mxu0 %v1914_v1 }
  0x4a   :  { %354 = vmatpush1.bf16.msra.mxu0 %v1969_v3  ;;  %385 = vmatprep.mubr.bf16.mxu0 %v1914_v1 }
  0x4b   :  { %355 = vmatprep.subr.bf16.mxu0 %v1972_v4  ;;  %1463 = vmatmul.mubr.bf16.vlgmr.msra.gmra.mrb[0].mxu1 %v1914_v1 }
  0x4c   :  { %1467 = vmatpush3.bf16.msra.mxu1 %v1986_v9  ;;  %1482 = vmatprep.mubr.msk.bf16.mxu1 %vm1915_vm0, %v1913_v0 }
  0x4d   :  { %1468 = vmatprep.subr.bf16.mxu1 %v1913_v0 }
  0x4e   :  { %356 = vmatpush1.bf16.msra.mxu0 %v1975_v5 }
  0x4f   :  { %357 = vmatprep.subr.bf16.mxu0 %v1978_v6 }
  0x50   :  { %1469 = vmatpush3.bf16.msra.mxu1 %v1996_v12 }
  0x51   :  { %1470 = vmatprep.subr.bf16.mxu1 %v1913_v0 }
  0x52   :  { %358 = vmatpush1.bf16.msra.mxu0 %v1981_v7 }
  0x53   :  { %359 = vmatprep.subr.bf16.mxu0 %v1984_v8 }
  0x54   :  { %1471 = vmatpush3.bf16.msra.mxu1 %v2002_v14 }
  0x55   :  { %1472 = vmatprep.subr.bf16.mxu1 %v1913_v0 }
  0x56   :  { %360 = vmatpush1.bf16.msra.mxu0 %v1989_v10 }
  0x57   :  { %361 = vmatprep.subr.bf16.mxu0 %v1993_v11 }
  0x58   :  { %1473 = vmatpush3.bf16.msra.mxu1 %v2012_v17 }
  0x59   :  { %1474 = vmatprep.subr.bf16.mxu1 %v1913_v0 }
  0x5a   :  { %362 = vmatpush1.bf16.msra.mxu0 %v1998_v13 }
  0x5b   :  { %363 = vmatprep.subr.bf16.mxu0 %v2005_v15 }
  0x5c   :  { %1475 = vmatpush3.bf16.msra.mxu1 %v2022_v20 }
  0x5d   :  { %1476 = vmatprep.subr.bf16.mxu1 %v1913_v0 }
  0x5e   :  { %364 = vmatpush1.bf16.msra.mxu0 %v2009_v16 }
  0x5f   :  { %365 = vmatprep.subr.bf16.mxu0 %v2015_v18 }
  0x60   :  { %1477 = vmatpush3.bf16.msra.mxu1 %v2032_v23 }
  0x61   :  { %1478 = vmatprep.subr.bf16.mxu1 %v1913_v0 }
  0x62   :  { %366 = vmatpush1.bf16.msra.mxu0 %v2019_v19 }
  0x63   :  { %367 = vmatprep.subr.bf16.mxu0 %v2025_v21 }
  0x64   :  { %1479 = vmatpush3.bf16.msra.mxu1 %v2038_v24 }
  0x65   :  { %1480 = vmatprep.subr.bf16.mxu1 %v1913_v0 }
  0x66   :  { %368 = vmatpush1.bf16.msra.mxu0 %v2029_v22 }
  0x67   :  { %489 = vmatprep.subr.bf16.mxu0 %v1967_v2 }
  0x68   :  { %1481 = vmatpush3.bf16.msra.mxu1 %v2044_v25 }
  0x69   :  { %1486 = vmatprep.subr.bf16.mxu1 %v1913_v0 }
 0x11c   :  { %v251_v27 = vpop.f32.mrb[0].mxu0 }
 0x11d   :  { %v301_v29 = vadd.f32 %v251_v27, %v83_v26  ;;  %v253_v31 = vpop.f32.mrb[1].mxu0 }
 0x11e   :  { %v255_v32 = vpop.f32.mrb[2].mxu0  ;;  %v315_v37 = vadd.f32 %v253_v31, %v84_v30  ;;  %v294_v41 = vpop.f32.mrb[0].mxu1 }
 0x11f   :  { %v1342_v33 = vmul.f32 -1.442695, %v301_v29  ;;  %v302_v34 = vadd.f32 %v255_v32, %v86_v28  ;;  %v257_v36 = vpop.f32.mrb[3].mxu0  ;;  %v1464_v42 = vpop.f32.mrb[1].mxu1  ;;  %v329_v54 = vadd.f32 %v2088_v51, %v294_v41 }
 0x120   :  { %v316_v39 = vadd.f32 %v257_v36, %v87_v35  ;;  %v1344_v40 = vmul.f32 -1.442695, %v315_v37  ;;  %v297_v44 = vpop.f32.mrb[2].mxu1 }
 0x121   :  { %1650 = vpow2.f32 %v1342_v33  ;;  %v1343_v38 = vmul.f32 -1.442695, %v302_v34  ;;  %v1465_v45 = vpop.f32.mrb[3].mxu1  ;;  %v330_v59 = vadd.f32 %v2088_v51, %v297_v44 }
 0x122   :  { %v1345_v43 = vmul.f32 -1.442695, %v316_v39  ;;  %v347_v45 = vld [vmem:[#allocation2 + $0x38] sm:$0xff] }
 0x123   :  { %1652 = vpow2.f32 %v1343_v38 }
 0x124   :  { %1654 = vpow2.f32 %v1344_v40  ;;  %v346_v40 = vld [vmem:[#allocation2 + $0x30] sm:$0xff] }
 0x125   :  { %1656 = vpow2.f32 %v1345_v43  ;;  %v349_v43 = vld [vmem:[#allocation2 + $0x48] sm:$0xff] }
 0x12b   :  { %v1651_v46 = vpop.eup %1650 }
 0x12c   :  { %v309_v47 = vadd.f32 1.0, %v1651_v46 }
 0x12d   :  { %v1653_v48 = vpop.eup %1652 }
 0x12e   :  { %1658 = vrcp.f32 %v309_v47  ;;  %v310_v49 = vadd.f32 1.0, %v1653_v48  ;;  %v1655_v50 = vpop.eup %1654 }
 0x12f   :  { %v1657_v52 = vpop.eup %1656  ;;  %v323_v53 = vadd.f32 1.0, %v1655_v50 }
 0x130   :  { %1660 = vrcp.f32 %v310_v49  ;;  %v324_v55 = vadd.f32 1.0, %v1657_v52 }
 0x131   :  { %1662 = vrcp.f32 %v323_v53  ;;  %v350_v53 = vld [vmem:[#allocation2 + $0x50] sm:$0xff] }
 0x132   :  { %1664 = vrcp.f32 %v324_v55 }
 0x138   :  { %v1659_v56 = vpop.eup %1658 }
 0x139   :  { %v331_v58 = vmul.f32 %v1659_v56, %v329_v54 }
 0x13a   :  { %v1661_v60 = vpop.eup %1660 }
 0x13b   :  { %v333_v62 = vadd.f32 %v331_v58, %v85_v57  ;;  %v332_v63 = vmul.f32 %v1661_v60, %v330_v59  ;;  %v1663_v27 = vpop.eup %1662 }
 0x13c   :  { %v1665_v28 = vpop.eup %1664  ;;  %v337_v29 = vsub.f32 1.0, %v1663_v27  ;;  %v341_v33 = vmul.f32 0.0, %v1663_v27 }
 0x13d   :  { %1666 = vtanh.f32 %v333_v62  ;;  %v334_v26 = vadd.f32 %v332_v63, %v88_v61  ;;  %v338_v31 = vsub.f32 1.0, %v1665_v28  ;;  %v342_v36 = vmul.f32 0.0, %v1665_v28 }
 0x13f   :  { %1668 = vtanh.f32 %v334_v26 }
 0x147   :  { %v1667_v30 = vpop.eup %1666 }
 0x148   :  { %v339_v32 = vmul.f32 %v1667_v30, %v337_v29 }
 0x149   :  { %v1669_v34 = vpop.eup %1668 }
 0x14a   :  { %v340_v35 = vmul.f32 %v1669_v34, %v338_v31  ;;  %v2092_v37 = vadd.f32 %v341_v33, %v339_v32  ;;  %v348_v33 = vld [vmem:[#allocation2 + $0x40] sm:$0xff] }
 0x14c   :  { %v2094_v38 = vadd.f32 %v342_v36, %v340_v35 }
 0x14e   :  { %v352_v39 = vpack.c.bf16 %v2094_v38, %v2092_v37 }
 0x150   :  { %386 = vmatmul.mubr.bf16.vlgmr.msra.gmra.mrb[4].mxu0 %v352_v39  ;;  %1483 = vmatmul.mubr.bf16.vlgmr.msra.gmra.mrb[4].mxu1 %v352_v39  ;;  %v351_v39 = vld [vmem:[#allocation2 + $0x58] sm:$0xff] }
 0x151   :  { %490 = vmatpush1.bf16.msra.mxu0 %v1969_v3  ;;  %1487 = vmatpush3.bf16.msra.mxu1 %v1986_v9 }
 0x152   :  { %491 = vmatprep.subr.bf16.mxu0 %v1972_v4  ;;  %1488 = vmatprep.subr.bf16.mxu1 %v1913_v0 }
 0x153   :  { %521 = vmatprep.mubr.bf16.mxu0 %v1914_v1  ;;  %1502 = vmatprep.mubr.msk.bf16.mxu1 %vm1915_vm0, %v1913_v0 }
 0x155   :  { %492 = vmatpush1.bf16.msra.mxu0 %v1975_v5  ;;  %1489 = vmatpush3.bf16.msra.mxu1 %v1996_v12 }
 0x156   :  { %493 = vmatprep.subr.bf16.mxu0 %v1978_v6  ;;  %1490 = vmatprep.subr.bf16.mxu1 %v1913_v0 }
 0x159   :  { %494 = vmatpush1.bf16.msra.mxu0 %v1981_v7  ;;  %1491 = vmatpush3.bf16.msra.mxu1 %v2002_v14 }
 0x15a   :  { %495 = vmatprep.subr.bf16.mxu0 %v1984_v8  ;;  %1492 = vmatprep.subr.bf16.mxu1 %v1913_v0 }
 0x15d   :  { %496 = vmatpush1.bf16.msra.mxu0 %v1989_v10  ;;  %1493 = vmatpush3.bf16.msra.mxu1 %v2012_v17 }
 0x15e   :  { %497 = vmatprep.subr.bf16.mxu0 %v1993_v11  ;;  %1494 = vmatprep.subr.bf16.mxu1 %v1913_v0 }
 0x161   :  { %498 = vmatpush1.bf16.msra.mxu0 %v1998_v13  ;;  %1495 = vmatpush3.bf16.msra.mxu1 %v2022_v20 }
 0x162   :  { %499 = vmatprep.subr.bf16.mxu0 %v2005_v15  ;;  %1496 = vmatprep.subr.bf16.mxu1 %v1913_v0 }
 0x165   :  { %500 = vmatpush1.bf16.msra.mxu0 %v2009_v16  ;;  %1497 = vmatpush3.bf16.msra.mxu1 %v2032_v23 }
 0x166   :  { %501 = vmatprep.subr.bf16.mxu0 %v2015_v18  ;;  %1498 = vmatprep.subr.bf16.mxu1 %v1913_v0 }
 0x169   :  { %502 = vmatpush1.bf16.msra.mxu0 %v2019_v19  ;;  %1499 = vmatpush3.bf16.msra.mxu1 %v2038_v24 }
 0x16a   :  { %503 = vmatprep.subr.bf16.mxu0 %v2025_v21  ;;  %1500 = vmatprep.subr.bf16.mxu1 %v1913_v0 }
 0x16d   :  { %504 = vmatpush1.bf16.msra.mxu0 %v2029_v22  ;;  %1501 = vmatpush3.bf16.msra.mxu1 %v2044_v25 }
 0x16e   :  { %625 = vmatprep.subr.bf16.mxu0 %v1967_v2  ;;  %1506 = vmatprep.subr.bf16.mxu1 %v1913_v0 }
 0x223   :  { %v387_v41 = vpop.f32.mrb[4].mxu0  ;;  %v430_v42 = vpop.f32.mrb[4].mxu1 }
 0x224   :  { %v437_v44 = vadd.f32 %v387_v41, %v346_v40  ;;  %v389_v46 = vpop.f32.mrb[5].mxu0  ;;  %v1484_v47 = vpop.f32.mrb[5].mxu1  ;;  %v465_v30 = vadd.f32 %v2088_v51, %v430_v42 }
 0x225   :  { %v391_v48 = vpop.f32.mrb[6].mxu0  ;;  %v433_v49 = vpop.f32.mrb[6].mxu1  ;;  %v451_v56 = vadd.f32 %v389_v46, %v347_v45 }
 0x226   :  { %v1346_v50 = vmul.f32 -1.442695, %v437_v44  ;;  %v438_v52 = vadd.f32 %v391_v48, %v349_v43  ;;  %v393_v54 = vpop.f32.mrb[7].mxu0  ;;  %v1485_v55 = vpop.f32.mrb[7].mxu1  ;;  %v466_v35 = vadd.f32 %v2088_v51, %v433_v49 }
 0x227   :  { %v452_v58 = vadd.f32 %v393_v54, %v350_v53  ;;  %v1348_v59 = vmul.f32 -1.442695, %v451_v56 }
 0x228   :  { %1670 = vpow2.f32 %v1346_v50  ;;  %v1347_v57 = vmul.f32 -1.442695, %v438_v52 }
 0x229   :  { %v1349_v60 = vmul.f32 -1.442695, %v452_v58  ;;  %v485_v58 = vld [vmem:[#allocation2 + $0x78] sm:$0xff] }
 0x22a   :  { %1672 = vpow2.f32 %v1347_v57 }
 0x22b   :  { %1674 = vpow2.f32 %v1348_v59 }
 0x22c   :  { %1676 = vpow2.f32 %v1349_v60  ;;  %v483_v60 = vld [vmem:[#allocation2 + $0x68] sm:$0xff] }
 0x232   :  { %v1671_v61 = vpop.eup %1670 }
 0x233   :  { %v445_v62 = vadd.f32 1.0, %v1671_v61 }
 0x234   :  { %v1673_v63 = vpop.eup %1672 }
 0x235   :  { %1678 = vrcp.f32 %v445_v62  ;;  %v446_v26 = vadd.f32 1.0, %v1673_v63  ;;  %v1675_v27 = vpop.eup %1674 }
 0x236   :  { %v1677_v28 = vpop.eup %1676  ;;  %v459_v29 = vadd.f32 1.0, %v1675_v27 }
 0x237   :  { %1680 = vrcp.f32 %v446_v26  ;;  %v460_v31 = vadd.f32 1.0, %v1677_v28 }
 0x238   :  { %1682 = vrcp.f32 %v459_v29  ;;  %v486_v29 = vld [vmem:[#allocation2 + $0x80] sm:$0xff] }
 0x239   :  { %1684 = vrcp.f32 %v460_v31 }
 0x23f   :  { %v1679_v32 = vpop.eup %1678 }
 0x240   :  { %v467_v34 = vmul.f32 %v1679_v32, %v465_v30 }
 0x241   :  { %v1681_v36 = vpop.eup %1680 }
 0x242   :  { %v469_v40 = vadd.f32 %v467_v34, %v348_v33  ;;  %v468_v41 = vmul.f32 %v1681_v36, %v466_v35  ;;  %v1683_v44 = vpop.eup %1682 }
 0x243   :  { %v1685_v45 = vpop.eup %1684  ;;  %v473_v46 = vsub.f32 1.0, %v1683_v44  ;;  %v477_v50 = vmul.f32 %v1683_v44, %v2092_v37  ;;  %v482_v37 = vld [vmem:[#allocation2 + $0x60] sm:$0xff] }
 0x244   :  { %1686 = vtanh.f32 %v469_v40  ;;  %v470_v43 = vadd.f32 %v468_v41, %v351_v39  ;;  %v474_v42 = vsub.f32 1.0, %v1685_v45  ;;  %v478_v49 = vmul.f32 %v1685_v45, %v2094_v38 }
 0x246   :  { %1688 = vtanh.f32 %v470_v43 }
 0x24e   :  { %v1687_v47 = vpop.eup %1686 }
 0x24f   :  { %v475_v48 = vmul.f32 %v1687_v47, %v473_v46 }
 0x250   :  { %v1689_v52 = vpop.eup %1688 }
 0x251   :  { %v476_v53 = vmul.f32 %v1689_v52, %v474_v42  ;;  %v2137_v54 = vadd.f32 %v477_v50, %v475_v48  ;;  %v484_v50 = vld [vmem:[#allocation2 + $0x70] sm:$0xff] }
 0x253   :  { %v2139_v55 = vadd.f32 %v478_v49, %v476_v53 }
 0x255   :  { %v488_v56 = vpack.c.bf16 %v2139_v55, %v2137_v54 }
 0x257   :  { %522 = vmatmul.mubr.bf16.vlgmr.msra.gmra.mrb[8].mxu0 %v488_v56  ;;  %1503 = vmatmul.mubr.bf16.vlgmr.msra.gmra.mrb[8].mxu1 %v488_v56  ;;  %v487_v56 = vld [vmem:[#allocation2 + $0x88] sm:$0xff] }
 0x258   :  { %626 = vmatpush1.bf16.msra.mxu0 %v1969_v3  ;;  %1507 = vmatpush3.bf16.msra.mxu1 %v1986_v9 }
 0x259   :  { %627 = vmatprep.subr.bf16.mxu0 %v1972_v4  ;;  %1508 = vmatprep.subr.bf16.mxu1 %v1913_v0 }
 0x25a   :  { %657 = vmatprep.mubr.bf16.mxu0 %v1914_v1  ;;  %1522 = vmatprep.mubr.msk.bf16.mxu1 %vm1915_vm0, %v1913_v0 }
 0x25c   :  { %628 = vmatpush1.bf16.msra.mxu0 %v1975_v5  ;;  %1509 = vmatpush3.bf16.msra.mxu1 %v1996_v12 }
 0x25d   :  { %629 = vmatprep.subr.bf16.mxu0 %v1978_v6  ;;  %1510 = vmatprep.subr.bf16.mxu1 %v1913_v0 }
 0x260   :  { %630 = vmatpush1.bf16.msra.mxu0 %v1981_v7  ;;  %1511 = vmatpush3.bf16.msra.mxu1 %v2002_v14 }
 0x261   :  { %631 = vmatprep.subr.bf16.mxu0 %v1984_v8  ;;  %1512 = vmatprep.subr.bf16.mxu1 %v1913_v0 }
 0x264   :  { %632 = vmatpush1.bf16.msra.mxu0 %v1989_v10  ;;  %1513 = vmatpush3.bf16.msra.mxu1 %v2012_v17 }
 0x265   :  { %633 = vmatprep.subr.bf16.mxu0 %v1993_v11  ;;  %1514 = vmatprep.subr.bf16.mxu1 %v1913_v0 }
 0x268   :  { %634 = vmatpush1.bf16.msra.mxu0 %v1998_v13  ;;  %1515 = vmatpush3.bf16.msra.mxu1 %v2022_v20 }
 0x269   :  { %635 = vmatprep.subr.bf16.mxu0 %v2005_v15  ;;  %1516 = vmatprep.subr.bf16.mxu1 %v1913_v0 }
 0x26c   :  { %636 = vmatpush1.bf16.msra.mxu0 %v2009_v16  ;;  %1517 = vmatpush3.bf16.msra.mxu1 %v2032_v23 }
 0x26d   :  { %637 = vmatprep.subr.bf16.mxu0 %v2015_v18  ;;  %1518 = vmatprep.subr.bf16.mxu1 %v1913_v0 }
 0x270   :  { %638 = vmatpush1.bf16.msra.mxu0 %v2019_v19  ;;  %1519 = vmatpush3.bf16.msra.mxu1 %v2038_v24 }
 0x271   :  { %639 = vmatprep.subr.bf16.mxu0 %v2025_v21  ;;  %1520 = vmatprep.subr.bf16.mxu1 %v1913_v0 }
 0x274   :  { %640 = vmatpush1.bf16.msra.mxu0 %v2029_v22  ;;  %1521 = vmatpush3.bf16.msra.mxu1 %v2044_v25 }
 0x275   :  { %761 = vmatprep.subr.bf16.mxu0 %v1967_v2  ;;  %1526 = vmatprep.subr.bf16.mxu1 %v1913_v0 }
 0x32a   :  { %v523_v38 = vpop.f32.mrb[8].mxu0  ;;  %v566_v57 = vpop.f32.mrb[8].mxu1 }
 0x32b   :  { %v573_v59 = vadd.f32 %v523_v38, %v482_v37  ;;  %v525_v61 = vpop.f32.mrb[9].mxu0  ;;  %v1504_v62 = vpop.f32.mrb[9].mxu1  ;;  %v601_v47 = vadd.f32 %v2088_v51, %v566_v57 }
 0x32c   :  { %v527_v63 = vpop.f32.mrb[10].mxu0  ;;  %v569_v26 = vpop.f32.mrb[10].mxu1  ;;  %v587_v32 = vadd.f32 %v525_v61, %v483_v60 }
 0x32d   :  { %v1350_v27 = vmul.f32 -1.442695, %v573_v59  ;;  %v574_v28 = vadd.f32 %v527_v63, %v485_v58  ;;  %v529_v30 = vpop.f32.mrb[11].mxu0  ;;  %v1505_v31 = vpop.f32.mrb[11].mxu1  ;;  %v602_v53 = vadd.f32 %v2088_v51, %v569_v26 }
 0x32e   :  { %v588_v34 = vadd.f32 %v529_v30, %v486_v29  ;;  %v1352_v35 = vmul.f32 -1.442695, %v587_v32 }
 0x32f   :  { %1690 = vpow2.f32 %v1350_v27  ;;  %v1351_v33 = vmul.f32 -1.442695, %v574_v28 }
 0x330   :  { %v1353_v36 = vmul.f32 -1.442695, %v588_v34  ;;  %v621_v34 = vld [vmem:[#allocation2 + $0xa8] sm:$0xff] }
 0x331   :  { %1692 = vpow2.f32 %v1351_v33 }
 0x332   :  { %1694 = vpow2.f32 %v1352_v35 }
 0x333   :  { %1696 = vpow2.f32 %v1353_v36  ;;  %v619_v36 = vld [vmem:[#allocation2 + $0x98] sm:$0xff] }
 0x339   :  { %v1691_v39 = vpop.eup %1690 }
 0x33a   :  { %v581_v40 = vadd.f32 1.0, %v1691_v39 }
 0x33b   :  { %v1693_v41 = vpop.eup %1692 }
 0x33c   :  { %1698 = vrcp.f32 %v581_v40  ;;  %v582_v43 = vadd.f32 1.0, %v1693_v41  ;;  %v1695_v44 = vpop.eup %1694 }
 0x33d   :  { %v1697_v45 = vpop.eup %1696  ;;  %v595_v46 = vadd.f32 1.0, %v1695_v44 }
 0x33e   :  { %1700 = vrcp.f32 %v582_v43  ;;  %v596_v42 = vadd.f32 1.0, %v1697_v45 }
 0x33f   :  { %1702 = vrcp.f32 %v595_v46  ;;  %v622_v46 = vld [vmem:[#allocation2 + $0xb0] sm:$0xff] }
 0x340   :  { %1704 = vrcp.f32 %v596_v42 }
 0x346   :  { %v1699_v48 = vpop.eup %1698 }
 0x347   :  { %v603_v52 = vmul.f32 %v1699_v48, %v601_v47 }
 0x348   :  { %v1701_v49 = vpop.eup %1700 }
 0x349   :  { %v605_v37 = vadd.f32 %v603_v52, %v484_v50  ;;  %v604_v38 = vmul.f32 %v1701_v49, %v602_v53  ;;  %v1703_v59 = vpop.eup %1702 }
 0x34a   :  { %v1705_v60 = vpop.eup %1704  ;;  %v609_v61 = vsub.f32 1.0, %v1703_v59  ;;  %v613_v27 = vmul.f32 %v1703_v59, %v2137_v54  ;;  %v618_v54 = vld [vmem:[#allocation2 + $0x90] sm:$0xff] }
 0x34b   :  { %1706 = vtanh.f32 %v605_v37  ;;  %v606_v58 = vadd.f32 %v604_v38, %v487_v56  ;;  %v610_v57 = vsub.f32 1.0, %v1705_v60  ;;  %v614_v26 = vmul.f32 %v1705_v60, %v2139_v55 }
 0x34d   :  { %1708 = vtanh.f32 %v606_v58 }
 0x355   :  { %v1707_v62 = vpop.eup %1706 }
 0x356   :  { %v611_v63 = vmul.f32 %v1707_v62, %v609_v61 }
 0x357   :  { %v1709_v28 = vpop.eup %1708 }
 0x358   :  { %v612_v29 = vmul.f32 %v1709_v28, %v610_v57  ;;  %v2182_v30 = vadd.f32 %v613_v27, %v611_v63  ;;  %v620_v27 = vld [vmem:[#allocation2 + $0xa0] sm:$0xff] }
 0x35a   :  { %v2184_v31 = vadd.f32 %v614_v26, %v612_v29 }
 0x35c   :  { %v624_v32 = vpack.c.bf16 %v2184_v31, %v2182_v30 }
 0x35e   :  { %658 = vmatmul.mubr.bf16.vlgmr.msra.gmra.mrb[12].mxu0 %v624_v32  ;;  %1523 = vmatmul.mubr.bf16.vlgmr.msra.gmra.mrb[12].mxu1 %v624_v32  ;;  %v623_v32 = vld [vmem:[#allocation2 + $0xb8] sm:$0xff] }
 0x35f   :  { %762 = vmatpush1.bf16.msra.mxu0 %v1969_v3  ;;  %1527 = vmatpush3.bf16.msra.mxu1 %v1986_v9 }
 0x360   :  { %763 = vmatprep.subr.bf16.mxu0 %v1972_v4  ;;  %1528 = vmatprep.subr.bf16.mxu1 %v1913_v0 }
 0x361   :  { %793 = vmatprep.mubr.bf16.mxu0 %v1914_v1  ;;  %1542 = vmatprep.mubr.msk.bf16.mxu1 %vm1915_vm0, %v1913_v0 }
 0x363   :  { %764 = vmatpush1.bf16.msra.mxu0 %v1975_v5  ;;  %1529 = vmatpush3.bf16.msra.mxu1 %v1996_v12 }
 0x364   :  { %765 = vmatprep.subr.bf16.mxu0 %v1978_v6  ;;  %1530 = vmatprep.subr.bf16.mxu1 %v1913_v0 }
 0x367   :  { %766 = vmatpush1.bf16.msra.mxu0 %v1981_v7  ;;  %1531 = vmatpush3.bf16.msra.mxu1 %v2002_v14 }
 0x368   :  { %767 = vmatprep.subr.bf16.mxu0 %v1984_v8  ;;  %1532 = vmatprep.subr.bf16.mxu1 %v1913_v0 }
 0x36b   :  { %768 = vmatpush1.bf16.msra.mxu0 %v1989_v10  ;;  %1533 = vmatpush3.bf16.msra.mxu1 %v2012_v17 }
 0x36c   :  { %769 = vmatprep.subr.bf16.mxu0 %v1993_v11  ;;  %1534 = vmatprep.subr.bf16.mxu1 %v1913_v0 }
 0x36f   :  { %770 = vmatpush1.bf16.msra.mxu0 %v1998_v13  ;;  %1535 = vmatpush3.bf16.msra.mxu1 %v2022_v20 }
 0x370   :  { %771 = vmatprep.subr.bf16.mxu0 %v2005_v15  ;;  %1536 = vmatprep.subr.bf16.mxu1 %v1913_v0 }
 0x373   :  { %772 = vmatpush1.bf16.msra.mxu0 %v2009_v16  ;;  %1537 = vmatpush3.bf16.msra.mxu1 %v2032_v23 }
 0x374   :  { %773 = vmatprep.subr.bf16.mxu0 %v2015_v18  ;;  %1538 = vmatprep.subr.bf16.mxu1 %v1913_v0 }
 0x377   :  { %774 = vmatpush1.bf16.msra.mxu0 %v2019_v19  ;;  %1539 = vmatpush3.bf16.msra.mxu1 %v2038_v24 }
 0x378   :  { %775 = vmatprep.subr.bf16.mxu0 %v2025_v21  ;;  %1540 = vmatprep.subr.bf16.mxu1 %v1913_v0 }
 0x37b   :  { %776 = vmatpush1.bf16.msra.mxu0 %v2029_v22  ;;  %1541 = vmatpush3.bf16.msra.mxu1 %v2044_v25 }
 0x37c   :  { %897 = vmatprep.subr.bf16.mxu0 %v1967_v2  ;;  %1546 = vmatprep.subr.bf16.mxu1 %v1913_v0 }
 0x431   :  { %v659_v55 = vpop.f32.mrb[12].mxu0  ;;  %v702_v33 = vpop.f32.mrb[12].mxu1 }
 0x432   :  { %v709_v35 = vadd.f32 %v659_v55, %v618_v54  ;;  %v661_v39 = vpop.f32.mrb[13].mxu0  ;;  %v1524_v40 = vpop.f32.mrb[13].mxu1  ;;  %v737_v62 = vadd.f32 %v2088_v51, %v702_v33 }
 0x433   :  { %v663_v41 = vpop.f32.mrb[14].mxu0  ;;  %v705_v43 = vpop.f32.mrb[14].mxu1  ;;  %v723_v48 = vadd.f32 %v661_v39, %v619_v36 }
 0x434   :  { %v1354_v44 = vmul.f32 -1.442695, %v709_v35  ;;  %v710_v45 = vadd.f32 %v663_v41, %v621_v34  ;;  %v665_v47 = vpop.f32.mrb[15].mxu0  ;;  %v1525_v42 = vpop.f32.mrb[15].mxu1  ;;  %v738_v29 = vadd.f32 %v2088_v51, %v705_v43 }
 0x435   :  { %v724_v52 = vadd.f32 %v665_v47, %v622_v46  ;;  %v1356_v53 = vmul.f32 -1.442695, %v723_v48 }
 0x436   :  { %1710 = vpow2.f32 %v1354_v44  ;;  %v1355_v50 = vmul.f32 -1.442695, %v710_v45 }
 0x437   :  { %v1357_v49 = vmul.f32 -1.442695, %v724_v52 }
 0x438   :  { %1712 = vpow2.f32 %v1355_v50 }
 0x439   :  { %1714 = vpow2.f32 %v1356_v53 }
 0x43a   :  { %1716 = vpow2.f32 %v1357_v49 }
 0x440   :  { %v1711_v56 = vpop.eup %1710 }
 0x441   :  { %v717_v37 = vadd.f32 1.0, %v1711_v56  ;;  %v756_v56 = vld [vmem:[#allocation2 + $0xd0] sm:$0xff] }
 0x442   :  { %v1713_v38 = vpop.eup %1712 }
 0x443   :  { %1718 = vrcp.f32 %v717_v37  ;;  %v718_v58 = vadd.f32 1.0, %v1713_v38  ;;  %v1715_v59 = vpop.eup %1714 }
 0x444   :  { %v1717_v60 = vpop.eup %1716  ;;  %v731_v61 = vadd.f32 1.0, %v1715_v59  ;;  %v759_v59 = vld [vmem:[#allocation2 + $0xe8] sm:$0xff] }
 0x445   :  { %1720 = vrcp.f32 %v718_v58  ;;  %v732_v57 = vadd.f32 1.0, %v1717_v60 }
 0x446   :  { %1722 = vrcp.f32 %v731_v61 }
 0x447   :  { %1724 = vrcp.f32 %v732_v57 }
 0x44d   :  { %v1719_v63 = vpop.eup %1718 }
 0x44e   :  { %v739_v28 = vmul.f32 %v1719_v63, %v737_v62 }
 0x44f   :  { %v1721_v26 = vpop.eup %1720 }
 0x450   :  { %v741_v54 = vadd.f32 %v739_v28, %v620_v27  ;;  %v740_v55 = vmul.f32 %v1721_v26, %v738_v29  ;;  %v1723_v35 = vpop.eup %1722 }
 0x451   :  { %v1725_v36 = vpop.eup %1724  ;;  %v745_v39 = vsub.f32 1.0, %v1723_v35  ;;  %v749_v44 = vmul.f32 %v1723_v35, %v2182_v30 }
 0x452   :  { %1726 = vtanh.f32 %v741_v54  ;;  %v742_v34 = vadd.f32 %v740_v55, %v623_v32  ;;  %v746_v33 = vsub.f32 1.0, %v1725_v36  ;;  %v750_v43 = vmul.f32 %v1725_v36, %v2184_v31 }
 0x454   :  { %1728 = vtanh.f32 %v742_v34 }
 0x45c   :  { %v1727_v40 = vpop.eup %1726 }
 0x45d   :  { %v747_v41 = vmul.f32 %v1727_v40, %v745_v39  ;;  %v2278_v40 = vld [vmem:[#allocation5] ss:$12 sps:$4 sm:$0xff]  }
 0x45e   :  { %v1729_v45 = vpop.eup %1728 }
 0x45f   :  { %v748_v46 = vmul.f32 %v1729_v45, %v746_v33  ;;  %v2227_v47 = vadd.f32 %v749_v44, %v747_v41  ;;  %v2281_v33 = vld [vmem:[#allocation5 + $0x8] ss:$12 sps:$4 sm:$0xff]   ;;  %v2291_v44 = vld [vmem:[#allocation5 + $0x18] ss:$12 sps:$4 sm:$0xff]   ;;  %v2294_v45 = vld [vmem:[#allocation5 + $0x20] ss:$12 sps:$4 sm:$0xff]  }
 0x460   :  { %v2284_v41 = vld [vmem:[#allocation5 + $0x1c] ss:$12 sps:$4 sm:$0xff]  }
 0x461   :  { %v2229_v42 = vadd.f32 %v750_v43, %v748_v46  ;;  %v2297_v46 = vld [vmem:[#allocation5 + $0x34] ss:$12 sps:$4 sm:$0xff]   ;;  %v2301_v43 = vld [vmem:[#allocation5 + $0x30] ss:$12 sps:$4 sm:$0xff]  }
 0x463   :  { %v760_v48 = vpack.c.bf16 %v2229_v42, %v2227_v47 }
 0x465   :  { %794 = vmatmul.mubr.bf16.vlgmr.msra.gmra.mrb[16].mxu0 %v760_v48  ;;  %1543 = vmatmul.mubr.bf16.vlgmr.msra.gmra.mrb[16].mxu1 %v760_v48  ;;  %v2311_v48 = vld [vmem:[#allocation5 + $0x48] ss:$12 sps:$4 sm:$0xff]  }
 0x466   :  { %898 = vmatpush1.bf16.msra.mxu0 %v1969_v3  ;;  %1547 = vmatpush3.bf16.msra.mxu1 %v1986_v9  ;;  %v754_v3 = vld [vmem:[#allocation2 + $0xc0] sm:$0xff] }
 0x467   :  { %899 = vmatprep.subr.bf16.mxu0 %v1972_v4  ;;  %1548 = vmatprep.subr.bf16.mxu1 %v1913_v0 }
 0x468   :  { %929 = vmatprep.mubr.bf16.mxu0 %v1914_v1  ;;  %1562 = vmatprep.mubr.msk.bf16.mxu1 %vm1915_vm0, %v1913_v0 }
 0x46a   :  { %900 = vmatpush1.bf16.msra.mxu0 %v1975_v5  ;;  %1549 = vmatpush3.bf16.msra.mxu1 %v1996_v12 }
 0x46b   :  { %901 = vmatprep.subr.bf16.mxu0 %v1978_v6  ;;  %1550 = vmatprep.subr.bf16.mxu1 %v1913_v0  ;;  %v757_v6 = vld [vmem:[#allocation2 + $0xd8] sm:$0xff] }
 0x46e   :  { %902 = vmatpush1.bf16.msra.mxu0 %v1981_v7  ;;  %1551 = vmatpush3.bf16.msra.mxu1 %v2002_v14 }
 0x46f   :  { %903 = vmatprep.subr.bf16.mxu0 %v1984_v8  ;;  %1552 = vmatprep.subr.bf16.mxu1 %v1913_v0  ;;  %v755_v8 = vld [vmem:[#allocation2 + $0xc8] sm:$0xff] }
 0x472   :  { %904 = vmatpush1.bf16.msra.mxu0 %v1989_v10  ;;  %1553 = vmatpush3.bf16.msra.mxu1 %v2012_v17 }
 0x473   :  { %905 = vmatprep.subr.bf16.mxu0 %v1993_v11  ;;  %1554 = vmatprep.subr.bf16.mxu1 %v1913_v0 }
 0x476   :  { %906 = vmatpush1.bf16.msra.mxu0 %v1998_v13  ;;  %1555 = vmatpush3.bf16.msra.mxu1 %v2022_v20 }
 0x477   :  { %907 = vmatprep.subr.bf16.mxu0 %v2005_v15  ;;  %1556 = vmatprep.subr.bf16.mxu1 %v1913_v0  ;;  %v758_v15 = vld [vmem:[#allocation2 + $0xe0] sm:$0xff] }
 0x47a   :  { %908 = vmatpush1.bf16.msra.mxu0 %v2009_v16  ;;  %1557 = vmatpush3.bf16.msra.mxu1 %v2032_v23 }
 0x47b   :  { %909 = vmatprep.subr.bf16.mxu0 %v2015_v18  ;;  %1558 = vmatprep.subr.bf16.mxu1 %v1913_v0 }
 0x47e   :  { %910 = vmatpush1.bf16.msra.mxu0 %v2019_v19  ;;  %1559 = vmatpush3.bf16.msra.mxu1 %v2038_v24 }
 0x47f   :  { %911 = vmatprep.subr.bf16.mxu0 %v2025_v21  ;;  %1560 = vmatprep.subr.bf16.mxu1 %v1913_v0 }
 0x482   :  { %912 = vmatpush1.bf16.msra.mxu0 %v2029_v22  ;;  %1561 = vmatpush3.bf16.msra.mxu1 %v2044_v25 }
 0x483   :  { %1033 = vmatprep.subr.bf16.mxu0 %v1967_v2  ;;  %1566 = vmatprep.subr.bf16.mxu1 %v1913_v0 }
 0x538   :  { %v795_v4 = vpop.f32.mrb[16].mxu0  ;;  %v838_v5 = vpop.f32.mrb[16].mxu1 }
 0x539   :  { %v845_v7 = vadd.f32 %v795_v4, %v754_v3  ;;  %v797_v9 = vpop.f32.mrb[17].mxu0  ;;  %v1544_v10 = vpop.f32.mrb[17].mxu1  ;;  %v873_v52 = vadd.f32 %v2088_v51, %v838_v5  ;;  %v2314_v3 = vld [vmem:[#allocation5 + $0x50] ss:$12 sps:$4 sm:$0xff]   ;;  %v2321_v5 = vld [vmem:[#allocation5 + $0x60] ss:$12 sps:$4 sm:$0xff]  }
 0x53a   :  { %v799_v11 = vpop.f32.mrb[18].mxu0  ;;  %v841_v12 = vpop.f32.mrb[18].mxu1  ;;  %v859_v18 = vadd.f32 %v797_v9, %v755_v8  ;;  %v2317_v4 = vld [vmem:[#allocation5 + $0x64] ss:$12 sps:$4 sm:$0xff]   ;;  %v2334_v9 = vld [vmem:[#allocation5 + $0x80] ss:$12 sps:$4 sm:$0xff]  }
 0x53b   :  { %v1358_v13 = vmul.f32 -1.442695, %v845_v7  ;;  %v846_v14 = vadd.f32 %v799_v11, %v757_v6  ;;  %v801_v16 = vpop.f32.mrb[19].mxu0  ;;  %v1545_v17 = vpop.f32.mrb[19].mxu1  ;;  %v874_v38 = vadd.f32 %v2088_v51, %v841_v12  ;;  %v2324_v6 = vld [vmem:[#allocation5 + $0x68] ss:$12 sps:$4 sm:$0xff]  }
 0x53c   :  { %v860_v19 = vadd.f32 %v801_v16, %v758_v15  ;;  %v1360_v20 = vmul.f32 -1.442695, %v859_v18  ;;  %v2327_v7 = vld [vmem:[#allocation5 + $0x7c] ss:$12 sps:$4 sm:$0xff]   ;;  %v2331_v8 = vld [vmem:[#allocation5 + $0x78] ss:$12 sps:$4 sm:$0xff]  }
 0x53d   :  { %1730 = vpow2.f32 %v1358_v13  ;;  %v1359_v2 = vmul.f32 -1.442695, %v846_v14  ;;  %v2337_v10 = vld [vmem:[#allocation5 + $0x94] ss:$12 sps:$4 sm:$0xff]   ;;  %v2341_v11 = vld [vmem:[#allocation5 + $0x90] ss:$12 sps:$4 sm:$0xff]  }
 0x53e   :  { %v1361_v21 = vmul.f32 -1.442695, %v860_v19  ;;  %v2344_v12 = vld [vmem:[#allocation5 + $0x98] ss:$12 sps:$4 sm:$0xff]   ;;  %v2351_v14 = vld [vmem:[#allocation5 + $0xa8] ss:$12 sps:$4 sm:$0xff]  }
 0x53f   :  { %1732 = vpow2.f32 %v1359_v2  ;;  %v2347_v13 = vld [vmem:[#allocation5 + $0xac] ss:$12 sps:$4 sm:$0xff]   ;;  %v2354_v15 = vld [vmem:[#allocation5 + $0xb0] ss:$12 sps:$4 sm:$0xff]  }
 0x540   :  { %1734 = vpow2.f32 %v1360_v20  ;;  %v1833_v16 = vld [vmem:[#allocation5 + $0x4] ss:$12 sps:$4 sm:$0xff]   ;;  %v893_v19 = vld [vmem:[#allocation2 + $0x108] sm:$0xff] }
 0x541   :  { %1736 = vpow2.f32 %v1361_v21  ;;  %v890_v17 = vld [vmem:[#allocation2 + $0xf0] sm:$0xff]  ;;  %v891_v21 = vld [vmem:[#allocation2 + $0xf8] sm:$0xff] }
 0x547   :  { %v1731_v22 = vpop.eup %1730 }
 0x548   :  { %v853_v23 = vadd.f32 1.0, %v1731_v22 }
 0x549   :  { %v1733_v24 = vpop.eup %1732 }
 0x54a   :  { %1738 = vrcp.f32 %v853_v23  ;;  %v854_v25 = vadd.f32 1.0, %v1733_v24  ;;  %v1735_v30 = vpop.eup %1734 }
 0x54b   :  { %v1737_v31 = vpop.eup %1736  ;;  %v867_v50 = vadd.f32 1.0, %v1735_v30 }
 0x54c   :  { %1740 = vrcp.f32 %v854_v25  ;;  %v868_v53 = vadd.f32 1.0, %v1737_v31 }
 0x54d   :  { %1742 = vrcp.f32 %v867_v50  ;;  %v894_v50 = vld [vmem:[#allocation2 + $0x110] sm:$0xff] }
 0x54e   :  { %1744 = vrcp.f32 %v868_v53 }
 0x554   :  { %v1739_v49 = vpop.eup %1738 }
 0x555   :  { %v875_v37 = vmul.f32 %v1739_v49, %v873_v52 }
 0x556   :  { %v1741_v58 = vpop.eup %1740 }
 0x557   :  { %v877_v60 = vadd.f32 %v875_v37, %v756_v56  ;;  %v876_v61 = vmul.f32 %v1741_v58, %v874_v38  ;;  %v1743_v57 = vpop.eup %1742 }
 0x558   :  { %v1745_v63 = vpop.eup %1744  ;;  %v881_v27 = vsub.f32 1.0, %v1743_v57  ;;  %v885_v32 = vmul.f32 %v1743_v57, %v2227_v47  ;;  %v2304_v47 = vld [vmem:[#allocation5 + $0x38] ss:$12 sps:$4 sm:$0xff]  }
 0x559   :  { %1746 = vtanh.f32 %v877_v60  ;;  %v878_v62 = vadd.f32 %v876_v61, %v759_v59  ;;  %v882_v29 = vsub.f32 1.0, %v1745_v63  ;;  %v886_v34 = vmul.f32 %v1745_v63, %v2229_v42  ;;  %v2307_v42 = vld [vmem:[#allocation5 + $0x4c] ss:$12 sps:$4 sm:$0xff]  }
 0x55b   :  { %1748 = vtanh.f32 %v878_v62 }
 0x563   :  { %v1747_v28 = vpop.eup %1746 }
 0x564   :  { %v883_v26 = vmul.f32 %v1747_v28, %v881_v27 }
 0x565   :  { %v1749_v54 = vpop.eup %1748 }
 0x566   :  { %v884_v55 = vmul.f32 %v1749_v54, %v882_v29  ;;  %v2272_v35 = vadd.f32 %v885_v32, %v883_v26  ;;  %v892_v32 = vld [vmem:[#allocation2 + $0x100] sm:$0xff] }
 0x568   :  { %v2274_v36 = vadd.f32 %v886_v34, %v884_v55 }
 0x56a   :  { %v896_v39 = vpack.c.bf16 %v2274_v36, %v2272_v35 }
 0x56c   :  { %930 = vmatmul.mubr.bf16.vlgmr.msra.gmra.mrb[20].mxu0 %v896_v39  ;;  %1563 = vmatmul.mubr.bf16.vlgmr.msra.gmra.mrb[20].mxu1 %v896_v39  ;;  %v895_v39 = vld [vmem:[#allocation2 + $0x118] sm:$0xff] }
 0x56d   :  { %1034 = vmatpush1.bf16.msra.mxu0 %v2278_v40  ;;  %1567 = vmatpush3.bf16.msra.mxu1 %v2281_v33 }
 0x56e   :  { %1035 = vmatprep.subr.bf16.mxu0 %v2284_v41  ;;  %1568 = vmatprep.subr.bf16.mxu1 %v1913_v0 }
 0x56f   :  { %1065 = vmatprep.mubr.bf16.mxu0 %v1914_v1  ;;  %1582 = vmatprep.mubr.msk.bf16.mxu1 %vm1915_vm0, %v1913_v0 }
 0x571   :  { %1036 = vmatpush1.bf16.msra.mxu0 %v2291_v44  ;;  %1569 = vmatpush3.bf16.msra.mxu1 %v2294_v45 }
 0x572   :  { %1037 = vmatprep.subr.bf16.mxu0 %v2297_v46  ;;  %1570 = vmatprep.subr.bf16.mxu1 %v1913_v0 }
 0x575   :  { %1038 = vmatpush1.bf16.msra.mxu0 %v2301_v43  ;;  %1571 = vmatpush3.bf16.msra.mxu1 %v2304_v47 }
 0x576   :  { %1039 = vmatprep.subr.bf16.mxu0 %v2307_v42  ;;  %1572 = vmatprep.subr.bf16.mxu1 %v1913_v0 }
 0x579   :  { %1040 = vmatpush1.bf16.msra.mxu0 %v2311_v48  ;;  %1573 = vmatpush3.bf16.msra.mxu1 %v2314_v3 }
 0x57a   :  { %1041 = vmatprep.subr.bf16.mxu0 %v2317_v4  ;;  %1574 = vmatprep.subr.bf16.mxu1 %v1913_v0 }
 0x57d   :  { %1042 = vmatpush1.bf16.msra.mxu0 %v2321_v5  ;;  %1575 = vmatpush3.bf16.msra.mxu1 %v2324_v6 }
 0x57e   :  { %1043 = vmatprep.subr.bf16.mxu0 %v2327_v7  ;;  %1576 = vmatprep.subr.bf16.mxu1 %v1913_v0 }
 0x581   :  { %1044 = vmatpush1.bf16.msra.mxu0 %v2331_v8  ;;  %1577 = vmatpush3.bf16.msra.mxu1 %v2334_v9 }
 0x582   :  { %1045 = vmatprep.subr.bf16.mxu0 %v2337_v10  ;;  %1578 = vmatprep.subr.bf16.mxu1 %v1913_v0 }
 0x585   :  { %1046 = vmatpush1.bf16.msra.mxu0 %v2341_v11  ;;  %1579 = vmatpush3.bf16.msra.mxu1 %v2344_v12 }
 0x586   :  { %1047 = vmatprep.subr.bf16.mxu0 %v2347_v13  ;;  %1580 = vmatprep.subr.bf16.mxu1 %v1913_v0 }
 0x589   :  { %1048 = vmatpush1.bf16.msra.mxu0 %v2351_v14  ;;  %1581 = vmatpush3.bf16.msra.mxu1 %v2354_v15 }
 0x58a   :  { %1169 = vmatprep.subr.bf16.mxu0 %v1833_v16  ;;  %1586 = vmatprep.subr.bf16.mxu1 %v1913_v0 }
 0x63f   :  { %v931_v18 = vpop.f32.mrb[20].mxu0  ;;  %v974_v2 = vpop.f32.mrb[20].mxu1 }
 0x640   :  { %v981_v20 = vadd.f32 %v931_v18, %v890_v17  ;;  %v933_v22 = vpop.f32.mrb[21].mxu0  ;;  %v1564_v23 = vpop.f32.mrb[21].mxu1  ;;  %v1009_v28 = vadd.f32 %v2088_v51, %v974_v2 }
 0x641   :  { %v935_v24 = vpop.f32.mrb[22].mxu0  ;;  %v977_v25 = vpop.f32.mrb[22].mxu1  ;;  %v995_v49 = vadd.f32 %v933_v22, %v891_v21 }
 0x642   :  { %v1362_v30 = vmul.f32 -1.442695, %v981_v20  ;;  %v982_v31 = vadd.f32 %v935_v24, %v893_v19  ;;  %v937_v52 = vpop.f32.mrb[23].mxu0  ;;  %v1565_v53 = vpop.f32.mrb[23].mxu1  ;;  %v1010_v55 = vadd.f32 %v2088_v51, %v977_v25 }
 0x643   :  { %v996_v37 = vadd.f32 %v937_v52, %v894_v50  ;;  %v1364_v38 = vmul.f32 -1.442695, %v995_v49  ;;  %v2404_v53 = vld [vmem:[%s2430_s2] ss:$0 sm:$0xff]  ;;  %s1916_s2 = smov [#allocation7]  }
 0x644   :  { %1750 = vpow2.f32 %v1362_v30  ;;  %v1363_v56 = vmul.f32 -1.442695, %v982_v31  ;;  %s1304_s15 = sshll.u32 %s1916_s2, 4  ;;  %s1305_s15 = int_to_ptr.vmem [resolvable:$true] %s1304_s15 }
 0x645   :  { %v1365_v58 = vmul.f32 -1.442695, %v996_v37  ;;  %s1879_s16 = scalar_lea.vmem %s1305_s15, 256  ;;  %p1884_p3 = scmp.lt.s32.totalorder %s1305_s15, %s1305_s15 }
 0x646   :  { %1752 = vpow2.f32 %v1363_v56  ;;  %p1880_p2 = scmp.ne.s32.totalorder %s1305_s15, %s1879_s16  ;;  %p1885_p4 = scmp.lt.s32.totalorder %s1879_s16, %s1879_s16 }
 0x647   :  { %1754 = vpow2.f32 %v1364_v38  ;;  %v1028_v38 = vld [vmem:[#allocation2 + $0x130] sm:$0xff] }
 0x648   :  { %1756 = vpow2.f32 %v1365_v58  ;;  %p1886_p5 = por %p1885_p4, %p1884_p3 }
 0x64a   :  { %p1887_p6 = pnand %p1886_p5, %p1880_p2 }
 0x64e   :  { %v1751_v59 = vpop.eup %1750 }
 0x64f   :  { %v989_v60 = vadd.f32 1.0, %v1751_v59 }
 0x650   :  { %v1753_v61 = vpop.eup %1752 }
 0x651   :  { %1758 = vrcp.f32 %v989_v60  ;;  %v990_v62 = vadd.f32 1.0, %v1753_v61  ;;  %v1755_v57 = vpop.eup %1754  ;;  %v1031_v61 = vld [vmem:[#allocation2 + $0x148] sm:$0xff] }
 0x652   :  { %v1757_v63 = vpop.eup %1756  ;;  %v1003_v27 = vadd.f32 1.0, %v1755_v57 }
 0x653   :  { %1760 = vrcp.f32 %v990_v62  ;;  %v1004_v29 = vadd.f32 1.0, %v1757_v63 }
 0x654   :  { %1762 = vrcp.f32 %v1003_v27 }
 0x655   :  { %1764 = vrcp.f32 %v1004_v29 }
 0x65b   :  { %v1759_v26 = vpop.eup %1758 }
 0x65c   :  { %v1011_v54 = vmul.f32 %v1759_v26, %v1009_v28 }
 0x65d   :  { %v1761_v34 = vpop.eup %1760 }
 0x65e   :  { %v1013_v16 = vadd.f32 %v1011_v54, %v892_v32  ;;  %v1012_v17 = vmul.f32 %v1761_v34, %v1010_v55  ;;  %v1763_v19 = vpop.eup %1762 }
 0x65f   :  { %v1765_v20 = vpop.eup %1764  ;;  %v1017_v21 = vsub.f32 1.0, %v1763_v19  ;;  %v1021_v24 = vmul.f32 %v1763_v19, %v2272_v35 }
 0x660   :  { %1766 = vtanh.f32 %v1013_v16  ;;  %v1014_v18 = vadd.f32 %v1012_v17, %v895_v39  ;;  %v1018_v2 = vsub.f32 1.0, %v1765_v20  ;;  %v1022_v51 = vmul.f32 %v1765_v20, %v2274_v36  ;;  %v1162_v20 = vld [vmem:[#allocation2 + $0x150] sm:$0xff] }
 0x662   :  { %1768 = vtanh.f32 %v1014_v18 }
 0x66a   :  { %v1767_v22 = vpop.eup %1766 }
 0x66b   :  { %v1019_v23 = vmul.f32 %v1767_v22, %v1017_v21 }
 0x66c   :  { %v1769_v30 = vpop.eup %1768 }
 0x66d   :  { %v1020_v31 = vmul.f32 %v1769_v30, %v1018_v2  ;;  %v2362_v25 = vadd.f32 %v1021_v24, %v1019_v23  ;;  %v1165_v2 = vld [vmem:[#allocation2 + $0x168] sm:$0xff]  ;;  %v1163_v24 = vld [vmem:[#allocation2 + $0x158] sm:$0xff] }
 0x66f   :  { %v2364_v50 = vadd.f32 %v1022_v51, %v1020_v31 }
 0x671   :  { %v1032_v52 = vpack.c.bf16 %v2364_v50, %v2362_v25 }
 0x673   :  { %1066 = vmatmul.mubr.bf16.vlgmr.msra.gmra.mrb[24].mxu0 %v1032_v52  ;;  %1583 = vmatmul.mubr.bf16.vlgmr.msra.gmra.mrb[24].mxu1 %v1032_v52 }
 0x674   :  { %1170 = vmatpush1.bf16.msra.mxu0 %v2278_v40  ;;  %1587 = vmatpush3.bf16.msra.mxu1 %v2281_v33  ;;  %v1029_v40 = vld [vmem:[#allocation2 + $0x138] sm:$0xff] }
 0x675   :  { %1171 = vmatprep.subr.bf16.mxu0 %v2284_v41  ;;  %1588 = vmatprep.subr.bf16.mxu1 %v1913_v0  ;;  %v1027_v41 = vld [vmem:[#allocation2 + $0x128] sm:$0xff] }
 0x676   :  { %1201 = vmatprep.mubr.bf16.mxu0 %v1914_v1  ;;  %1602 = vmatprep.mubr.msk.bf16.mxu1 %vm1915_vm0, %v1913_v0  ;;  %v1026_v1 = vld [vmem:[#allocation2 + $0x120] sm:$0xff] }
 0x678   :  { %1172 = vmatpush1.bf16.msra.mxu0 %v2291_v44  ;;  %1589 = vmatpush3.bf16.msra.mxu1 %v2294_v45 }
 0x679   :  { %1173 = vmatprep.subr.bf16.mxu0 %v2297_v46  ;;  %1590 = vmatprep.subr.bf16.mxu1 %v1913_v0 }
 0x67c   :  { %1174 = vmatpush1.bf16.msra.mxu0 %v2301_v43  ;;  %1591 = vmatpush3.bf16.msra.mxu1 %v2304_v47 }
 0x67d   :  { %1175 = vmatprep.subr.bf16.mxu0 %v2307_v42  ;;  %1592 = vmatprep.subr.bf16.mxu1 %v1913_v0 }
 0x680   :  { %1176 = vmatpush1.bf16.msra.mxu0 %v2311_v48  ;;  %1593 = vmatpush3.bf16.msra.mxu1 %v2314_v3  ;;  %v1030_v48 = vld [vmem:[#allocation2 + $0x140] sm:$0xff] }
 0x681   :  { %1177 = vmatprep.subr.bf16.mxu0 %v2317_v4  ;;  %1594 = vmatprep.subr.bf16.mxu1 %v1913_v0 }
 0x684   :  { %1178 = vmatpush1.bf16.msra.mxu0 %v2321_v5  ;;  %1595 = vmatpush3.bf16.msra.mxu1 %v2324_v6 }
 0x685   :  { %1179 = vmatprep.subr.bf16.mxu0 %v2327_v7  ;;  %1596 = vmatprep.subr.bf16.mxu1 %v1913_v0 }
 0x688   :  { %1180 = vmatpush1.bf16.msra.mxu0 %v2331_v8  ;;  %1597 = vmatpush3.bf16.msra.mxu1 %v2334_v9 }
 0x689   :  { %1181 = vmatprep.subr.bf16.mxu0 %v2337_v10  ;;  %1598 = vmatprep.subr.bf16.mxu1 %v1913_v0 }
 0x68c   :  { %1182 = vmatpush1.bf16.msra.mxu0 %v2341_v11  ;;  %1599 = vmatpush3.bf16.msra.mxu1 %v2344_v12 }
 0x68d   :  { %1183 = vmatprep.subr.bf16.mxu0 %v2347_v13  ;;  %1600 = vmatprep.subr.bf16.mxu1 %v1913_v0 }
 0x690   :  { %1184 = vmatpush1.bf16.msra.mxu0 %v2351_v14  ;;  %1601 = vmatpush3.bf16.msra.mxu1 %v2354_v15 }
 0x746   :  { %v1067_v35 = vpop.f32.mrb[24].mxu0  ;;  %v1110_v36 = vpop.f32.mrb[24].mxu1 }
 0x747   :  { %v1117_v33 = vadd.f32 %v1067_v35, %v1026_v1  ;;  %v1069_v44 = vpop.f32.mrb[25].mxu0  ;;  %v1584_v45 = vpop.f32.mrb[25].mxu1  ;;  %v1145_v49 = vadd.f32 %v2404_v53, %v1110_v36 }
 0x748   :  { %v1071_v46 = vpop.f32.mrb[26].mxu0  ;;  %v1113_v43 = vpop.f32.mrb[26].mxu1  ;;  %v1131_v0 = vadd.f32 %v1069_v44, %v1027_v41 }
 0x749   :  { %v1366_v47 = vmul.f32 -1.442695, %v1117_v33  ;;  %v1118_v42 = vadd.f32 %v1071_v46, %v1029_v40  ;;  %v1073_v3 = vpop.f32.mrb[27].mxu0  ;;  %v1585_v4 = vpop.f32.mrb[27].mxu1  ;;  %v1146_v59 = vadd.f32 %v2404_v53, %v1113_v43 }
 0x74a   :  { %v1132_v6 = vadd.f32 %v1073_v3, %v1030_v48  ;;  %v1368_v7 = vmul.f32 -1.442695, %v1131_v0 }
 0x74b   :  { %1770 = vpow2.f32 %v1366_v47  ;;  %v1367_v5 = vmul.f32 -1.442695, %v1118_v42 }
 0x74c   :  { %v1369_v8 = vmul.f32 -1.442695, %v1132_v6 }
 0x74d   :  { %1772 = vpow2.f32 %v1367_v5 }
 0x74e   :  { %1774 = vpow2.f32 %v1368_v7  ;;  %v1164_v7 = vld [vmem:[#allocation2 + $0x160] sm:$0xff] }
 0x74f   :  { %1776 = vpow2.f32 %v1369_v8 }
 0x755   :  { %v1771_v9 = vpop.eup %1770 }
 0x756   :  { %v1125_v10 = vadd.f32 1.0, %v1771_v9 }
 0x757   :  { %v1773_v11 = vpop.eup %1772 }
 0x758   :  { %1778 = vrcp.f32 %v1125_v10  ;;  %v1126_v12 = vadd.f32 1.0, %v1773_v11  ;;  %v1775_v13 = vpop.eup %1774  ;;  %v1167_v11 = vld [vmem:[#allocation2 + $0x178] sm:$0xff] }
 0x759   :  { %v1777_v14 = vpop.eup %1776  ;;  %v1139_v15 = vadd.f32 1.0, %v1775_v13 }
 0x75a   :  { %1780 = vrcp.f32 %v1126_v12  ;;  %v1140_v56 = vadd.f32 1.0, %v1777_v14 }
 0x75b   :  { %1782 = vrcp.f32 %v1139_v15 }
 0x75c   :  { %1784 = vrcp.f32 %v1140_v56 }
 0x762   :  { %v1779_v37 = vpop.eup %1778 }
 0x763   :  { %v1147_v58 = vmul.f32 %v1779_v37, %v1145_v49 }
 0x764   :  { %v1781_v60 = vpop.eup %1780 }
 0x765   :  { %v1149_v62 = vadd.f32 %v1147_v58, %v1028_v38  ;;  %v1148_v57 = vmul.f32 %v1781_v60, %v1146_v59  ;;  %v1783_v27 = vpop.eup %1782 }
 0x766   :  { %v1785_v28 = vpop.eup %1784  ;;  %v1153_v29 = vsub.f32 1.0, %v1783_v27  ;;  %v1157_v55 = vmul.f32 %v1783_v27, %v2362_v25 }
 0x767   :  { %1786 = vtanh.f32 %v1149_v62  ;;  %v1150_v63 = vadd.f32 %v1148_v57, %v1031_v61  ;;  %v1154_v32 = vsub.f32 1.0, %v1785_v28  ;;  %v1158_v16 = vmul.f32 %v1785_v28, %v2364_v50  ;;  %v1166_v50 = vld [vmem:[#allocation2 + $0x170] sm:$0xff] }
 0x769   :  { %1788 = vtanh.f32 %v1150_v63 }
 0x771   :  { %v1787_v26 = vpop.eup %1786 }
 0x772   :  { %v1155_v54 = vmul.f32 %v1787_v26, %v1153_v29 }
 0x773   :  { %v1789_v34 = vpop.eup %1788 }
 0x774   :  { %v1156_v39 = vmul.f32 %v1789_v34, %v1154_v32  ;;  %v1159_v17 = vadd.f32 %v1157_v55, %v1155_v54 }
 0x776   :  { %v2410_v18 = vadd.f32 %v1158_v16, %v1156_v39 }
 0x778   :  { %v1168_v19 = vpack.c.bf16 %v2410_v18, %v1159_v17 }
 0x77a   :  { %1202 = vmatmul.mubr.bf16.vlgmr.msra.gmra.mrb[28].mxu0 %v1168_v19  ;;  %1603 = vmatmul.mubr.bf16.vlgmr.msra.gmra.mrb[28].mxu1 %v1168_v19 }
 0x84d   :  { %v1203_v21 = vpop.f32.mrb[28].mxu0  ;;  %v1246_v22 = vpop.f32.mrb[28].mxu1 }
 0x84e   :  { %v1253_v23 = vadd.f32 %v1203_v21, %v1162_v20  ;;  %v1205_v30 = vpop.f32.mrb[29].mxu0  ;;  %v1604_v31 = vpop.f32.mrb[29].mxu1  ;;  %v1281_v0 = vadd.f32 %v2404_v53, %v1246_v22 }
 0x84f   :  { %v1207_v51 = vpop.f32.mrb[30].mxu0  ;;  %v1249_v25 = vpop.f32.mrb[30].mxu1  ;;  %v1267_v40 = vadd.f32 %v1205_v30, %v1163_v24 }
 0x850   :  { %v1370_v52 = vmul.f32 -1.442695, %v1253_v23  ;;  %v1254_v1 = vadd.f32 %v1207_v51, %v1165_v2  ;;  %v1209_v35 = vpop.f32.mrb[31].mxu0  ;;  %v1605_v36 = vpop.f32.mrb[31].mxu1  ;;  %v1282_v9 = vadd.f32 %v2404_v53, %v1249_v25 }
 0x851   :  { %v1268_v41 = vadd.f32 %v1209_v35, %v1166_v50  ;;  %v1372_v44 = vmul.f32 -1.442695, %v1267_v40 }
 0x852   :  { %1790 = vpow2.f32 %v1370_v52  ;;  %v1371_v33 = vmul.f32 -1.442695, %v1254_v1 }
 0x853   :  { %v1373_v45 = vmul.f32 -1.442695, %v1268_v41 }
 0x854   :  { %1792 = vpow2.f32 %v1371_v33 }
 0x855   :  { %1794 = vpow2.f32 %v1372_v44 }
 0x856   :  { %1796 = vpow2.f32 %v1373_v45 }
 0x85c   :  { %v1791_v46 = vpop.eup %1790 }
 0x85d   :  { %v1261_v43 = vadd.f32 1.0, %v1791_v46 }
 0x85e   :  { %v1793_v47 = vpop.eup %1792 }
 0x85f   :  { %1798 = vrcp.f32 %v1261_v43  ;;  %v1262_v42 = vadd.f32 1.0, %v1793_v47  ;;  %v1795_v48 = vpop.eup %1794 }
 0x860   :  { %v1797_v3 = vpop.eup %1796  ;;  %v1275_v4 = vadd.f32 1.0, %v1795_v48 }
 0x861   :  { %1800 = vrcp.f32 %v1262_v42  ;;  %v1276_v5 = vadd.f32 1.0, %v1797_v3 }
 0x862   :  { %1802 = vrcp.f32 %v1275_v4 }
 0x863   :  { %1804 = vrcp.f32 %v1276_v5 }
 0x869   :  { %v1799_v6 = vpop.eup %1798 }
 0x86a   :  { %v1283_v8 = vmul.f32 %v1799_v6, %v1281_v0 }
 0x86b   :  { %v1801_v10 = vpop.eup %1800 }
 0x86c   :  { %v1285_v12 = vadd.f32 %v1283_v8, %v1164_v7  ;;  %v1284_v13 = vmul.f32 %v1801_v10, %v1282_v9  ;;  %v1803_v15 = vpop.eup %1802 }
 0x86d   :  { %v1805_v49 = vpop.eup %1804  ;;  %v1289_v56 = vsub.f32 1.0, %v1803_v15  ;;  %v1293_v59 = vmul.f32 %v1803_v15, %v1159_v17 }
 0x86e   :  { %1806 = vtanh.f32 %v1285_v12  ;;  %v1286_v14 = vadd.f32 %v1284_v13, %v1167_v11  ;;  %v1290_v38 = vsub.f32 1.0, %v1805_v49  ;;  %v1294_v53 = vmul.f32 %v1805_v49, %v2410_v18 }
 0x870   :  { %1808 = vtanh.f32 %v1286_v14 }
 0x878   :  { %v1807_v37 = vpop.eup %1806 }
 0x879   :  { %v1291_v58 = vmul.f32 %v1807_v37, %v1289_v56 }
 0x87a   :  { %v1809_v60 = vpop.eup %1808 }
 0x87b   :  { %v1292_v61 = vmul.f32 %v1809_v60, %v1290_v38  ;;  %v1295_v62 = vadd.f32 %v1293_v59, %v1291_v58 }
 0x87d   :  { %v1296_v57 = vadd.f32 %v1294_v53, %v1292_v61  ;;  %1297 = vst [vmem:[#allocation7] sm:$0xff] %v1295_v62 }
 0x87f   :  { %1298 = vst [vmem:[#allocation7 + $0x8] sm:$0xff] %v1296_v57 }
 0x880   :  { %1890 = shalt.err (!%p1887_p6)
}
 0x881   :  { %s1891_s19 = scalar_lea.hbm %s2431_s3, 256 }
 0x882   :  { %p1892_p7 = scmp.ne.s32.totalorder %s2431_s3, %s1891_s19  ;;  %p1895_p8 = scmp.lt.u32.totalorder %s1891_s19, %s2431_s3 }
 0x884   :  { %p1897_p9 = pnand %p1895_p8, %p1892_p7 }
 0x886   :  { %1900 = shalt.err (!%p1897_p9)
}
 0x887   :  { %s1917_s24 = smov 128   ;;  %s1918_s25 = smov 8  }
 0x888   :  { %1310 = dma.vmem_to_hbm [thread:$0]  %s1305_s15, 256, %s2431_s3, [#allocation4], %s1917_s24, %s1917_s24, %s1918_s25  }
 0x889   :  { %1905 = dma.done.wait [#allocation4], 256  }
 0x88a   :  { %1906 = vsyncadd [#allocation4], 4294967040 }
 0x88b   :  { %1314 = vsyncpa [#allocation3], 1 }
 0x88c   :  { %1315 = vsyncpa [#allocation6], 1 }
 0x88d   :  { %1316 = vsyncpa [#allocation4], 1 }

</bundles_post_ra>
